<compile_context>
chip_gen: v7x
topology: tpu7x:2x2x1
jax: 0.10.0
libtpu: 0.0.40
codegen_flags: <defaults>
</compile_context>

<pallas_src>
import jax
import jax.numpy as jnp
import numpy as np
from jax.experimental import pallas as pl
from jax.experimental.pallas import tpu as pltpu

KSIZE = 7
PAD = (KSIZE - 1) // 2


def _spatial_attention_kernel(w_ref, x_ref, o_ref, pad_ref):
    # w_ref  : SMEM (2*7*7,)           flattened conv weight (layout OIHW, O=1)
    # x_ref  : VMEM (Bt, C, H*W)       lane-dense input block
    # o_ref  : VMEM (Bt, C, H*W)       lane-dense output block
    # pad_ref: VMEM (Bt, 2, H+6, W+6)  zero-padded pooled maps (scratch)
    Bt, C, HW = x_ref.shape
    Hp, Wp = pad_ref.shape[2], pad_ref.shape[3]
    H, W = Hp - 2 * PAD, Wp - 2 * PAD

    # --- Zero the padded scratch (halo) -------------------------------------
    # The review suggested zeroing only on pl.program_id(0) == 0.  That is not
    # safe when the "parallel" batch axis is split across TensorCores (v7x
    # megacore): scratch is per-core, and a core whose grid partition does not
    # contain step 0 would read an uninitialized halo.  The full zero store is
    # a few KiB — negligible next to the x traffic — so it stays per-step.
    pad_ref[...] = jnp.zeros_like(pad_ref)

    # --- ChannelPool: max / mean over channels, straight from the ref -------
    # xf is consumed here and NOT kept live across the 98-tap conv below.
    xf = x_ref[...].astype(jnp.float32)                      # (Bt, C, HW)
    pooled_max = jnp.max(xf, axis=1)                         # (Bt, HW)
    pooled_mean = jnp.mean(xf, axis=1)                       # (Bt, HW)  f32 accum
    pooled = jnp.concatenate(
        [pooled_max.reshape(Bt, 1, H, W),
         pooled_mean.reshape(Bt, 1, H, W)], axis=1)          # (Bt, 2, H, W)
    # Single merged interior store of both pooled maps.
    pad_ref[:, :, PAD:PAD + H, PAD:PAD + W] = pooled

    # --- 7x7 conv, 2 -> 1 channels, no bias ----------------------------------
    # dx (lane) shifts hoisted out of the dy loop: one lane shift per (c, dx)
    # (14 total) reused across all 7 dy values.  Four partial accumulators
    # break the serial dependency chain so the VALU slots can co-issue.
    n_acc = 4
    accs = [jnp.zeros((Bt, H, W), jnp.float32) for _ in range(n_acc)]
    tap = 0
    for c in range(2):
        pad_c = pad_ref[:, c]                                # (Bt, Hp, Wp)
        for dx in range(KSIZE):
            col = pad_c[:, :, dx:dx + W]                     # one lane shift
            for dy in range(KSIZE):
                w = w_ref[c * KSIZE * KSIZE + dy * KSIZE + dx]
                accs[tap % n_acc] = accs[tap % n_acc] + w * col[:, dy:dy + H, :]
                tap += 1
    acc = (accs[0] + accs[1]) + (accs[2] + accs[3])          # (Bt, H, W)

    # --- Sigmoid gate on the EUP (exp + approx reciprocal, no f32 divide) ---
    scale = pl.reciprocal(1.0 + jnp.exp(-acc), approx=True)  # (Bt, H, W)
    scale_flat = scale.reshape(Bt, 1, HW)                    # back to lane-dense

    # --- Gate multiply: re-read x in channel chunks (keeps the conv's live
    # set to a few vregs) and store lane-dense (unmasked vst) ----------------
    cc = min(C, 8)
    for c0 in range(0, C, cc):
        ce = min(cc, C - c0)
        xc = x_ref[:, c0:c0 + ce].astype(jnp.float32)        # (Bt, ce, HW)
        o_ref[:, c0:c0 + ce] = (xc * scale_flat).astype(o_ref.dtype)


def _pick_block_b(B, C, HW, itemsize):
    """Batch elements per grid step: big enough to amortize the ~0.35us/step
    pipeline overhead, small enough to (a) keep the in+out double-buffered
    blocks well under VMEM budget, (b) keep the conv's live set in registers,
    and (c) leave >= 2 grid steps when B > 1 so both v7x TensorCores get work."""
    budget_bytes = 8 << 20                      # in + out, double-buffered
    cap = 1 if B <= 1 else min(8, max(1, B // 2))
    for cand in range(cap, 0, -1):
        if B % cand == 0 and 4 * cand * C * HW * itemsize <= budget_bytes:
            return cand
    return 1


def spatial_attention(x, conv_weight):
    """x: (B, C, H, W); conv_weight: (1, 2, 7, 7) float32 (no bias)."""
    B, C, H, W = x.shape
    HW = H * W
    Bt = _pick_block_b(B, C, HW, x.dtype.itemsize)

    # Lane-dense view of x: (B, C, H*W).  For contiguous NCHW this reshape is
    # metadata-only, and per-step stores become unmasked full-lane vst.
    x2 = x.reshape(B, C, HW)
    w_flat = conv_weight.reshape(-1).astype(jnp.float32)     # (98,) -> SMEM

    out2 = pl.pallas_call(
        _spatial_attention_kernel,
        out_shape=jax.ShapeDtypeStruct((B, C, HW), x.dtype),
        grid_spec=pltpu.PrefetchScalarGridSpec(
            num_scalar_prefetch=0,
            grid=(B // Bt,),
            in_specs=[
                pl.BlockSpec(memory_space=pltpu.MemorySpace.SMEM),   # weights
                pl.BlockSpec((Bt, C, HW), lambda b: (b, 0, 0)),      # x
            ],
            out_specs=pl.BlockSpec((Bt, C, HW), lambda b: (b, 0, 0)),
            scratch_shapes=[
                pltpu.VMEM((Bt, 2, H + 2 * PAD, W + 2 * PAD), jnp.float32),
            ],
        ),
        compiler_params=pltpu.CompilerParams(
            dimension_semantics=("parallel",),
            # Within v7x's 64 MiB physical VMEM; raises the 16/32 MiB scoped
            # defaults on v5e/v6e so larger blocks can be used.
            vmem_limit_bytes=48 << 20,
        ),
    )(w_flat, x2)
    return out2.reshape(B, C, H, W)


def _reference(x, conv_weight):
    pooled = jnp.concatenate(
        [jnp.max(x, axis=1, keepdims=True), jnp.mean(x, axis=1, keepdims=True)],
        axis=1)
    out = jax.lax.conv_general_dilated(
        pooled, conv_weight, window_strides=(1, 1),
        padding=((PAD, PAD), (PAD, PAD)),
        dimension_numbers=("NCHW", "OIHW", "NCHW"))
    return x * jax.nn.sigmoid(out)


if __name__ == "__main__":
    key = jax.random.PRNGKey(0)
    kx, kw = jax.random.split(key)

    B, C, H, W = 2, 4, 16, 16
    x = jax.random.normal(kx, (B, C, H, W), dtype=jnp.float32)

    # Deterministic Conv2d(2, 1, kernel_size=7, bias=False) weight init
    # (PyTorch-style kaiming-uniform bound, synthetic — not a checkpoint load).
    fan_in = 2 * KSIZE * KSIZE
    bound = 1.0 / np.sqrt(fan_in)
    conv_weight = jax.random.uniform(
        kw, (1, 2, KSIZE, KSIZE), dtype=jnp.float32, minval=-bound, maxval=bound)

    out = spatial_attention(x, conv_weight)
    out = jax.block_until_ready(out)

    ref = _reference(x, conv_weight)
    # Tolerance loosened slightly because the sigmoid uses the EUP approximate
    # reciprocal (pl.reciprocal(approx=True)), per the performance review.
    np.testing.assert_allclose(np.asarray(out), np.asarray(ref),
                               rtol=2e-3, atol=2e-3)
    print("KERNEL_OK")
</pallas_src>

<mosaic_0001>
module attributes {stable_mosaic.version = 11 : i64} {
  func.func @_spatial_attention_kernel(%arg0: i32, %arg1: memref<98xf32, #tpu.memory_space<smem>>, %arg2: memref<1x4x256xf32, #tpu.memory_space<vmem>>, %arg3: memref<1x4x256xf32, #tpu.memory_space<vmem>>, %arg4: memref<1x2x22x22xf32, #tpu.memory_space<vmem>>) attributes {dimension_semantics = [#tpu.dimension_semantics<parallel>], iteration_bounds = array<i64: 2>, scalar_prefetch = 0 : i64, scratch_operands = 1 : i64, tpu.core_type = #tpu.core_type<tc>, window_params = [{transform_indices = @transform_0, window_bounds = array<i64: 98>}, {transform_indices = @transform_1, window_bounds = array<i64: 1, 4, 256>}, {transform_indices = @transform_2, window_bounds = array<i64: 1, 4, 256>}]} {
    %cst = arith.constant 0.000000e+00 : f32
    %0 = vector.broadcast %cst : f32 to vector<1x2x22x22xf32>
    %c0 = arith.constant 0 : index
    %c0_0 = arith.constant 0 : index
    %c0_1 = arith.constant 0 : index
    %c0_2 = arith.constant 0 : index
    %1 = vector.load %arg4[%c0, %c0_0, %c0_1, %c0_2] : memref<1x2x22x22xf32, #tpu.memory_space<vmem>>, vector<1x2x22x22xf32>
    tpu.vector_store %arg4[%c0, %c0_0, %c0_1, %c0_2], %0 {strides = array<i32>} : memref<1x2x22x22xf32, #tpu.memory_space<vmem>>, vector<1x2x22x22xf32>,
    %c0_3 = arith.constant 0 : index
    %c0_4 = arith.constant 0 : index
    %c0_5 = arith.constant 0 : index
    %2 = vector.load %arg2[%c0_3, %c0_4, %c0_5] : memref<1x4x256xf32, #tpu.memory_space<vmem>>, vector<1x4x256xf32>
    %cst_6 = arith.constant dense<0xFF800000> : vector<1x256xf32>
    %3 = vector.multi_reduction <maximumf>, %2, %cst_6 [1] : vector<1x4x256xf32> to vector<1x256xf32>
    %cst_7 = arith.constant dense<0.000000e+00> : vector<1x256xf32>
    %4 = vector.multi_reduction <add>, %2, %cst_7 [1] : vector<1x4x256xf32> to vector<1x256xf32>
    %cst_8 = arith.constant 4.000000e+00 : f32
    %5 = vector.broadcast %cst_8 : f32 to vector<1x256xf32>
    %6 = arith.divf %4, %5 : vector<1x256xf32>
    %7 = vector.shape_cast %3 : vector<1x256xf32> to vector<1x1x16x16xf32>
    %8 = vector.shape_cast %6 : vector<1x256xf32> to vector<1x1x16x16xf32>
    %9 = tpu.concatenate %7, %8 in 1 : vector<1x1x16x16xf32>, vector<1x1x16x16xf32> -> vector<1x2x16x16xf32>
    %c0_9 = arith.constant 0 : index
    %c0_10 = arith.constant 0 : index
    %c3 = arith.constant 3 : index
    %c3_11 = arith.constant 3 : index
    %10 = vector.load %arg4[%c0_9, %c0_10, %c3, %c3_11] : memref<1x2x22x22xf32, #tpu.memory_space<vmem>>, vector<1x2x16x16xf32>
    tpu.vector_store %arg4[%c0_9, %c0_10, %c3, %c3_11], %9 {strides = array<i32>} : memref<1x2x22x22xf32, #tpu.memory_space<vmem>>, vector<1x2x16x16xf32>,
    %cst_12 = arith.constant 0.000000e+00 : f32
    %11 = vector.broadcast %cst_12 : f32 to vector<1x16x16xf32>
    %cst_13 = arith.constant 0.000000e+00 : f32
    %12 = vector.broadcast %cst_13 : f32 to vector<1x16x16xf32>
    %cst_14 = arith.constant 0.000000e+00 : f32
    %13 = vector.broadcast %cst_14 : f32 to vector<1x16x16xf32>
    %cst_15 = arith.constant 0.000000e+00 : f32
    %14 = vector.broadcast %cst_15 : f32 to vector<1x16x16xf32>
    %c0_16 = arith.constant 0 : index
    %c0_17 = arith.constant 0 : index
    %c0_18 = arith.constant 0 : index
    %c0_19 = arith.constant 0 : index
    %15 = vector.load %arg4[%c0_16, %c0_17, %c0_18, %c0_19] : memref<1x2x22x22xf32, #tpu.memory_space<vmem>>, vector<1x1x22x22xf32>
    %16 = vector.shape_cast %15 : vector<1x1x22x22xf32> to vector<1x22x22xf32>
    %17 = vector.extract_strided_slice %16 {offsets = [0, 0, 0], sizes = [1, 22, 16], strides = [1, 1, 1]} : vector<1x22x22xf32> to vector<1x22x16xf32>
    %c0_20 = arith.constant 0 : index
    %18 = memref.load %arg1[%c0_20] : memref<98xf32, #tpu.memory_space<smem>>
    %19 = vector.extract_strided_slice %17 {offsets = [0, 0, 0], sizes = [1, 16, 16], strides = [1, 1, 1]} : vector<1x22x16xf32> to vector<1x16x16xf32>
    %20 = vector.broadcast %18 : f32 to vector<1x16x16xf32>
    %21 = arith.mulf %20, %19 : vector<1x16x16xf32>
    %22 = arith.addf %11, %21 : vector<1x16x16xf32>
    %c7 = arith.constant 7 : index
    %23 = memref.load %arg1[%c7] : memref<98xf32, #tpu.memory_space<smem>>
    %24 = vector.extract_strided_slice %17 {offsets = [0, 1, 0], sizes = [1, 16, 16], strides = [1, 1, 1]} : vector<1x22x16xf32> to vector<1x16x16xf32>
    %25 = vector.broadcast %23 : f32 to vector<1x16x16xf32>
    %26 = arith.mulf %25, %24 : vector<1x16x16xf32>
    %27 = arith.addf %12, %26 : vector<1x16x16xf32>
    %c14 = arith.constant 14 : index
    %28 = memref.load %arg1[%c14] : memref<98xf32, #tpu.memory_space<smem>>
    %29 = vector.extract_strided_slice %17 {offsets = [0, 2, 0], sizes = [1, 16, 16], strides = [1, 1, 1]} : vector<1x22x16xf32> to vector<1x16x16xf32>
    %30 = vector.broadcast %28 : f32 to vector<1x16x16xf32>
    %31 = arith.mulf %30, %29 : vector<1x16x16xf32>
    %32 = arith.addf %13, %31 : vector<1x16x16xf32>
    %c21 = arith.constant 21 : index
    %33 = memref.load %arg1[%c21] : memref<98xf32, #tpu.memory_space<smem>>
    %34 = vector.extract_strided_slice %17 {offsets = [0, 3, 0], sizes = [1, 16, 16], strides = [1, 1, 1]} : vector<1x22x16xf32> to vector<1x16x16xf32>
    %35 = vector.broadcast %33 : f32 to vector<1x16x16xf32>
    %36 = arith.mulf %35, %34 : vector<1x16x16xf32>
    %37 = arith.addf %14, %36 : vector<1x16x16xf32>
    %c28 = arith.constant 28 : index
    %38 = memref.load %arg1[%c28] : memref<98xf32, #tpu.memory_space<smem>>
    %39 = vector.extract_strided_slice %17 {offsets = [0, 4, 0], sizes = [1, 16, 16], strides = [1, 1, 1]} : vector<1x22x16xf32> to vector<1x16x16xf32>
    %40 = vector.broadcast %38 : f32 to vector<1x16x16xf32>
    %41 = arith.mulf %40, %39 : vector<1x16x16xf32>
    %42 = arith.addf %22, %41 : vector<1x16x16xf32>
    %c35 = arith.constant 35 : index
    %43 = memref.load %arg1[%c35] : memref<98xf32, #tpu.memory_space<smem>>
    %44 = vector.extract_strided_slice %17 {offsets = [0, 5, 0], sizes = [1, 16, 16], strides = [1, 1, 1]} : vector<1x22x16xf32> to vector<1x16x16xf32>
    %45 = vector.broadcast %43 : f32 to vector<1x16x16xf32>
    %46 = arith.mulf %45, %44 : vector<1x16x16xf32>
    %47 = arith.addf %27, %46 : vector<1x16x16xf32>
    %c42 = arith.constant 42 : index
    %48 = memref.load %arg1[%c42] : memref<98xf32, #tpu.memory_space<smem>>
    %49 = vector.extract_strided_slice %17 {offsets = [0, 6, 0], sizes = [1, 16, 16], strides = [1, 1, 1]} : vector<1x22x16xf32> to vector<1x16x16xf32>
    %50 = vector.broadcast %48 : f32 to vector<1x16x16xf32>
    %51 = arith.mulf %50, %49 : vector<1x16x16xf32>
    %52 = arith.addf %32, %51 : vector<1x16x16xf32>
    %53 = vector.extract_strided_slice %16 {offsets = [0, 0, 1], sizes = [1, 22, 16], strides = [1, 1, 1]} : vector<1x22x22xf32> to vector<1x22x16xf32>
    %c1 = arith.constant 1 : index
    %54 = memref.load %arg1[%c1] : memref<98xf32, #tpu.memory_space<smem>>
    %55 = vector.extract_strided_slice %53 {offsets = [0, 0, 0], sizes = [1, 16, 16], strides = [1, 1, 1]} : vector<1x22x16xf32> to vector<1x16x16xf32>
    %56 = vector.broadcast %54 : f32 to vector<1x16x16xf32>
    %57 = arith.mulf %56, %55 : vector<1x16x16xf32>
    %58 = arith.addf %37, %57 : vector<1x16x16xf32>
    %c8 = arith.constant 8 : index
    %59 = memref.load %arg1[%c8] : memref<98xf32, #tpu.memory_space<smem>>
    %60 = vector.extract_strided_slice %53 {offsets = [0, 1, 0], sizes = [1, 16, 16], strides = [1, 1, 1]} : vector<1x22x16xf32> to vector<1x16x16xf32>
    %61 = vector.broadcast %59 : f32 to vector<1x16x16xf32>
    %62 = arith.mulf %61, %60 : vector<1x16x16xf32>
    %63 = arith.addf %42, %62 : vector<1x16x16xf32>
    %c15 = arith.constant 15 : index
    %64 = memref.load %arg1[%c15] : memref<98xf32, #tpu.memory_space<smem>>
    %65 = vector.extract_strided_slice %53 {offsets = [0, 2, 0], sizes = [1, 16, 16], strides = [1, 1, 1]} : vector<1x22x16xf32> to vector<1x16x16xf32>
    %66 = vector.broadcast %64 : f32 to vector<1x16x16xf32>
    %67 = arith.mulf %66, %65 : vector<1x16x16xf32>
    %68 = arith.addf %47, %67 : vector<1x16x16xf32>
    %c22 = arith.constant 22 : index
    %69 = memref.load %arg1[%c22] : memref<98xf32, #tpu.memory_space<smem>>
    %70 = vector.extract_strided_slice %53 {offsets = [0, 3, 0], sizes = [1, 16, 16], strides = [1, 1, 1]} : vector<1x22x16xf32> to vector<1x16x16xf32>
    %71 = vector.broadcast %69 : f32 to vector<1x16x16xf32>
    %72 = arith.mulf %71, %70 : vector<1x16x16xf32>
    %73 = arith.addf %52, %72 : vector<1x16x16xf32>
    %c29 = arith.constant 29 : index
    %74 = memref.load %arg1[%c29] : memref<98xf32, #tpu.memory_space<smem>>
    %75 = vector.extract_strided_slice %53 {offsets = [0, 4, 0], sizes = [1, 16, 16], strides = [1, 1, 1]} : vector<1x22x16xf32> to vector<1x16x16xf32>
    %76 = vector.broadcast %74 : f32 to vector<1x16x16xf32>
    %77 = arith.mulf %76, %75 : vector<1x16x16xf32>
    %78 = arith.addf %58, %77 : vector<1x16x16xf32>
    %c36 = arith.constant 36 : index
    %79 = memref.load %arg1[%c36] : memref<98xf32, #tpu.memory_space<smem>>
    %80 = vector.extract_strided_slice %53 {offsets = [0, 5, 0], sizes = [1, 16, 16], strides = [1, 1, 1]} : vector<1x22x16xf32> to vector<1x16x16xf32>
    %81 = vector.broadcast %79 : f32 to vector<1x16x16xf32>
    %82 = arith.mulf %81, %80 : vector<1x16x16xf32>
    %83 = arith.addf %63, %82 : vector<1x16x16xf32>
    %c43 = arith.constant 43 : index
    %84 = memref.load %arg1[%c43] : memref<98xf32, #tpu.memory_space<smem>>
    %85 = vector.extract_strided_slice %53 {offsets = [0, 6, 0], sizes = [1, 16, 16], strides = [1, 1, 1]} : vector<1x22x16xf32> to vector<1x16x16xf32>
    %86 = vector.broadcast %84 : f32 to vector<1x16x16xf32>
    %87 = arith.mulf %86, %85 : vector<1x16x16xf32>
    %88 = arith.addf %68, %87 : vector<1x16x16xf32>
    %89 = vector.extract_strided_slice %16 {offsets = [0, 0, 2], sizes = [1, 22, 16], strides = [1, 1, 1]} : vector<1x22x22xf32> to vector<1x22x16xf32>
    %c2 = arith.constant 2 : index
    %90 = memref.load %arg1[%c2] : memref<98xf32, #tpu.memory_space<smem>>
    %91 = vector.extract_strided_slice %89 {offsets = [0, 0, 0], sizes = [1, 16, 16], strides = [1, 1, 1]} : vector<1x22x16xf32> to vector<1x16x16xf32>
    %92 = vector.broadcast %90 : f32 to vector<1x16x16xf32>
    %93 = arith.mulf %92, %91 : vector<1x16x16xf32>
    %94 = arith.addf %73, %93 : vector<1x16x16xf32>
    %c9 = arith.constant 9 : index
    %95 = memref.load %arg1[%c9] : memref<98xf32, #tpu.memory_space<smem>>
    %96 = vector.extract_strided_slice %89 {offsets = [0, 1, 0], sizes = [1, 16, 16], strides = [1, 1, 1]} : vector<1x22x16xf32> to vector<1x16x16xf32>
    %97 = vector.broadcast %95 : f32 to vector<1x16x16xf32>
    %98 = arith.mulf %97, %96 : vector<1x16x16xf32>
    %99 = arith.addf %78, %98 : vector<1x16x16xf32>
    %c16 = arith.constant 16 : index
    %100 = memref.load %arg1[%c16] : memref<98xf32, #tpu.memory_space<smem>>
    %101 = vector.extract_strided_slice %89 {offsets = [0, 2, 0], sizes = [1, 16, 16], strides = [1, 1, 1]} : vector<1x22x16xf32> to vector<1x16x16xf32>
    %102 = vector.broadcast %100 : f32 to vector<1x16x16xf32>
    %103 = arith.mulf %102, %101 : vector<1x16x16xf32>
    %104 = arith.addf %83, %103 : vector<1x16x16xf32>
    %c23 = arith.constant 23 : index
    %105 = memref.load %arg1[%c23] : memref<98xf32, #tpu.memory_space<smem>>
    %106 = vector.extract_strided_slice %89 {offsets = [0, 3, 0], sizes = [1, 16, 16], strides = [1, 1, 1]} : vector<1x22x16xf32> to vector<1x16x16xf32>
    %107 = vector.broadcast %105 : f32 to vector<1x16x16xf32>
    %108 = arith.mulf %107, %106 : vector<1x16x16xf32>
    %109 = arith.addf %88, %108 : vector<1x16x16xf32>
    %c30 = arith.constant 30 : index
    %110 = memref.load %arg1[%c30] : memref<98xf32, #tpu.memory_space<smem>>
    %111 = vector.extract_strided_slice %89 {offsets = [0, 4, 0], sizes = [1, 16, 16], strides = [1, 1, 1]} : vector<1x22x16xf32> to vector<1x16x16xf32>
    %112 = vector.broadcast %110 : f32 to vector<1x16x16xf32>
    %113 = arith.mulf %112, %111 : vector<1x16x16xf32>
    %114 = arith.addf %94, %113 : vector<1x16x16xf32>
    %c37 = arith.constant 37 : index
    %115 = memref.load %arg1[%c37] : memref<98xf32, #tpu.memory_space<smem>>
    %116 = vector.extract_strided_slice %89 {offsets = [0, 5, 0], sizes = [1, 16, 16], strides = [1, 1, 1]} : vector<1x22x16xf32> to vector<1x16x16xf32>
    %117 = vector.broadcast %115 : f32 to vector<1x16x16xf32>
    %118 = arith.mulf %117, %116 : vector<1x16x16xf32>
    %119 = arith.addf %99, %118 : vector<1x16x16xf32>
    %c44 = arith.constant 44 : index
    %120 = memref.load %arg1[%c44] : memref<98xf32, #tpu.memory_space<smem>>
    %121 = vector.extract_strided_slice %89 {offsets = [0, 6, 0], sizes = [1, 16, 16], strides = [1, 1, 1]} : vector<1x22x16xf32> to vector<1x16x16xf32>
    %122 = vector.broadcast %120 : f32 to vector<1x16x16xf32>
    %123 = arith.mulf %122, %121 : vector<1x16x16xf32>
    %124 = arith.addf %104, %123 : vector<1x16x16xf32>
    %125 = vector.extract_strided_slice %16 {offsets = [0, 0, 3], sizes = [1, 22, 16], strides = [1, 1, 1]} : vector<1x22x22xf32> to vector<1x22x16xf32>
    %c3_21 = arith.constant 3 : index
    %126 = memref.load %arg1[%c3_21] : memref<98xf32, #tpu.memory_space<smem>>
    %127 = vector.extract_strided_slice %125 {offsets = [0, 0, 0], sizes = [1, 16, 16], strides = [1, 1, 1]} : vector<1x22x16xf32> to vector<1x16x16xf32>
    %128 = vector.broadcast %126 : f32 to vector<1x16x16xf32>
    %129 = arith.mulf %128, %127 : vector<1x16x16xf32>
    %130 = arith.addf %109, %129 : vector<1x16x16xf32>
    %c10 = arith.constant 10 : index
    %131 = memref.load %arg1[%c10] : memref<98xf32, #tpu.memory_space<smem>>
    %132 = vector.extract_strided_slice %125 {offsets = [0, 1, 0], sizes = [1, 16, 16], strides = [1, 1, 1]} : vector<1x22x16xf32> to vector<1x16x16xf32>
    %133 = vector.broadcast %131 : f32 to vector<1x16x16xf32>
    %134 = arith.mulf %133, %132 : vector<1x16x16xf32>
    %135 = arith.addf %114, %134 : vector<1x16x16xf32>
    %c17 = arith.constant 17 : index
    %136 = memref.load %arg1[%c17] : memref<98xf32, #tpu.memory_space<smem>>
    %137 = vector.extract_strided_slice %125 {offsets = [0, 2, 0], sizes = [1, 16, 16], strides = [1, 1, 1]} : vector<1x22x16xf32> to vector<1x16x16xf32>
    %138 = vector.broadcast %136 : f32 to vector<1x16x16xf32>
    %139 = arith.mulf %138, %137 : vector<1x16x16xf32>
    %140 = arith.addf %119, %139 : vector<1x16x16xf32>
    %c24 = arith.constant 24 : index
    %141 = memref.load %arg1[%c24] : memref<98xf32, #tpu.memory_space<smem>>
    %142 = vector.extract_strided_slice %125 {offsets = [0, 3, 0], sizes = [1, 16, 16], strides = [1, 1, 1]} : vector<1x22x16xf32> to vector<1x16x16xf32>
    %143 = vector.broadcast %141 : f32 to vector<1x16x16xf32>
    %144 = arith.mulf %143, %142 : vector<1x16x16xf32>
    %145 = arith.addf %124, %144 : vector<1x16x16xf32>
    %c31 = arith.constant 31 : index
    %146 = memref.load %arg1[%c31] : memref<98xf32, #tpu.memory_space<smem>>
    %147 = vector.extract_strided_slice %125 {offsets = [0, 4, 0], sizes = [1, 16, 16], strides = [1, 1, 1]} : vector<1x22x16xf32> to vector<1x16x16xf32>
    %148 = vector.broadcast %146 : f32 to vector<1x16x16xf32>
    %149 = arith.mulf %148, %147 : vector<1x16x16xf32>
    %150 = arith.addf %130, %149 : vector<1x16x16xf32>
    %c38 = arith.constant 38 : index
    %151 = memref.load %arg1[%c38] : memref<98xf32, #tpu.memory_space<smem>>
    %152 = vector.extract_strided_slice %125 {offsets = [0, 5, 0], sizes = [1, 16, 16], strides = [1, 1, 1]} : vector<1x22x16xf32> to vector<1x16x16xf32>
    %153 = vector.broadcast %151 : f32 to vector<1x16x16xf32>
    %154 = arith.mulf %153, %152 : vector<1x16x16xf32>
    %155 = arith.addf %135, %154 : vector<1x16x16xf32>
    %c45 = arith.constant 45 : index
    %156 = memref.load %arg1[%c45] : memref<98xf32, #tpu.memory_space<smem>>
    %157 = vector.extract_strided_slice %125 {offsets = [0, 6, 0], sizes = [1, 16, 16], strides = [1, 1, 1]} : vector<1x22x16xf32> to vector<1x16x16xf32>
    %158 = vector.broadcast %156 : f32 to vector<1x16x16xf32>
    %159 = arith.mulf %158, %157 : vector<1x16x16xf32>
    %160 = arith.addf %140, %159 : vector<1x16x16xf32>
    %161 = vector.extract_strided_slice %16 {offsets = [0, 0, 4], sizes = [1, 22, 16], strides = [1, 1, 1]} : vector<1x22x22xf32> to vector<1x22x16xf32>
    %c4 = arith.constant 4 : index
    %162 = memref.load %arg1[%c4] : memref<98xf32, #tpu.memory_space<smem>>
    %163 = vector.extract_strided_slice %161 {offsets = [0, 0, 0], sizes = [1, 16, 16], strides = [1, 1, 1]} : vector<1x22x16xf32> to vector<1x16x16xf32>
    %164 = vector.broadcast %162 : f32 to vector<1x16x16xf32>
    %165 = arith.mulf %164, %163 : vector<1x16x16xf32>
    %166 = arith.addf %145, %165 : vector<1x16x16xf32>
    %c11 = arith.constant 11 : index
    %167 = memref.load %arg1[%c11] : memref<98xf32, #tpu.memory_space<smem>>
    %168 = vector.extract_strided_slice %161 {offsets = [0, 1, 0], sizes = [1, 16, 16], strides = [1, 1, 1]} : vector<1x22x16xf32> to vector<1x16x16xf32>
    %169 = vector.broadcast %167 : f32 to vector<1x16x16xf32>
    %170 = arith.mulf %169, %168 : vector<1x16x16xf32>
    %171 = arith.addf %150, %170 : vector<1x16x16xf32>
    %c18 = arith.constant 18 : index
    %172 = memref.load %arg1[%c18] : memref<98xf32, #tpu.memory_space<smem>>
    %173 = vector.extract_strided_slice %161 {offsets = [0, 2, 0], sizes = [1, 16, 16], strides = [1, 1, 1]} : vector<1x22x16xf32> to vector<1x16x16xf32>
    %174 = vector.broadcast %172 : f32 to vector<1x16x16xf32>
    %175 = arith.mulf %174, %173 : vector<1x16x16xf32>
    %176 = arith.addf %155, %175 : vector<1x16x16xf32>
    %c25 = arith.constant 25 : index
    %177 = memref.load %arg1[%c25] : memref<98xf32, #tpu.memory_space<smem>>
    %178 = vector.extract_strided_slice %161 {offsets = [0, 3, 0], sizes = [1, 16, 16], strides = [1, 1, 1]} : vector<1x22x16xf32> to vector<1x16x16xf32>
    %179 = vector.broadcast %177 : f32 to vector<1x16x16xf32>
    %180 = arith.mulf %179, %178 : vector<1x16x16xf32>
    %181 = arith.addf %160, %180 : vector<1x16x16xf32>
    %c32 = arith.constant 32 : index
    %182 = memref.load %arg1[%c32] : memref<98xf32, #tpu.memory_space<smem>>
    %183 = vector.extract_strided_slice %161 {offsets = [0, 4, 0], sizes = [1, 16, 16], strides = [1, 1, 1]} : vector<1x22x16xf32> to vector<1x16x16xf32>
    %184 = vector.broadcast %182 : f32 to vector<1x16x16xf32>
    %185 = arith.mulf %184, %183 : vector<1x16x16xf32>
    %186 = arith.addf %166, %185 : vector<1x16x16xf32>
    %c39 = arith.constant 39 : index
    %187 = memref.load %arg1[%c39] : memref<98xf32, #tpu.memory_space<smem>>
    %188 = vector.extract_strided_slice %161 {offsets = [0, 5, 0], sizes = [1, 16, 16], strides = [1, 1, 1]} : vector<1x22x16xf32> to vector<1x16x16xf32>
    %189 = vector.broadcast %187 : f32 to vector<1x16x16xf32>
    %190 = arith.mulf %189, %188 : vector<1x16x16xf32>
    %191 = arith.addf %171, %190 : vector<1x16x16xf32>
    %c46 = arith.constant 46 : index
    %192 = memref.load %arg1[%c46] : memref<98xf32, #tpu.memory_space<smem>>
    %193 = vector.extract_strided_slice %161 {offsets = [0, 6, 0], sizes = [1, 16, 16], strides = [1, 1, 1]} : vector<1x22x16xf32> to vector<1x16x16xf32>
    %194 = vector.broadcast %192 : f32 to vector<1x16x16xf32>
    %195 = arith.mulf %194, %193 : vector<1x16x16xf32>
    %196 = arith.addf %176, %195 : vector<1x16x16xf32>
    %197 = vector.extract_strided_slice %16 {offsets = [0, 0, 5], sizes = [1, 22, 16], strides = [1, 1, 1]} : vector<1x22x22xf32> to vector<1x22x16xf32>
    %c5 = arith.constant 5 : index
    %198 = memref.load %arg1[%c5] : memref<98xf32, #tpu.memory_space<smem>>
    %199 = vector.extract_strided_slice %197 {offsets = [0, 0, 0], sizes = [1, 16, 16], strides = [1, 1, 1]} : vector<1x22x16xf32> to vector<1x16x16xf32>
    %200 = vector.broadcast %198 : f32 to vector<1x16x16xf32>
    %201 = arith.mulf %200, %199 : vector<1x16x16xf32>
    %202 = arith.addf %181, %201 : vector<1x16x16xf32>
    %c12 = arith.constant 12 : index
    %203 = memref.load %arg1[%c12] : memref<98xf32, #tpu.memory_space<smem>>
    %204 = vector.extract_strided_slice %197 {offsets = [0, 1, 0], sizes = [1, 16, 16], strides = [1, 1, 1]} : vector<1x22x16xf32> to vector<1x16x16xf32>
    %205 = vector.broadcast %203 : f32 to vector<1x16x16xf32>
    %206 = arith.mulf %205, %204 : vector<1x16x16xf32>
    %207 = arith.addf %186, %206 : vector<1x16x16xf32>
    %c19 = arith.constant 19 : index
    %208 = memref.load %arg1[%c19] : memref<98xf32, #tpu.memory_space<smem>>
    %209 = vector.extract_strided_slice %197 {offsets = [0, 2, 0], sizes = [1, 16, 16], strides = [1, 1, 1]} : vector<1x22x16xf32> to vector<1x16x16xf32>
    %210 = vector.broadcast %208 : f32 to vector<1x16x16xf32>
    %211 = arith.mulf %210, %209 : vector<1x16x16xf32>
    %212 = arith.addf %191, %211 : vector<1x16x16xf32>
    %c26 = arith.constant 26 : index
    %213 = memref.load %arg1[%c26] : memref<98xf32, #tpu.memory_space<smem>>
    %214 = vector.extract_strided_slice %197 {offsets = [0, 3, 0], sizes = [1, 16, 16], strides = [1, 1, 1]} : vector<1x22x16xf32> to vector<1x16x16xf32>
    %215 = vector.broadcast %213 : f32 to vector<1x16x16xf32>
    %216 = arith.mulf %215, %214 : vector<1x16x16xf32>
    %217 = arith.addf %196, %216 : vector<1x16x16xf32>
    %c33 = arith.constant 33 : index
    %218 = memref.load %arg1[%c33] : memref<98xf32, #tpu.memory_space<smem>>
    %219 = vector.extract_strided_slice %197 {offsets = [0, 4, 0], sizes = [1, 16, 16], strides = [1, 1, 1]} : vector<1x22x16xf32> to vector<1x16x16xf32>
    %220 = vector.broadcast %218 : f32 to vector<1x16x16xf32>
    %221 = arith.mulf %220, %219 : vector<1x16x16xf32>
    %222 = arith.addf %202, %221 : vector<1x16x16xf32>
    %c40 = arith.constant 40 : index
    %223 = memref.load %arg1[%c40] : memref<98xf32, #tpu.memory_space<smem>>
    %224 = vector.extract_strided_slice %197 {offsets = [0, 5, 0], sizes = [1, 16, 16], strides = [1, 1, 1]} : vector<1x22x16xf32> to vector<1x16x16xf32>
    %225 = vector.broadcast %223 : f32 to vector<1x16x16xf32>
    %226 = arith.mulf %225, %224 : vector<1x16x16xf32>
    %227 = arith.addf %207, %226 : vector<1x16x16xf32>
    %c47 = arith.constant 47 : index
    %228 = memref.load %arg1[%c47] : memref<98xf32, #tpu.memory_space<smem>>
    %229 = vector.extract_strided_slice %197 {offsets = [0, 6, 0], sizes = [1, 16, 16], strides = [1, 1, 1]} : vector<1x22x16xf32> to vector<1x16x16xf32>
    %230 = vector.broadcast %228 : f32 to vector<1x16x16xf32>
    %231 = arith.mulf %230, %229 : vector<1x16x16xf32>
    %232 = arith.addf %212, %231 : vector<1x16x16xf32>
    %233 = vector.extract_strided_slice %16 {offsets = [0, 0, 6], sizes = [1, 22, 16], strides = [1, 1, 1]} : vector<1x22x22xf32> to vector<1x22x16xf32>
    %c6 = arith.constant 6 : index
    %234 = memref.load %arg1[%c6] : memref<98xf32, #tpu.memory_space<smem>>
    %235 = vector.extract_strided_slice %233 {offsets = [0, 0, 0], sizes = [1, 16, 16], strides = [1, 1, 1]} : vector<1x22x16xf32> to vector<1x16x16xf32>
    %236 = vector.broadcast %234 : f32 to vector<1x16x16xf32>
    %237 = arith.mulf %236, %235 : vector<1x16x16xf32>
    %238 = arith.addf %217, %237 : vector<1x16x16xf32>
    %c13 = arith.constant 13 : index
    %239 = memref.load %arg1[%c13] : memref<98xf32, #tpu.memory_space<smem>>
    %240 = vector.extract_strided_slice %233 {offsets = [0, 1, 0], sizes = [1, 16, 16], strides = [1, 1, 1]} : vector<1x22x16xf32> to vector<1x16x16xf32>
    %241 = vector.broadcast %239 : f32 to vector<1x16x16xf32>
    %242 = arith.mulf %241, %240 : vector<1x16x16xf32>
    %243 = arith.addf %222, %242 : vector<1x16x16xf32>
    %c20 = arith.constant 20 : index
    %244 = memref.load %arg1[%c20] : memref<98xf32, #tpu.memory_space<smem>>
    %245 = vector.extract_strided_slice %233 {offsets = [0, 2, 0], sizes = [1, 16, 16], strides = [1, 1, 1]} : vector<1x22x16xf32> to vector<1x16x16xf32>
    %246 = vector.broadcast %244 : f32 to vector<1x16x16xf32>
    %247 = arith.mulf %246, %245 : vector<1x16x16xf32>
    %248 = arith.addf %227, %247 : vector<1x16x16xf32>
    %c27 = arith.constant 27 : index
    %249 = memref.load %arg1[%c27] : memref<98xf32, #tpu.memory_space<smem>>
    %250 = vector.extract_strided_slice %233 {offsets = [0, 3, 0], sizes = [1, 16, 16], strides = [1, 1, 1]} : vector<1x22x16xf32> to vector<1x16x16xf32>
    %251 = vector.broadcast %249 : f32 to vector<1x16x16xf32>
    %252 = arith.mulf %251, %250 : vector<1x16x16xf32>
    %253 = arith.addf %232, %252 : vector<1x16x16xf32>
    %c34 = arith.constant 34 : index
    %254 = memref.load %arg1[%c34] : memref<98xf32, #tpu.memory_space<smem>>
    %255 = vector.extract_strided_slice %233 {offsets = [0, 4, 0], sizes = [1, 16, 16], strides = [1, 1, 1]} : vector<1x22x16xf32> to vector<1x16x16xf32>
    %256 = vector.broadcast %254 : f32 to vector<1x16x16xf32>
    %257 = arith.mulf %256, %255 : vector<1x16x16xf32>
    %258 = arith.addf %238, %257 : vector<1x16x16xf32>
    %c41 = arith.constant 41 : index
    %259 = memref.load %arg1[%c41] : memref<98xf32, #tpu.memory_space<smem>>
    %260 = vector.extract_strided_slice %233 {offsets = [0, 5, 0], sizes = [1, 16, 16], strides = [1, 1, 1]} : vector<1x22x16xf32> to vector<1x16x16xf32>
    %261 = vector.broadcast %259 : f32 to vector<1x16x16xf32>
    %262 = arith.mulf %261, %260 : vector<1x16x16xf32>
    %263 = arith.addf %243, %262 : vector<1x16x16xf32>
    %c48 = arith.constant 48 : index
    %264 = memref.load %arg1[%c48] : memref<98xf32, #tpu.memory_space<smem>>
    %265 = vector.extract_strided_slice %233 {offsets = [0, 6, 0], sizes = [1, 16, 16], strides = [1, 1, 1]} : vector<1x22x16xf32> to vector<1x16x16xf32>
    %266 = vector.broadcast %264 : f32 to vector<1x16x16xf32>
    %267 = arith.mulf %266, %265 : vector<1x16x16xf32>
    %268 = arith.addf %248, %267 : vector<1x16x16xf32>
    %c0_22 = arith.constant 0 : index
    %c1_23 = arith.constant 1 : index
    %c0_24 = arith.constant 0 : index
    %c0_25 = arith.constant 0 : index
    %269 = vector.load %arg4[%c0_22, %c1_23, %c0_24, %c0_25] : memref<1x2x22x22xf32, #tpu.memory_space<vmem>>, vector<1x1x22x22xf32>
    %270 = vector.shape_cast %269 : vector<1x1x22x22xf32> to vector<1x22x22xf32>
    %271 = vector.extract_strided_slice %270 {offsets = [0, 0, 0], sizes = [1, 22, 16], strides = [1, 1, 1]} : vector<1x22x22xf32> to vector<1x22x16xf32>
    %c49 = arith.constant 49 : index
    %272 = memref.load %arg1[%c49] : memref<98xf32, #tpu.memory_space<smem>>
    %273 = vector.extract_strided_slice %271 {offsets = [0, 0, 0], sizes = [1, 16, 16], strides = [1, 1, 1]} : vector<1x22x16xf32> to vector<1x16x16xf32>
    %274 = vector.broadcast %272 : f32 to vector<1x16x16xf32>
    %275 = arith.mulf %274, %273 : vector<1x16x16xf32>
    %276 = arith.addf %253, %275 : vector<1x16x16xf32>
    %c56 = arith.constant 56 : index
    %277 = memref.load %arg1[%c56] : memref<98xf32, #tpu.memory_space<smem>>
    %278 = vector.extract_strided_slice %271 {offsets = [0, 1, 0], sizes = [1, 16, 16], strides = [1, 1, 1]} : vector<1x22x16xf32> to vector<1x16x16xf32>
    %279 = vector.broadcast %277 : f32 to vector<1x16x16xf32>
    %280 = arith.mulf %279, %278 : vector<1x16x16xf32>
    %281 = arith.addf %258, %280 : vector<1x16x16xf32>
    %c63 = arith.constant 63 : index
    %282 = memref.load %arg1[%c63] : memref<98xf32, #tpu.memory_space<smem>>
    %283 = vector.extract_strided_slice %271 {offsets = [0, 2, 0], sizes = [1, 16, 16], strides = [1, 1, 1]} : vector<1x22x16xf32> to vector<1x16x16xf32>
    %284 = vector.broadcast %282 : f32 to vector<1x16x16xf32>
    %285 = arith.mulf %284, %283 : vector<1x16x16xf32>
    %286 = arith.addf %263, %285 : vector<1x16x16xf32>
    %c70 = arith.constant 70 : index
    %287 = memref.load %arg1[%c70] : memref<98xf32, #tpu.memory_space<smem>>
    %288 = vector.extract_strided_slice %271 {offsets = [0, 3, 0], sizes = [1, 16, 16], strides = [1, 1, 1]} : vector<1x22x16xf32> to vector<1x16x16xf32>
    %289 = vector.broadcast %287 : f32 to vector<1x16x16xf32>
    %290 = arith.mulf %289, %288 : vector<1x16x16xf32>
    %291 = arith.addf %268, %290 : vector<1x16x16xf32>
    %c77 = arith.constant 77 : index
    %292 = memref.load %arg1[%c77] : memref<98xf32, #tpu.memory_space<smem>>
    %293 = vector.extract_strided_slice %271 {offsets = [0, 4, 0], sizes = [1, 16, 16], strides = [1, 1, 1]} : vector<1x22x16xf32> to vector<1x16x16xf32>
    %294 = vector.broadcast %292 : f32 to vector<1x16x16xf32>
    %295 = arith.mulf %294, %293 : vector<1x16x16xf32>
    %296 = arith.addf %276, %295 : vector<1x16x16xf32>
    %c84 = arith.constant 84 : index
    %297 = memref.load %arg1[%c84] : memref<98xf32, #tpu.memory_space<smem>>
    %298 = vector.extract_strided_slice %271 {offsets = [0, 5, 0], sizes = [1, 16, 16], strides = [1, 1, 1]} : vector<1x22x16xf32> to vector<1x16x16xf32>
    %299 = vector.broadcast %297 : f32 to vector<1x16x16xf32>
    %300 = arith.mulf %299, %298 : vector<1x16x16xf32>
    %301 = arith.addf %281, %300 : vector<1x16x16xf32>
    %c91 = arith.constant 91 : index
    %302 = memref.load %arg1[%c91] : memref<98xf32, #tpu.memory_space<smem>>
    %303 = vector.extract_strided_slice %271 {offsets = [0, 6, 0], sizes = [1, 16, 16], strides = [1, 1, 1]} : vector<1x22x16xf32> to vector<1x16x16xf32>
    %304 = vector.broadcast %302 : f32 to vector<1x16x16xf32>
    %305 = arith.mulf %304, %303 : vector<1x16x16xf32>
    %306 = arith.addf %286, %305 : vector<1x16x16xf32>
    %307 = vector.extract_strided_slice %270 {offsets = [0, 0, 1], sizes = [1, 22, 16], strides = [1, 1, 1]} : vector<1x22x22xf32> to vector<1x22x16xf32>
    %c50 = arith.constant 50 : index
    %308 = memref.load %arg1[%c50] : memref<98xf32, #tpu.memory_space<smem>>
    %309 = vector.extract_strided_slice %307 {offsets = [0, 0, 0], sizes = [1, 16, 16], strides = [1, 1, 1]} : vector<1x22x16xf32> to vector<1x16x16xf32>
    %310 = vector.broadcast %308 : f32 to vector<1x16x16xf32>
    %311 = arith.mulf %310, %309 : vector<1x16x16xf32>
    %312 = arith.addf %291, %311 : vector<1x16x16xf32>
    %c57 = arith.constant 57 : index
    %313 = memref.load %arg1[%c57] : memref<98xf32, #tpu.memory_space<smem>>
    %314 = vector.extract_strided_slice %307 {offsets = [0, 1, 0], sizes = [1, 16, 16], strides = [1, 1, 1]} : vector<1x22x16xf32> to vector<1x16x16xf32>
    %315 = vector.broadcast %313 : f32 to vector<1x16x16xf32>
    %316 = arith.mulf %315, %314 : vector<1x16x16xf32>
    %317 = arith.addf %296, %316 : vector<1x16x16xf32>
    %c64 = arith.constant 64 : index
    %318 = memref.load %arg1[%c64] : memref<98xf32, #tpu.memory_space<smem>>
    %319 = vector.extract_strided_slice %307 {offsets = [0, 2, 0], sizes = [1, 16, 16], strides = [1, 1, 1]} : vector<1x22x16xf32> to vector<1x16x16xf32>
    %320 = vector.broadcast %318 : f32 to vector<1x16x16xf32>
    %321 = arith.mulf %320, %319 : vector<1x16x16xf32>
    %322 = arith.addf %301, %321 : vector<1x16x16xf32>
    %c71 = arith.constant 71 : index
    %323 = memref.load %arg1[%c71] : memref<98xf32, #tpu.memory_space<smem>>
    %324 = vector.extract_strided_slice %307 {offsets = [0, 3, 0], sizes = [1, 16, 16], strides = [1, 1, 1]} : vector<1x22x16xf32> to vector<1x16x16xf32>
    %325 = vector.broadcast %323 : f32 to vector<1x16x16xf32>
    %326 = arith.mulf %325, %324 : vector<1x16x16xf32>
    %327 = arith.addf %306, %326 : vector<1x16x16xf32>
    %c78 = arith.constant 78 : index
    %328 = memref.load %arg1[%c78] : memref<98xf32, #tpu.memory_space<smem>>
    %329 = vector.extract_strided_slice %307 {offsets = [0, 4, 0], sizes = [1, 16, 16], strides = [1, 1, 1]} : vector<1x22x16xf32> to vector<1x16x16xf32>
    %330 = vector.broadcast %328 : f32 to vector<1x16x16xf32>
    %331 = arith.mulf %330, %329 : vector<1x16x16xf32>
    %332 = arith.addf %312, %331 : vector<1x16x16xf32>
    %c85 = arith.constant 85 : index
    %333 = memref.load %arg1[%c85] : memref<98xf32, #tpu.memory_space<smem>>
    %334 = vector.extract_strided_slice %307 {offsets = [0, 5, 0], sizes = [1, 16, 16], strides = [1, 1, 1]} : vector<1x22x16xf32> to vector<1x16x16xf32>
    %335 = vector.broadcast %333 : f32 to vector<1x16x16xf32>
    %336 = arith.mulf %335, %334 : vector<1x16x16xf32>
    %337 = arith.addf %317, %336 : vector<1x16x16xf32>
    %c92 = arith.constant 92 : index
    %338 = memref.load %arg1[%c92] : memref<98xf32, #tpu.memory_space<smem>>
    %339 = vector.extract_strided_slice %307 {offsets = [0, 6, 0], sizes = [1, 16, 16], strides = [1, 1, 1]} : vector<1x22x16xf32> to vector<1x16x16xf32>
    %340 = vector.broadcast %338 : f32 to vector<1x16x16xf32>
    %341 = arith.mulf %340, %339 : vector<1x16x16xf32>
    %342 = arith.addf %322, %341 : vector<1x16x16xf32>
    %343 = vector.extract_strided_slice %270 {offsets = [0, 0, 2], sizes = [1, 22, 16], strides = [1, 1, 1]} : vector<1x22x22xf32> to vector<1x22x16xf32>
    %c51 = arith.constant 51 : index
    %344 = memref.load %arg1[%c51] : memref<98xf32, #tpu.memory_space<smem>>
    %345 = vector.extract_strided_slice %343 {offsets = [0, 0, 0], sizes = [1, 16, 16], strides = [1, 1, 1]} : vector<1x22x16xf32> to vector<1x16x16xf32>
    %346 = vector.broadcast %344 : f32 to vector<1x16x16xf32>
    %347 = arith.mulf %346, %345 : vector<1x16x16xf32>
    %348 = arith.addf %327, %347 : vector<1x16x16xf32>
    %c58 = arith.constant 58 : index
    %349 = memref.load %arg1[%c58] : memref<98xf32, #tpu.memory_space<smem>>
    %350 = vector.extract_strided_slice %343 {offsets = [0, 1, 0], sizes = [1, 16, 16], strides = [1, 1, 1]} : vector<1x22x16xf32> to vector<1x16x16xf32>
    %351 = vector.broadcast %349 : f32 to vector<1x16x16xf32>
    %352 = arith.mulf %351, %350 : vector<1x16x16xf32>
    %353 = arith.addf %332, %352 : vector<1x16x16xf32>
    %c65 = arith.constant 65 : index
    %354 = memref.load %arg1[%c65] : memref<98xf32, #tpu.memory_space<smem>>
    %355 = vector.extract_strided_slice %343 {offsets = [0, 2, 0], sizes = [1, 16, 16], strides = [1, 1, 1]} : vector<1x22x16xf32> to vector<1x16x16xf32>
    %356 = vector.broadcast %354 : f32 to vector<1x16x16xf32>
    %357 = arith.mulf %356, %355 : vector<1x16x16xf32>
    %358 = arith.addf %337, %357 : vector<1x16x16xf32>
    %c72 = arith.constant 72 : index
    %359 = memref.load %arg1[%c72] : memref<98xf32, #tpu.memory_space<smem>>
    %360 = vector.extract_strided_slice %343 {offsets = [0, 3, 0], sizes = [1, 16, 16], strides = [1, 1, 1]} : vector<1x22x16xf32> to vector<1x16x16xf32>
    %361 = vector.broadcast %359 : f32 to vector<1x16x16xf32>
    %362 = arith.mulf %361, %360 : vector<1x16x16xf32>
    %363 = arith.addf %342, %362 : vector<1x16x16xf32>
    %c79 = arith.constant 79 : index
    %364 = memref.load %arg1[%c79] : memref<98xf32, #tpu.memory_space<smem>>
    %365 = vector.extract_strided_slice %343 {offsets = [0, 4, 0], sizes = [1, 16, 16], strides = [1, 1, 1]} : vector<1x22x16xf32> to vector<1x16x16xf32>
    %366 = vector.broadcast %364 : f32 to vector<1x16x16xf32>
    %367 = arith.mulf %366, %365 : vector<1x16x16xf32>
    %368 = arith.addf %348, %367 : vector<1x16x16xf32>
    %c86 = arith.constant 86 : index
    %369 = memref.load %arg1[%c86] : memref<98xf32, #tpu.memory_space<smem>>
    %370 = vector.extract_strided_slice %343 {offsets = [0, 5, 0], sizes = [1, 16, 16], strides = [1, 1, 1]} : vector<1x22x16xf32> to vector<1x16x16xf32>
    %371 = vector.broadcast %369 : f32 to vector<1x16x16xf32>
    %372 = arith.mulf %371, %370 : vector<1x16x16xf32>
    %373 = arith.addf %353, %372 : vector<1x16x16xf32>
    %c93 = arith.constant 93 : index
    %374 = memref.load %arg1[%c93] : memref<98xf32, #tpu.memory_space<smem>>
    %375 = vector.extract_strided_slice %343 {offsets = [0, 6, 0], sizes = [1, 16, 16], strides = [1, 1, 1]} : vector<1x22x16xf32> to vector<1x16x16xf32>
    %376 = vector.broadcast %374 : f32 to vector<1x16x16xf32>
    %377 = arith.mulf %376, %375 : vector<1x16x16xf32>
    %378 = arith.addf %358, %377 : vector<1x16x16xf32>
    %379 = vector.extract_strided_slice %270 {offsets = [0, 0, 3], sizes = [1, 22, 16], strides = [1, 1, 1]} : vector<1x22x22xf32> to vector<1x22x16xf32>
    %c52 = arith.constant 52 : index
    %380 = memref.load %arg1[%c52] : memref<98xf32, #tpu.memory_space<smem>>
    %381 = vector.extract_strided_slice %379 {offsets = [0, 0, 0], sizes = [1, 16, 16], strides = [1, 1, 1]} : vector<1x22x16xf32> to vector<1x16x16xf32>
    %382 = vector.broadcast %380 : f32 to vector<1x16x16xf32>
    %383 = arith.mulf %382, %381 : vector<1x16x16xf32>
    %384 = arith.addf %363, %383 : vector<1x16x16xf32>
    %c59 = arith.constant 59 : index
    %385 = memref.load %arg1[%c59] : memref<98xf32, #tpu.memory_space<smem>>
    %386 = vector.extract_strided_slice %379 {offsets = [0, 1, 0], sizes = [1, 16, 16], strides = [1, 1, 1]} : vector<1x22x16xf32> to vector<1x16x16xf32>
    %387 = vector.broadcast %385 : f32 to vector<1x16x16xf32>
    %388 = arith.mulf %387, %386 : vector<1x16x16xf32>
    %389 = arith.addf %368, %388 : vector<1x16x16xf32>
    %c66 = arith.constant 66 : index
    %390 = memref.load %arg1[%c66] : memref<98xf32, #tpu.memory_space<smem>>
    %391 = vector.extract_strided_slice %379 {offsets = [0, 2, 0], sizes = [1, 16, 16], strides = [1, 1, 1]} : vector<1x22x16xf32> to vector<1x16x16xf32>
    %392 = vector.broadcast %390 : f32 to vector<1x16x16xf32>
    %393 = arith.mulf %392, %391 : vector<1x16x16xf32>
    %394 = arith.addf %373, %393 : vector<1x16x16xf32>
    %c73 = arith.constant 73 : index
    %395 = memref.load %arg1[%c73] : memref<98xf32, #tpu.memory_space<smem>>
    %396 = vector.extract_strided_slice %379 {offsets = [0, 3, 0], sizes = [1, 16, 16], strides = [1, 1, 1]} : vector<1x22x16xf32> to vector<1x16x16xf32>
    %397 = vector.broadcast %395 : f32 to vector<1x16x16xf32>
    %398 = arith.mulf %397, %396 : vector<1x16x16xf32>
    %399 = arith.addf %378, %398 : vector<1x16x16xf32>
    %c80 = arith.constant 80 : index
    %400 = memref.load %arg1[%c80] : memref<98xf32, #tpu.memory_space<smem>>
    %401 = vector.extract_strided_slice %379 {offsets = [0, 4, 0], sizes = [1, 16, 16], strides = [1, 1, 1]} : vector<1x22x16xf32> to vector<1x16x16xf32>
    %402 = vector.broadcast %400 : f32 to vector<1x16x16xf32>
    %403 = arith.mulf %402, %401 : vector<1x16x16xf32>
    %404 = arith.addf %384, %403 : vector<1x16x16xf32>
    %c87 = arith.constant 87 : index
    %405 = memref.load %arg1[%c87] : memref<98xf32, #tpu.memory_space<smem>>
    %406 = vector.extract_strided_slice %379 {offsets = [0, 5, 0], sizes = [1, 16, 16], strides = [1, 1, 1]} : vector<1x22x16xf32> to vector<1x16x16xf32>
    %407 = vector.broadcast %405 : f32 to vector<1x16x16xf32>
    %408 = arith.mulf %407, %406 : vector<1x16x16xf32>
    %409 = arith.addf %389, %408 : vector<1x16x16xf32>
    %c94 = arith.constant 94 : index
    %410 = memref.load %arg1[%c94] : memref<98xf32, #tpu.memory_space<smem>>
    %411 = vector.extract_strided_slice %379 {offsets = [0, 6, 0], sizes = [1, 16, 16], strides = [1, 1, 1]} : vector<1x22x16xf32> to vector<1x16x16xf32>
    %412 = vector.broadcast %410 : f32 to vector<1x16x16xf32>
    %413 = arith.mulf %412, %411 : vector<1x16x16xf32>
    %414 = arith.addf %394, %413 : vector<1x16x16xf32>
    %415 = vector.extract_strided_slice %270 {offsets = [0, 0, 4], sizes = [1, 22, 16], strides = [1, 1, 1]} : vector<1x22x22xf32> to vector<1x22x16xf32>
    %c53 = arith.constant 53 : index
    %416 = memref.load %arg1[%c53] : memref<98xf32, #tpu.memory_space<smem>>
    %417 = vector.extract_strided_slice %415 {offsets = [0, 0, 0], sizes = [1, 16, 16], strides = [1, 1, 1]} : vector<1x22x16xf32> to vector<1x16x16xf32>
    %418 = vector.broadcast %416 : f32 to vector<1x16x16xf32>
    %419 = arith.mulf %418, %417 : vector<1x16x16xf32>
    %420 = arith.addf %399, %419 : vector<1x16x16xf32>
    %c60 = arith.constant 60 : index
    %421 = memref.load %arg1[%c60] : memref<98xf32, #tpu.memory_space<smem>>
    %422 = vector.extract_strided_slice %415 {offsets = [0, 1, 0], sizes = [1, 16, 16], strides = [1, 1, 1]} : vector<1x22x16xf32> to vector<1x16x16xf32>
    %423 = vector.broadcast %421 : f32 to vector<1x16x16xf32>
    %424 = arith.mulf %423, %422 : vector<1x16x16xf32>
    %425 = arith.addf %404, %424 : vector<1x16x16xf32>
    %c67 = arith.constant 67 : index
    %426 = memref.load %arg1[%c67] : memref<98xf32, #tpu.memory_space<smem>>
    %427 = vector.extract_strided_slice %415 {offsets = [0, 2, 0], sizes = [1, 16, 16], strides = [1, 1, 1]} : vector<1x22x16xf32> to vector<1x16x16xf32>
    %428 = vector.broadcast %426 : f32 to vector<1x16x16xf32>
    %429 = arith.mulf %428, %427 : vector<1x16x16xf32>
    %430 = arith.addf %409, %429 : vector<1x16x16xf32>
    %c74 = arith.constant 74 : index
    %431 = memref.load %arg1[%c74] : memref<98xf32, #tpu.memory_space<smem>>
    %432 = vector.extract_strided_slice %415 {offsets = [0, 3, 0], sizes = [1, 16, 16], strides = [1, 1, 1]} : vector<1x22x16xf32> to vector<1x16x16xf32>
    %433 = vector.broadcast %431 : f32 to vector<1x16x16xf32>
    %434 = arith.mulf %433, %432 : vector<1x16x16xf32>
    %435 = arith.addf %414, %434 : vector<1x16x16xf32>
    %c81 = arith.constant 81 : index
    %436 = memref.load %arg1[%c81] : memref<98xf32, #tpu.memory_space<smem>>
    %437 = vector.extract_strided_slice %415 {offsets = [0, 4, 0], sizes = [1, 16, 16], strides = [1, 1, 1]} : vector<1x22x16xf32> to vector<1x16x16xf32>
    %438 = vector.broadcast %436 : f32 to vector<1x16x16xf32>
    %439 = arith.mulf %438, %437 : vector<1x16x16xf32>
    %440 = arith.addf %420, %439 : vector<1x16x16xf32>
    %c88 = arith.constant 88 : index
    %441 = memref.load %arg1[%c88] : memref<98xf32, #tpu.memory_space<smem>>
    %442 = vector.extract_strided_slice %415 {offsets = [0, 5, 0], sizes = [1, 16, 16], strides = [1, 1, 1]} : vector<1x22x16xf32> to vector<1x16x16xf32>
    %443 = vector.broadcast %441 : f32 to vector<1x16x16xf32>
    %444 = arith.mulf %443, %442 : vector<1x16x16xf32>
    %445 = arith.addf %425, %444 : vector<1x16x16xf32>
    %c95 = arith.constant 95 : index
    %446 = memref.load %arg1[%c95] : memref<98xf32, #tpu.memory_space<smem>>
    %447 = vector.extract_strided_slice %415 {offsets = [0, 6, 0], sizes = [1, 16, 16], strides = [1, 1, 1]} : vector<1x22x16xf32> to vector<1x16x16xf32>
    %448 = vector.broadcast %446 : f32 to vector<1x16x16xf32>
    %449 = arith.mulf %448, %447 : vector<1x16x16xf32>
    %450 = arith.addf %430, %449 : vector<1x16x16xf32>
    %451 = vector.extract_strided_slice %270 {offsets = [0, 0, 5], sizes = [1, 22, 16], strides = [1, 1, 1]} : vector<1x22x22xf32> to vector<1x22x16xf32>
    %c54 = arith.constant 54 : index
    %452 = memref.load %arg1[%c54] : memref<98xf32, #tpu.memory_space<smem>>
    %453 = vector.extract_strided_slice %451 {offsets = [0, 0, 0], sizes = [1, 16, 16], strides = [1, 1, 1]} : vector<1x22x16xf32> to vector<1x16x16xf32>
    %454 = vector.broadcast %452 : f32 to vector<1x16x16xf32>
    %455 = arith.mulf %454, %453 : vector<1x16x16xf32>
    %456 = arith.addf %435, %455 : vector<1x16x16xf32>
    %c61 = arith.constant 61 : index
    %457 = memref.load %arg1[%c61] : memref<98xf32, #tpu.memory_space<smem>>
    %458 = vector.extract_strided_slice %451 {offsets = [0, 1, 0], sizes = [1, 16, 16], strides = [1, 1, 1]} : vector<1x22x16xf32> to vector<1x16x16xf32>
    %459 = vector.broadcast %457 : f32 to vector<1x16x16xf32>
    %460 = arith.mulf %459, %458 : vector<1x16x16xf32>
    %461 = arith.addf %440, %460 : vector<1x16x16xf32>
    %c68 = arith.constant 68 : index
    %462 = memref.load %arg1[%c68] : memref<98xf32, #tpu.memory_space<smem>>
    %463 = vector.extract_strided_slice %451 {offsets = [0, 2, 0], sizes = [1, 16, 16], strides = [1, 1, 1]} : vector<1x22x16xf32> to vector<1x16x16xf32>
    %464 = vector.broadcast %462 : f32 to vector<1x16x16xf32>
    %465 = arith.mulf %464, %463 : vector<1x16x16xf32>
    %466 = arith.addf %445, %465 : vector<1x16x16xf32>
    %c75 = arith.constant 75 : index
    %467 = memref.load %arg1[%c75] : memref<98xf32, #tpu.memory_space<smem>>
    %468 = vector.extract_strided_slice %451 {offsets = [0, 3, 0], sizes = [1, 16, 16], strides = [1, 1, 1]} : vector<1x22x16xf32> to vector<1x16x16xf32>
    %469 = vector.broadcast %467 : f32 to vector<1x16x16xf32>
    %470 = arith.mulf %469, %468 : vector<1x16x16xf32>
    %471 = arith.addf %450, %470 : vector<1x16x16xf32>
    %c82 = arith.constant 82 : index
    %472 = memref.load %arg1[%c82] : memref<98xf32, #tpu.memory_space<smem>>
    %473 = vector.extract_strided_slice %451 {offsets = [0, 4, 0], sizes = [1, 16, 16], strides = [1, 1, 1]} : vector<1x22x16xf32> to vector<1x16x16xf32>
    %474 = vector.broadcast %472 : f32 to vector<1x16x16xf32>
    %475 = arith.mulf %474, %473 : vector<1x16x16xf32>
    %476 = arith.addf %456, %475 : vector<1x16x16xf32>
    %c89 = arith.constant 89 : index
    %477 = memref.load %arg1[%c89] : memref<98xf32, #tpu.memory_space<smem>>
    %478 = vector.extract_strided_slice %451 {offsets = [0, 5, 0], sizes = [1, 16, 16], strides = [1, 1, 1]} : vector<1x22x16xf32> to vector<1x16x16xf32>
    %479 = vector.broadcast %477 : f32 to vector<1x16x16xf32>
    %480 = arith.mulf %479, %478 : vector<1x16x16xf32>
    %481 = arith.addf %461, %480 : vector<1x16x16xf32>
    %c96 = arith.constant 96 : index
    %482 = memref.load %arg1[%c96] : memref<98xf32, #tpu.memory_space<smem>>
    %483 = vector.extract_strided_slice %451 {offsets = [0, 6, 0], sizes = [1, 16, 16], strides = [1, 1, 1]} : vector<1x22x16xf32> to vector<1x16x16xf32>
    %484 = vector.broadcast %482 : f32 to vector<1x16x16xf32>
    %485 = arith.mulf %484, %483 : vector<1x16x16xf32>
    %486 = arith.addf %466, %485 : vector<1x16x16xf32>
    %487 = vector.extract_strided_slice %270 {offsets = [0, 0, 6], sizes = [1, 22, 16], strides = [1, 1, 1]} : vector<1x22x22xf32> to vector<1x22x16xf32>
    %c55 = arith.constant 55 : index
    %488 = memref.load %arg1[%c55] : memref<98xf32, #tpu.memory_space<smem>>
    %489 = vector.extract_strided_slice %487 {offsets = [0, 0, 0], sizes = [1, 16, 16], strides = [1, 1, 1]} : vector<1x22x16xf32> to vector<1x16x16xf32>
    %490 = vector.broadcast %488 : f32 to vector<1x16x16xf32>
    %491 = arith.mulf %490, %489 : vector<1x16x16xf32>
    %492 = arith.addf %471, %491 : vector<1x16x16xf32>
    %c62 = arith.constant 62 : index
    %493 = memref.load %arg1[%c62] : memref<98xf32, #tpu.memory_space<smem>>
    %494 = vector.extract_strided_slice %487 {offsets = [0, 1, 0], sizes = [1, 16, 16], strides = [1, 1, 1]} : vector<1x22x16xf32> to vector<1x16x16xf32>
    %495 = vector.broadcast %493 : f32 to vector<1x16x16xf32>
    %496 = arith.mulf %495, %494 : vector<1x16x16xf32>
    %497 = arith.addf %476, %496 : vector<1x16x16xf32>
    %c69 = arith.constant 69 : index
    %498 = memref.load %arg1[%c69] : memref<98xf32, #tpu.memory_space<smem>>
    %499 = vector.extract_strided_slice %487 {offsets = [0, 2, 0], sizes = [1, 16, 16], strides = [1, 1, 1]} : vector<1x22x16xf32> to vector<1x16x16xf32>
    %500 = vector.broadcast %498 : f32 to vector<1x16x16xf32>
    %501 = arith.mulf %500, %499 : vector<1x16x16xf32>
    %502 = arith.addf %481, %501 : vector<1x16x16xf32>
    %c76 = arith.constant 76 : index
    %503 = memref.load %arg1[%c76] : memref<98xf32, #tpu.memory_space<smem>>
    %504 = vector.extract_strided_slice %487 {offsets = [0, 3, 0], sizes = [1, 16, 16], strides = [1, 1, 1]} : vector<1x22x16xf32> to vector<1x16x16xf32>
    %505 = vector.broadcast %503 : f32 to vector<1x16x16xf32>
    %506 = arith.mulf %505, %504 : vector<1x16x16xf32>
    %507 = arith.addf %486, %506 : vector<1x16x16xf32>
    %c83 = arith.constant 83 : index
    %508 = memref.load %arg1[%c83] : memref<98xf32, #tpu.memory_space<smem>>
    %509 = vector.extract_strided_slice %487 {offsets = [0, 4, 0], sizes = [1, 16, 16], strides = [1, 1, 1]} : vector<1x22x16xf32> to vector<1x16x16xf32>
    %510 = vector.broadcast %508 : f32 to vector<1x16x16xf32>
    %511 = arith.mulf %510, %509 : vector<1x16x16xf32>
    %512 = arith.addf %492, %511 : vector<1x16x16xf32>
    %c90 = arith.constant 90 : index
    %513 = memref.load %arg1[%c90] : memref<98xf32, #tpu.memory_space<smem>>
    %514 = vector.extract_strided_slice %487 {offsets = [0, 5, 0], sizes = [1, 16, 16], strides = [1, 1, 1]} : vector<1x22x16xf32> to vector<1x16x16xf32>
    %515 = vector.broadcast %513 : f32 to vector<1x16x16xf32>
    %516 = arith.mulf %515, %514 : vector<1x16x16xf32>
    %517 = arith.addf %497, %516 : vector<1x16x16xf32>
    %c97 = arith.constant 97 : index
    %518 = memref.load %arg1[%c97] : memref<98xf32, #tpu.memory_space<smem>>
    %519 = vector.extract_strided_slice %487 {offsets = [0, 6, 0], sizes = [1, 16, 16], strides = [1, 1, 1]} : vector<1x22x16xf32> to vector<1x16x16xf32>
    %520 = vector.broadcast %518 : f32 to vector<1x16x16xf32>
    %521 = arith.mulf %520, %519 : vector<1x16x16xf32>
    %522 = arith.addf %502, %521 : vector<1x16x16xf32>
    %523 = arith.addf %517, %522 : vector<1x16x16xf32>
    %524 = arith.addf %507, %512 : vector<1x16x16xf32>
    %525 = arith.addf %523, %524 : vector<1x16x16xf32>
    %cst_26 = arith.constant 0.000000e+00 : f32
    %526 = vector.broadcast %cst_26 : f32 to vector<1x16x16xf32>
    %527 = arith.subf %526, %525 : vector<1x16x16xf32>
    %528 = math.exp %527 : vector<1x16x16xf32>
    %cst_27 = arith.constant 1.000000e+00 : f32
    %529 = vector.broadcast %cst_27 : f32 to vector<1x16x16xf32>
    %530 = arith.addf %529, %528 : vector<1x16x16xf32>
    %531 = tpu.reciprocal %530 {approx = true} : vector<1x16x16xf32> -> vector<1x16x16xf32>
    %532 = vector.shape_cast %531 : vector<1x16x16xf32> to vector<1x1x256xf32>
    %c0_28 = arith.constant 0 : index
    %c0_29 = arith.constant 0 : index
    %c0_30 = arith.constant 0 : index
    %533 = vector.load %arg2[%c0_28, %c0_29, %c0_30] : memref<1x4x256xf32, #tpu.memory_space<vmem>>, vector<1x4x256xf32>
    %534 = vector.broadcast %532 : vector<1x1x256xf32> to vector<1x4x256xf32>
    %535 = arith.mulf %533, %534 : vector<1x4x256xf32>
    %c0_31 = arith.constant 0 : index
    %c0_32 = arith.constant 0 : index
    %c0_33 = arith.constant 0 : index
    %536 = vector.load %arg3[%c0_31, %c0_32, %c0_33] : memref<1x4x256xf32, #tpu.memory_space<vmem>>, vector<1x4x256xf32>
    tpu.vector_store %arg3[%c0_31, %c0_32, %c0_33], %535 {strides = array<i32>} : memref<1x4x256xf32, #tpu.memory_space<vmem>>, vector<1x4x256xf32>,
    return
  }
  func.func @transform_0(%arg0: i32) -> i32 {
    %c0_i32 = arith.constant 0 : i32
    %c0_i32_0 = arith.constant 0 : i32
    return %c0_i32 : i32
  }
  func.func @transform_1(%arg0: i32) -> (i32, i32, i32) {
    %c0_i32 = arith.constant 0 : i32
    %c0_i32_0 = arith.constant 0 : i32
    %c0_i32_1 = arith.constant 0 : i32
    return %arg0, %c0_i32, %c0_i32_0 : i32, i32, i32
  }
  func.func @transform_2(%arg0: i32) -> (i32, i32, i32) {
    %c0_i32 = arith.constant 0 : i32
    %c0_i32_0 = arith.constant 0 : i32
    %c0_i32_1 = arith.constant 0 : i32
    return %arg0, %c0_i32, %c0_i32_0 : i32, i32, i32
  }
}

</mosaic_0001>

<bundles_post_ra>
// kernel: tpu_custom_call.1
= control target key start
LH: loop header
LB: loop body
LE: loop exit
PB: predicated region body
PF: predicated region fallthrough
CT: control target
= control target key end

     0   :  { %7 = vsyncpa [#allocation6], 0  ;;  %s5795_s0 = inlined_call_operand.hbm [shape: f32[98], index: 0, kind: input, shape index: {}]   ;;  %s5796_s1 = inlined_call_operand.hbm [shape: f32[2,4,256], index: 1, kind: input, shape index: {}]   ;;  %s5797_s2 = inlined_call_operand.hbm [shape: f32[2,4,256], index: 2, kind: output, shape index: {}]  }
   0x1   :  { %8 = vsyncpa [#allocation4], 0 }
   0x2   :  { %10 = vsyncpa [#allocation4 + $0x1], 0 }
   0x3   :  { %11 = vsyncpa [#allocation5], 0 }
   0x4   :  { %13 = vsyncpa [#allocation5 + $0x1], 0  ;;  %s3345_s9 = smov 0   ;;  %s3347_s10 = smov 0  }
   0x5   :  { %s3349_s11 = smov 0   ;;  %s3351_s12 = smov 0  }
   0x6 LB: > { %s3366_s13 = sadd.s32 4294967295, %s3308_s12   ;;  %s2991_s14 = sadd.s32 4294967294, %s3308_s12   ;;  %s3308_s12 = sphi %s3351_s12, %s6227_s12   ;;  %s3304_s11 = sphi %s3349_s11, %s6226_s11   ;;  %s3300_s10 = sphi %s3347_s10, %s6225_s10   ;;  %s3296_s9 = sphi %s3345_s9, %s6224_s9  }
   0x7   : > { %p60_p0 = scmp.ne.s32.totalorder %s3300_s10, %s3296_s9  ;;  %p5798_p1 = scmp.eq.s32.totalorder %s3366_s13, 0 }
   0x8   : > { %p90_p3 = scmp.eq.s32.totalorder %s2991_s14, 1  ;;  %p2992_p5 = scmp.ge.s32.totalorder %s3308_s12, 1 }
   0x9   : > { %p3375_p4 = por %p5798_p1, %p60_p0  ;;  %p97_p7 = scmp.lt.s32.totalorder %s3308_s12, 3 }
   0xa   : > { %p3380_p6 = por %p90_p3, %p60_p0  ;;  %s3391_s18 = sadd.s32 1, %s3308_s12  }
   0xb   : > { %s5864_s15 = scalar_select %p3375_p4, 1, 0 }
   0xc   : > { %s5865_s16 = scalar_select %p3380_p6, 1, 0 }
   0xd   : > { %p3385_p8 = pnand %p2992_p5, %p97_p7  ;;  %s44_s19 = ssub.s32 %s3308_s12, %s3391_s18 }
   0xe   : > { %s47_s20 = sadd.s32 1, %s3304_s11  ;;  %p3404_p12 = scmp.eq.s32.totalorder %s44_s19, 0 }
   0xf   : > { %p3114_p10 = pneg %p3385_p8  ;;  %p54_p13 = scmp.ne.s32.totalorder %s3304_s11, %s3300_s10 }
  0x10   : > { %p55_p0 = scmp.eq.s32.totalorder %s3308_s12, 0  ;;  %p3127_p3 = scmp.lt.s32.totalorder %s3308_s12, 2 }
  0x11   : > { %p3400_p11 = pnand %p3114_p10, %p5798_p1  ;;  %s3195_s25 = scalar_lea.hbm %s5795_s0, 16 }
  0x12   : > { %p3196_p5 = scmp.ne.s32.totalorder %s5795_s0, %s3195_s25  ;;  %p3202_p1 = scmp.lt.u32.totalorder %s3195_s25, %s5795_s0 }
  0x13   : > { %p3197_p7 = pneg %p3400_p11 }
  0x15   : > { %p3198_p10 = pnand %p3197_p7, %p3196_p5 }
  0x17   : > { %p3199_p9 = pneg %p3198_p10 }
  0x19   : > { %p3204_p2 = pnand %p3202_p1, %p3199_p9 }
  0x1b   : > { %3207 = shalt.err (!%p3204_p2)
}
  0x1c   : > { %s3310_s30 = smov [#allocation3]   ;;  %p56_p1 = por %p55_p0, %p54_p13 }
  0x1d   : > { %3117 = dma.hbm_to_smem (!%p3400_p11), %s5795_s0, 16, %s3310_s30, [#allocation6]  }
  0x1e   : > { %s3431_s5 = scalar_select %p3404_p12, %s3304_s11, %s47_s20  }
  0x1f   : > { %p5869_p2 = scmp.eq.s32.totalorder %s3366_s13, 1  ;;  %s119_s7 = sand.u32 1, %s3304_s11  }
  0x20   : > { %s3104_s8 = sshll.u32 %s3308_s12, 7  ;;  %s2995_s14 = sshll.u32 %s119_s7, 3 }
  0x21   : > { %p3443_p9 = por %p5869_p2, %p54_p13  ;;  %s3452_s23 = scalar_lea.hbm %s5796_s1, %s3104_s8 }
  0x22   : > { %s123_s20 = scalar_lea.vmem [#allocation7], %s2995_s14  ;;  %p3456_p11 = pnand %p3127_p3, %p56_p1 }
  0x23   : > { %s5870_s6 = scalar_select %p3443_p9, 1, 0 }
  0x24   : > { %s131_s22 = sshll.u32 %s123_s20, 4  ;;  %s120_s25 = scalar_lea.sflag [#allocation4], %s119_s7  ;;  %s3460_s22 = int_to_ptr.vmem [resolvable:$true] %s131_s22 }
  0x25   : > { %s3208_s26 = scalar_lea.hbm %s3452_s23, 128  ;;  %p3210_p13 = pneg %p3456_p11 }
  0x26   : > { %p3209_p12 = scmp.ne.s32.totalorder %s3452_s23, %s3208_s26  ;;  %s3213_s29 = scalar_lea.hbm %s5796_s1, 256 }
  0x27   : > { %p3214_p3 = scmp.lt.u32.totalorder %s3452_s23, %s5796_s1  ;;  %p3215_p7 = scmp.lt.u32.totalorder %s3213_s29, %s3208_s26 }
  0x28   : > { %p3211_p0 = pnand %p3210_p13, %p3209_p12  ;;  %p3217_p1 = scmp.lt.u32.totalorder %s3208_s26, %s3452_s23 }
  0x29   : > { %p3216_p10 = por %p3215_p7, %p3214_p3 }
  0x2a   : > { %p3212_p5 = pneg %p3211_p0 }
  0x2b   : > { %p3218_p2 = por %p3217_p1, %p3216_p10 }
  0x2d   : > { %p3219_p6 = pnand %p3218_p2, %p3212_p5 }
  0x2f   : > { %3222 = shalt.err (!%p3219_p6)
}
  0x30   : > { %s3223_s4 = scalar_lea.vmem %s3460_s22, 128  ;;  %s3311_s7 = smov [#allocation7]  }
  0x31   : > { %p3224_p12 = scmp.ne.s32.totalorder %s3460_s22, %s3223_s4  ;;  %s3228_s8 = sshll.u32 %s3311_s7, 4  ;;  %s3229_s8 = int_to_ptr.vmem [resolvable:$false] %s3228_s8 }
  0x32   : > { %s3230_s14 = scalar_lea.vmem %s3229_s8, 256  ;;  %p3231_p4 = scmp.lt.s32.totalorder %s3460_s22, %s3229_s8 }
  0x33   : > { %p3226_p0 = pnand %p3224_p12, %p3210_p13  ;;  %p3232_p3 = scmp.lt.s32.totalorder %s3230_s14, %s3223_s4 }
  0x35   : > { %p3227_p9 = pneg %p3226_p0  ;;  %p3233_p7 = por %p3232_p3, %p3231_p4 }
  0x37   : > { %p3234_p10 = pnand %p3233_p7, %p3227_p9 }
  0x39   : > { %3237 = shalt.err (!%p3234_p10)
}
  0x3a   : > { %3121 = dma.hbm_to_vmem [thread:$0]  (!%p3456_p11), %s3452_s23, 128, %s3460_s22, %s120_s25  }
  0x3b   : > { %140 = sbr.rel (%p3385_p8) target bundleno = 1124 (0x464), region = 28 }
  0x42   : > { %p5872_p6 = scmp.eq.s32.totalorder %s3366_s13, 0 }
  0x44   : > { %3283 = dma.done.wait (%p5872_p6), [#allocation6], 16   ;;  %p5873_p13 = pmov %p5872_p6 }
  0x45   : > { %s3494_s19 = sand.u32 1, %s3300_s10   ;;  %p5874_p4 = scmp.ne.s32.totalorder %s5864_s15, 0 }
  0x46   : > { %3285 = vsyncadd (%p5873_p13), [#allocation6], 4294967280  ;;  %s5801_s21 = sshll.u32 %s3494_s19, 3  ;;  %s147_s20 = scalar_lea.sflag [#allocation4], %s3494_s19 }
  0x47   : > { %s3500_s23 = scalar_lea.vmem [#allocation7], %s5801_s21 }
  0x48   : > { %3287 = dma.done.wait (%p5874_p4), %s147_s20, 128  }
  0x49   : > { %3289 = vsyncadd (%p5874_p4), %s147_s20, 4294967168 }
  0x4a   : > { %155 = sfence }
  0x4b   : > { %v180_v0 = vld [vmem:[%s3500_s23] sm:$0xff]  ;;  %vm184_vm0 = vcmask 1043456   ;;  %s5806_s15 = smov 80   ;;  %s5802_s17 = smov 112   ;;  %v3319_v34 = vmov 1983009808   ;;  %v264_v36 = vlaneseq }
  0x4c   : > { %v185_v1 = vsel %vm184_vm0, %v180_v0, -inf  ;;  %v182_v2 = vcombine.high %v180_v0, %v180_v0  ;;  %v199_v12 = vsel %vm184_vm0, %v180_v0, 0.0  ;;  %s5808_s22 = smov 64   ;;  %s5804_s24 = smov 96   ;;  %v262_v35 = vunpack.c.l.s4 %v3319_v34 }
  0x4d   : > { %v186_v3 = vrot.slane %v185_v1, 4  ;;  %v200_v15 = vrot.slane %v199_v12, 4  ;;  %s3316_s25 = smov 32   ;;  %s5810_s26 = smov 48   ;;  %v3575_v40 = vshrl.u32 %v264_v36, 7  ;;  %vm172_vm1 = vcmask 179200  }
  0x4e   : > { %v192_v4 = vsel %vm184_vm0, %v182_v2, -inf  ;;  %v206_v20 = vsel %vm184_vm0, %v182_v2, 0.0  ;;  %s3318_s27 = smov 16   ;;  %v263_v39 = vunpack.c.0.s8 %v262_v35  ;;  %v3320_v42 = vmov 1934713408   ;;  %s3322_s28 = smov 3  }
  0x4f   : > { %v187_v5 = vmax.f32 %v185_v1, %v186_v3  ;;  %v193_v6 = vrot.slane %v192_v4, 4  ;;  %v201_v17 = vadd.f32 %v200_v15, %v199_v12  ;;  %v207_v22 = vrot.slane %v206_v20, 4  ;;  %5875 = vst [vmem:[#allocation12_spill] sm:$0xff] %v3575_v40  ;;  %s3031_s29 = sld [smem:[#allocation3 + $0x12]]  ;;  %s3621_s30 = sld [smem:[#allocation3 + $0x4]] }
  0x50   : > { %v294_v43 = vunpack.c.l.s4 %v3320_v42  ;;  %v3579_v46 = vsub.s32 %v263_v39, %v3575_v40  ;;  %v5812_v48 = vmov 0.0   ;;  %vm175_vm2 = vcmask 177152   ;;  %s3623_s3 = sld [smem:[#allocation3 + $0x2]]  ;;  %s3030_s4 = sld [smem:[#allocation3 + $0xb]] }
  0x51   : > { %v188_v7 = vrot.slane %v187_v5, 2  ;;  %v194_v8 = vmax.f32 %v192_v4, %v193_v6  ;;  %v202_v19 = vrot.slane %v201_v17, 2  ;;  %v208_v24 = vadd.f32 %v207_v22, %v206_v20  ;;  %173 = vst.msk [vmem:[#allocation2] sm:$0xff] %vm172_vm1, %v5812_v48  ;;  %174 = vst.msk [vmem:[#allocation2 + $0x8] sm:$0xff] %vm172_vm1, %v5812_v48  ;;  %s3023_s7 = sld [smem:[#allocation3 + $0xa]]  ;;  %s3032_s8 = sld [smem:[#allocation3 + $0x19]] }
  0x52   : > { %5876 = vst [vmem:[#allocation13_spill] sm:$0xff] %v3579_v46  ;;  %177 = vst.msk [vmem:[#allocation2 + $0x18] sm:$0xff] %vm172_vm1, %v5812_v48  ;;  %v295_v51 = vunpack.c.0.s8 %v294_v43  ;;  %vm516_vm3 = vcmask 154648   ;;  %s3630_s14 = sld [smem:[#allocation3 + $0x1]]  ;;  %s3010_s21 = sld [smem:[#allocation3 + $0xf]]  ;;  %vm780_vm4 = vcmask 1041408  }
  0x53   : > { %v189_v9 = vmax.f32 %v187_v5, %v188_v7  ;;  %v195_v11 = vrot.slane %v194_v8, 2  ;;  %v203_v21 = vadd.f32 %v202_v19, %v201_v17  ;;  %v209_v26 = vrot.slane %v208_v24, 2  ;;  %178 = vst.msk [vmem:[#allocation2 + $0x20] sm:$0xff] %vm172_vm1, %v5812_v48  ;;  %s3016_s20 = sld [smem:[#allocation3 + $0x9]]  ;;  %p6221_p9 = scmp.ne.s32.totalorder %s5870_s6, 0 }
  0x54   : > { %v3590_v59 = vsub.s32 %v295_v51, %v3575_v40  ;;  %176 = vst.msk [vmem:[#allocation2 + $0x10] sm:$0x3f] %vm175_vm2, %v5812_v48  ;;  %179 = vst.msk [vmem:[#allocation2 + $0x28] sm:$0x3f] %vm175_vm2, %v5812_v48  ;;  %vm829_vm5 = vcmask 1045504   ;;  %vm945_vm6 = vcmask 1040384  }
  0x55   : > { %v190_v10 = vrot.slane %v189_v9, 1  ;;  %v196_v14 = vmax.f32 %v194_v8, %v195_v11  ;;  %v204_v23 = vrot.slane %v203_v21, 1  ;;  %v210_v28 = vadd.f32 %v209_v26, %v208_v24 }
  0x56   : > { %5877 = vst [vmem:[#allocation14_spill] sm:$0xff] %v3590_v59  ;;  %vm1019_vm7 = vcmask 1044480   ;;  %vm615_vm8 = vcmask 1042432   ;;  %vm639_vm9 = vcmask 1046528   ;;  %vm2858_vm10 = vcmask 130048  }
  0x57   : > { %v3510_v13 = vmax.f32 %v189_v9, %v190_v10  ;;  %v197_v16 = vrot.slane %v196_v14, 1  ;;  %v205_v25 = vadd.f32 %v204_v23, %v203_v21  ;;  %v211_v29 = vrot.slane %v210_v28, 1 }
  0x58   : > { %vm2860_vm11 = vcmask 261120   ;;  %vm2862_vm12 = vcmask 392192   ;;  %vm2864_vm13 = vcmask 523264   ;;  %vm2866_vm14 = vcmask 654336  }
  0x59   : > { %223 = vrot.lane.b32.xlu1 %v3510_v13, %s5806_s15  ;;  %217 = vrot.lane.b32.xlu0 %v3510_v13, %s5802_s17  ;;  %v3524_v18 = vmax.f32 %v196_v14, %v197_v16  ;;  %v3543_v27 = vmul.f32 0.25, %v205_v25  ;;  %v212_v30 = vadd.f32 %v211_v29, %v210_v28  ;;  %vm2868_vm15 = vcmask 785408  }
  0x5b   : > { %v3557_v31 = vmul.f32 0.25, %v212_v30 }
  0x5d   : > { %226 = vrot.lane.b32.xlu1 %v3510_v13, %s5808_s22  ;;  %220 = vrot.lane.b32.xlu0 %v3510_v13, %s5804_s24 }
  0x61   : > { %232 = vrot.lane.b32.xlu1 %v3510_v13, %s3316_s25  ;;  %229 = vrot.lane.b32.xlu0 %v3510_v13, %s5810_s26 }
  0x65   : > { %235 = vrot.lane.b32.xlu0 %v3510_v13, %s3318_s27  ;;  %239 = vrot.lane.b32.xlu1 %v3524_v18, %s5802_s17 }
  0x69   : > { %242 = vrot.lane.b32.xlu0 %v3524_v18, %s5804_s24  ;;  %245 = vrot.lane.b32.xlu1 %v3524_v18, %s5806_s15 }
  0x6d   : > { %248 = vrot.lane.b32.xlu0 %v3524_v18, %s5808_s22  ;;  %251 = vrot.lane.b32.xlu1 %v3524_v18, %s5810_s26 }
  0x71   : > { %254 = vrot.lane.b32.xlu0 %v3524_v18, %s3316_s25  ;;  %257 = vrot.lane.b32.xlu1 %v3524_v18, %s3318_s27 }
  0x75   : > { %359 = vrot.lane.b32.xlu0 %v3543_v27, %s5802_s17  ;;  %362 = vrot.lane.b32.xlu1 %v3543_v27, %s5804_s24 }
  0x79   : > { %365 = vrot.lane.b32.xlu0 %v3543_v27, %s5806_s15  ;;  %368 = vrot.lane.b32.xlu1 %v3543_v27, %s5808_s22 }
  0x7d   : > { %371 = vrot.lane.b32.xlu0 %v3543_v27, %s5810_s26  ;;  %374 = vrot.lane.b32.xlu1 %v3543_v27, %s3316_s25 }
  0x81   : > { %377 = vrot.lane.b32.xlu0 %v3543_v27, %s3318_s27  ;;  %381 = vrot.lane.b32.xlu1 %v3557_v31, %s5802_s17  ;;  %s3730_s17 = sld [smem:[#allocation3 + $0x6]] }
  0x85   : > { %384 = vrot.lane.b32.xlu0 %v3557_v31, %s5804_s24  ;;  %387 = vrot.lane.b32.xlu1 %v3557_v31, %s5806_s15  ;;  %s3012_s24 = sld [smem:[#allocation3 + $0x1d]]  ;;  %s3328_s15 = smov 122  }
  0x89   : > { %390 = vrot.lane.b32.xlu0 %v3557_v31, %s5808_s22  ;;  %393 = vrot.lane.b32.xlu1 %v3557_v31, %s5810_s26  ;;  %s3834_s22 = sld [smem:[#allocation3 + $0x2b]]  ;;  %s3854_s26 = sld [smem:[#allocation3 + $0x27]] }
  0x8d   : > { %396 = vrot.lane.b32.xlu0 %v3557_v31, %s3316_s25  ;;  %399 = vrot.lane.b32.xlu1 %v3557_v31, %s3318_s27 }
  0xcb   : > { %v224_v32 = vpop.permute.xlu1 %223  ;;  %v218_v33 = vpop.permute.xlu0 %217 }
  0xcc   : > { %v268_v47 = vcombine.low %v218_v33, %v224_v32 }
  0xce   : > { %v275_v54 = vrot.slane %v268_v47, %v3579_v46 }
  0xcf   : > { %v227_v37 = vpop.permute.xlu1 %226  ;;  %v221_v38 = vpop.permute.xlu0 %220 }
  0xd0   : > { %v260_v41 = vcombine.low %v3510_v13, %v221_v38 }
  0xd2   : > { %v267_v49 = vrot.slane %v260_v41, %v3579_v46 }
  0xd3   : > { %v233_v44 = vpop.permute.xlu1 %232  ;;  %v230_v45 = vpop.permute.xlu0 %229 }
  0xd4   : > { %v276_v50 = vcombine.low %v227_v37, %v233_v44  ;;  %v292_v56 = vcombine.low %v267_v49, %v275_v54 }
  0xd6   : > { %v283_v57 = vrot.slane %v276_v50, %v3579_v46  ;;  %v299_v1 = vrot.slane %v292_v56, %v3590_v59 }
  0xd7   : > { %v236_v52 = vpop.permute.xlu0 %235  ;;  %v240_v53 = vpop.permute.xlu1 %239 }
  0xd8   : > { %v284_v55 = vcombine.low %v230_v45, %v236_v52 }
  0xda   : > { %v291_v58 = vrot.slane %v284_v55, %v3579_v46 }
  0xdb   : > { %v243_v60 = vpop.permute.xlu0 %242  ;;  %v246_v61 = vpop.permute.xlu1 %245 }
  0xdc   : > { %v300_v62 = vcombine.low %v283_v57, %v291_v58  ;;  %v309_v63 = vcombine.low %v3524_v18, %v243_v60  ;;  %v317_v0 = vcombine.low %v240_v53, %v246_v61 }
  0xde   : > { %v307_v2 = vrot.slane %v300_v62, %v3590_v59  ;;  %v316_v6 = vrot.slane %v309_v63, %v3579_v46  ;;  %v324_v7 = vrot.slane %v317_v0, %v3579_v46  ;;  %v3626_v0 = vstv %s3031_s29  ;;  %s3657_s29 = sld [smem:[#allocation3 + $0x3]] }
  0xdf   : > { %v249_v3 = vpop.permute.xlu0 %248  ;;  %v252_v4 = vpop.permute.xlu1 %251 }
  0xe0   : > { %v308_v5 = vcombine.low %v299_v1, %v307_v2  ;;  %v341_v12 = vcombine.low %v316_v6, %v324_v7  ;;  %v1109_v1 = vstv %s3621_s30  ;;  %v775_v2 = vstv %s3623_s3  ;;  %s3324_s30 = smov 126   ;;  %s3024_s3 = sld [smem:[#allocation3 + $0x11]] }
  0xe1   : > { %v3640_v7 = vstv %s3030_s4  ;;  %s3325_s4 = smov 125  }
  0xe2   : > { %504 = vrot.lane.b32.xlu0 %v308_v5, %s3322_s28  ;;  %v348_v18 = vrot.slane %v341_v12, %v3590_v59 }
  0xe3   : > { %v255_v8 = vpop.permute.xlu0 %254  ;;  %v258_v9 = vpop.permute.xlu1 %257 }
  0xe4   : > { %v325_v10 = vcombine.low %v249_v3, %v255_v8  ;;  %v333_v11 = vcombine.low %v252_v4, %v258_v9  ;;  %v3642_v8 = vstv %s3023_s7  ;;  %s3686_s7 = sld [smem:[#allocation3 + $0x5]] }
  0xe6   : > { %v332_v13 = vrot.slane %v325_v10, %v3579_v46  ;;  %v340_v14 = vrot.slane %v333_v11, %v3579_v46 }
  0xe7   : > { %v360_v15 = vpop.permute.xlu0 %359  ;;  %v363_v16 = vpop.permute.xlu1 %362 }
  0xe8   : > { %v349_v17 = vcombine.low %v332_v13, %v340_v14  ;;  %v402_v23 = vcombine.low %v3543_v27, %v363_v16  ;;  %v3654_v13 = vstv %s3032_s8  ;;  %v610_v14 = vstv %s3630_s14  ;;  %s3326_s8 = smov 127   ;;  %s3906_s14 = sld [smem:[#allocation3 + $0x1e]] }
  0xea   : > { %v356_v19 = vrot.slane %v349_v17, %v3590_v59  ;;  %v409_v28 = vrot.slane %v402_v23, %v3579_v46  ;;  %v940_v23 = vstv %s3657_s29  ;;  %s3018_s29 = sld [smem:[#allocation3 + $0x17]] }
  0xeb   : > { %v366_v20 = vpop.permute.xlu0 %365  ;;  %v369_v21 = vpop.permute.xlu1 %368 }
  0xec   : > { %v357_v22 = vcombine.low %v348_v18, %v356_v19  ;;  %v410_v24 = vcombine.low %v360_v15, %v366_v20  ;;  %v3671_v18 = vstv %s3016_s20  ;;  %s3044_s20 = sld [smem:[#allocation3 + $0xd]] }
  0xee   : > { %506 = vrot.lane.b32.xlu1 %v357_v22, %s3322_s28  ;;  %v417_v29 = vrot.slane %v410_v24, %v3579_v46 }
  0xef   : > { %v372_v25 = vpop.permute.xlu0 %371  ;;  %v375_v26 = vpop.permute.xlu1 %374 }
  0xf0   : > { %v418_v30 = vcombine.low %v369_v21, %v375_v26  ;;  %v434_v34 = vcombine.low %v409_v28, %v417_v29  ;;  %v3700_v29 = vstv %s3024_s3  ;;  %s3020_s3 = sld [smem:[#allocation3 + $0x25]] }
  0xf2   : > { %v425_v35 = vrot.slane %v418_v30, %v3579_v46  ;;  %v441_v43 = vrot.slane %v434_v34, %v3590_v59 }
  0xf3   : > { %v378_v32 = vpop.permute.xlu0 %377  ;;  %v382_v33 = vpop.permute.xlu1 %381 }
  0xf4   : > { %v426_v36 = vcombine.low %v372_v25, %v378_v32 }
  0xf6   : > { %v433_v37 = vrot.slane %v426_v36, %v3579_v46 }
  0xf7   : > { %v385_v38 = vpop.permute.xlu0 %384  ;;  %v388_v27 = vpop.permute.xlu1 %387 }
  0xf8   : > { %v442_v39 = vcombine.low %v425_v35, %v433_v37  ;;  %v451_v41 = vcombine.low %v3557_v31, %v385_v38  ;;  %v459_v42 = vcombine.low %v382_v33, %v388_v27  ;;  %v1254_v35 = vstv %s3686_s7  ;;  %s3017_s7 = sld [smem:[#allocation3 + $0x10]] }
  0xfa   : > { %v449_v44 = vrot.slane %v442_v39, %v3590_v59  ;;  %v458_v49 = vrot.slane %v451_v41, %v3579_v46  ;;  %v466_v50 = vrot.slane %v459_v42, %v3579_v46  ;;  %v3732_v39 = vstv %s3044_s20  ;;  %s3754_s20 = sld [smem:[#allocation3 + $0x1f]] }
  0xfb   : > { %v391_v45 = vpop.permute.xlu0 %390  ;;  %v394_v47 = vpop.permute.xlu1 %393  ;;  %v3739_v42 = vstv %s3018_s29  ;;  %s3327_s29 = smov 123  }
  0xfc   : > { %v450_v51 = vcombine.low %v441_v43, %v449_v44  ;;  %v483_v54 = vcombine.low %v458_v49, %v466_v50  ;;  %v3752_v49 = vstv %s3020_s3  ;;  %s3794_s3 = sld [smem:[#allocation3 + $0x2d]] }
  0xfe   : > { %508 = vrot.lane.b32.xlu0 %v450_v51, %s3322_s28  ;;  %v490_v60 = vrot.slane %v483_v54, %v3590_v59  ;;  %v3764_v51 = vstv %s3010_s21  ;;  %s3788_s21 = sld [smem:[#allocation3 + $0x26]] }
  0xff   : > { %v397_v52 = vpop.permute.xlu0 %396  ;;  %v400_v53 = vpop.permute.xlu1 %399 }
 0x100   : > { %v467_v55 = vcombine.low %v391_v45, %v397_v52  ;;  %v475_v56 = vcombine.low %v394_v47, %v400_v53 }
 0x102   : > { %v474_v31 = vrot.slane %v467_v55, %v3579_v46  ;;  %v482_v57 = vrot.slane %v475_v56, %v3579_v46 }
 0x104   : > { %v491_v58 = vcombine.low %v474_v31, %v482_v57 }
 0x106   : > { %v498_v61 = vrot.slane %v491_v58, %v3590_v59  ;;  %v5828_v58 = vstv %s3730_s17 }
 0x108   : > { %v499_v62 = vcombine.low %v490_v60, %v498_v61  ;;  %v3791_v60 = vstv %s3012_s24  ;;  %s3815_s24 = sld [smem:[#allocation3 + $0x16]] }
 0x10a   : > { %510 = vrot.lane.b32.xlu1 %v499_v62, %s3322_s28  ;;  %s3323_s28 = smov 124  }
 0x154   : > { %v505_v63 = vpop.permute.xlu0 %504 }
 0x155   : > { %517 = vst.msk [vmem:[#allocation2 + $0x3] sm:$0xff] %vm516_vm3, %v505_v63 }
 0x15c   : > { %v3632_v3 = vld [vmem:[#allocation2] sm:$0xff] }
 0x15d   : > { %v1144_v4 = vmul.f32 %v3626_v0, %v3632_v3  ;;  %v1110_v5 = vmul.f32 %v1109_v1, %v3632_v3  ;;  %v3638_v6 = vmul.f32 %v775_v2, %v3632_v3  ;;  %v1124_v10 = vmul.f32 %v3640_v7, %v3632_v3 }
 0x15e   : > { %v3652_v12 = vmul.f32 %v3642_v8, %v3632_v3  ;;  %v1164_v15 = vmul.f32 %v3654_v13, %v3632_v3  ;;  %v3669_v17 = vmul.f32 %v610_v14, %v3632_v3  ;;  %v3683_v22 = vmul.f32 %v3671_v18, %v3632_v3 }
 0x15f   : > { %1150 = vrot.lane.b32.xlu1 %v1144_v4, %s3323_s28  ;;  %1114 = vrot.lane.b32.xlu0 %v1110_v5, %s3323_s28  ;;  %v781_v11 = vrot.slane %v3638_v6, 6  ;;  %v3696_v26 = vmul.f32 %v940_v23, %v3632_v3  ;;  %v3711_v34 = vmul.f32 %v3700_v29, %v3632_v3  ;;  %v3728_v27 = vmul.f32 %v1254_v35, %v3632_v3 }
 0x160   : > { %v507_v9 = vpop.permute.xlu1 %506  ;;  %v969_v16 = vrot.slane %v3652_v12, 7  ;;  %v5821_v21 = vrot.slane %v3669_v17, 5  ;;  %v804_v25 = vrot.slane %v3683_v22, 6  ;;  %v3746_v45 = vmul.f32 %v3732_v39, %v3632_v3 }
 0x161   : > { %518 = vst.msk [vmem:[#allocation2 + $0xb] sm:$0xff] %vm516_vm3, %v507_v9  ;;  %v946_v33 = vrot.slane %v3696_v26, 7  ;;  %v994_v38 = vrot.slane %v3711_v34, 7  ;;  %v5830_v43 = vrot.slane %v3728_v27, 5  ;;  %v3888_v26 = vstv %s3788_s21  ;;  %s3919_s21 = sld [smem:[#allocation3 + $0x13]] }
 0x162   : > { %v5823_v56 = vrot.slane %v3746_v45, 6 }
 0x163   : > { %1130 = vrot.lane.b32.xlu0 %v1124_v10, %s3323_s28  ;;  %784 = vrot.lane.b32.xlu1 %v781_v11, %s3324_s30 }
 0x167   : > { %1170 = vrot.lane.b32.xlu0 %v1164_v15, %s3323_s28  ;;  %974 = vrot.lane.b32.xlu1 %v969_v16, %s3325_s4  ;;  %v3837_v15 = vstv %s3754_s20  ;;  %s3863_s20 = sld [smem:[#allocation3 + $0x2e]] }
 0x168   : > { %v3677_v19 = vld [vmem:[#allocation2 + $0x8] sm:$0xff]  ;;  %v3698_v28 = vld [vmem:[#allocation2 + $0x10] sm:$0x3f] }
 0x169   : > { %v1111_v20 = vmul.f32 %v1109_v1, %v3677_v19  ;;  %v1125_v24 = vmul.f32 %v3640_v7, %v3677_v19  ;;  %v1146_v32 = vmul.f32 %v3626_v0, %v3698_v28  ;;  %v3720_v36 = vmul.f32 %v775_v2, %v3677_v19 }
 0x16a   : > { %v1165_v37 = vmul.f32 %v3654_v13, %v3677_v19  ;;  %v1126_v44 = vmul.f32 %v3640_v7, %v3698_v28  ;;  %v3750_v47 = vmul.f32 %v3739_v42, %v3698_v28  ;;  %v3762_v50 = vmul.f32 %v3752_v49, %v3698_v28 }
 0x16b   : > { %1116 = vrot.lane.b32.xlu1 %v1111_v20, %s3323_s28  ;;  %619 = vrot.lane.b32.xlu0 %v5821_v21, %s3326_s8  ;;  %v782_v41 = vrot.slane %v3720_v36, 6  ;;  %v3767_v52 = vmul.f32 %v940_v23, %v3677_v19  ;;  %v3778_v55 = vmul.f32 %v3671_v18, %v3677_v19  ;;  %v1145_v31 = vmul.f32 %v3626_v0, %v3677_v19 }
 0x16c   : > { %v3785_v57 = vmul.f32 %v3764_v51, %v3698_v28  ;;  %v854_v61 = vrot.slane %v3750_v47, 2  ;;  %v3799_v63 = vmul.f32 %v3739_v42, %v3677_v19  ;;  %v5829_v0 = vrot.slane %v3762_v50, 2 }
 0x16d   : > { %v3774_v54 = vsel %vm780_vm4, %v781_v11, %v782_v41  ;;  %v5816_v62 = vrot.slane %v3778_v55, 6  ;;  %v3808_v1 = vmul.f32 %v3752_v49, %v3677_v19  ;;  %v3813_v2 = vmul.f32 %v5828_v58, %v3632_v3 }
 0x16e   : > { %v5826_v4 = vrot.slane %v3767_v52, 7  ;;  %v5815_v6 = vrot.slane %v3799_v63, 2  ;;  %v5818_v7 = vrot.slane %v3785_v57, 1  ;;  %v1166_v9 = vmul.f32 %v3654_v13, %v3698_v28 }
 0x16f   : > { %1132 = vrot.lane.b32.xlu1 %v1125_v24, %s3323_s28  ;;  %809 = vrot.lane.b32.xlu0 %v804_v25, %s3324_s30  ;;  %v3823_v5 = vsel %vm780_vm4, %v804_v25, %v5816_v62  ;;  %v3831_v10 = vmul.f32 %v3791_v60, %v3698_v28  ;;  %v5814_v11 = vrot.slane %v3808_v1, 2  ;;  %v3852_v13 = vmul.f32 %v3837_v15, %v3698_v28 }
 0x170   : > { %v509_v30 = vpop.permute.xlu0 %508  ;;  %v3844_v20 = vsel %vm829_vm5, %v5815_v6, %v854_v61  ;;  %v3870_v23 = vsel %vm945_vm6, %v946_v33, %v5826_v4  ;;  %v3874_v24 = vmul.f32 %v3642_v8, %v3677_v19  ;;  %v3878_v25 = vmul.f32 %v3700_v29, %v3677_v19 }
 0x171   : > { %519 = vst.msk [vmem:[#allocation2 + $0x1b] sm:$0xff] %vm516_vm3, %v509_v30  ;;  %v3861_v22 = vsel %vm829_vm5, %v5814_v11, %v5829_v0  ;;  %v5817_v30 = vrot.slane %v3831_v10, 1  ;;  %v3914_v48 = vmul.f32 %v3837_v15, %v3677_v19  ;;  %v3917_v11 = vstv %s3815_s24  ;;  %s3952_s24 = sld [smem:[#allocation3 + $0x21]] }
 0x172   : > { %v3943_v12 = vmul.f32 %v1254_v35, %v3677_v19 }
 0x173   : > { %1154 = vrot.lane.b32.xlu1 %v1146_v32, %s3323_s28  ;;  %949 = vrot.lane.b32.xlu0 %v946_v33, %s3325_s4  ;;  %v5824_v32 = vrot.slane %v3813_v2, 6  ;;  %v3891_v33 = vstv %s3794_s3  ;;  %s3950_s3 = sld [smem:[#allocation3 + $0x1a]] }
 0x174   : > { %v3977_v36 = vmul.f32 %v3891_v33, %v3677_v19 }
 0x176   : > { %5880 = vst [vmem:[#allocation17_spill] sm:$0xff] %v3977_v36 }
 0x177   : > { %1172 = vrot.lane.b32.xlu1 %v1165_v37, %s3323_s28  ;;  %999 = vrot.lane.b32.xlu0 %v994_v38, %s3325_s4  ;;  %v3885_v37 = vmul.f32 %v610_v14, %v3677_v19  ;;  %v5827_v14 = vrot.slane %v3852_v13, 3  ;;  %v4042_v46 = vstv %s3952_s24  ;;  %s3041_s24 = sld [smem:[#allocation3 + $0x28]] }
 0x178   : > { %5888 = vst [vmem:[#allocation24_spill] sm:$0xff] %v4042_v46 }
 0x179   : > { %v4037_v40 = vstv %s3950_s3  ;;  %s3037_s3 = sld [smem:[#allocation3 + $0xc]] }
 0x17a   : > { %5887 = vst [vmem:[#allocation23_spill] sm:$0xff] %v4037_v40 }
 0x17b   : > { %1262 = vrot.lane.b32.xlu1 %v5830_v43, %s3327_s29  ;;  %1134 = vrot.lane.b32.xlu0 %v1126_v44, %s3323_s28  ;;  %v3895_v44 = vmul.f32 %v3888_v26, %v3698_v28  ;;  %v5885_v43 = vrot.slane %v3728_v27, 5  ;;  %v1324_v27 = vmul.f32 %v4037_v40, %v3698_v28 }
 0x17c   : > { %v511_v53 = vpop.permute.xlu1 %510 }
 0x17d   : > { %520 = vst.msk [vmem:[#allocation2 + $0x23] sm:$0xff] %vm516_vm3, %v511_v53  ;;  %v5819_v53 = vrot.slane %v3874_v24, 7  ;;  %v5832_v34 = vrot.slane %v3895_v44, 3 }
 0x17f   : > { %1450 = vrot.lane.b32.xlu1 %v5823_v56, %s3328_s15  ;;  %1152 = vrot.lane.b32.xlu0 %v1145_v31, %s3323_s28  ;;  %v5820_v31 = vrot.slane %v3878_v25, 7  ;;  %v3926_v6 = vsel %vm945_vm6, %v969_v16, %v5819_v53  ;;  %v5825_v16 = vrot.slane %v3914_v48, 3  ;;  %v3947_v53 = vstv %s3834_s22  ;;  %s3042_s22 = sld [smem:[#allocation3 + $0x2f]] }
 0x181   : > { %v3933_v62 = vsel %vm945_vm6, %v994_v38, %v5820_v31  ;;  %v3956_v38 = vmul.f32 %v3888_v26, %v3677_v19  ;;  %v3966_v31 = vstv %s3854_s26  ;;  %v3973_v21 = vsel %vm1019_vm7, %v5825_v16, %v5827_v14  ;;  %s3013_s26 = sld [smem:[#allocation3 + $0x24]] }
 0x182   : > { %5879 = vst [vmem:[#allocation16_spill] sm:$0xff] %v3966_v31  ;;  %v1260_v16 = vrot.slane %v3943_v12, 5  ;;  %v5834_v14 = vrot.slane %v3977_v36, 3  ;;  %v4008_v12 = vstv %s3906_s14  ;;  %v4021_v47 = vmul.f32 %v3966_v31, %v3677_v19  ;;  %s3025_s14 = sld [smem:[#allocation3 + $0x18]] }
 0x183   : > { %670 = vrot.lane.b32.xlu1 %v5818_v7, %s3326_s8  ;;  %1174 = vrot.lane.b32.xlu0 %v1166_v9, %s3323_s28  ;;  %v3910_v9 = vmul.f32 %v3891_v33, %v3698_v28  ;;  %v3938_v7 = vmul.f32 %v3917_v11, %v3698_v28  ;;  %5878 = vst [vmem:[#allocation15_spill] sm:$0xff] %v3956_v38  ;;  %v5831_v56 = vrot.slane %v3956_v38, 3 }
 0x185   : > { %v1094_v35 = vrot.slane %v3910_v9, 3  ;;  %v1207_v9 = vmul.f32 %v3966_v31, %v3698_v28  ;;  %v3999_v58 = vsel %vm1019_vm7, %v5831_v56, %v5832_v34  ;;  %v4017_v34 = vstv %s3919_s21  ;;  %s3033_s21 = sld [smem:[#allocation3 + $0x20]] }
 0x186   : > { %5882 = vst [vmem:[#allocation19_spill] sm:$0xff] %v3999_v58  ;;  %5884 = vst [vmem:[#allocation21_spill] sm:$0xff] %v4017_v34  ;;  %v1299_v59 = vmul.f32 %v4017_v34, %v3698_v28  ;;  %v5844_v31 = vrot.slane %v4021_v47, 4  ;;  %v4072_v38 = vmul.f32 %v4017_v34, %v3677_v19  ;;  %v4088_v34 = vstv %s3042_s22  ;;  %s3045_s22 = sld [smem:[#allocation3 + $0x14]] }
 0x187   : > { %720 = vrot.lane.b32.xlu1 %v5817_v30, %s3326_s8  ;;  %1425 = vrot.lane.b32.xlu0 %v5824_v32, %s3328_s15  ;;  %v5822_v30 = vrot.slane %v3885_v37, 5  ;;  %v5833_v32 = vrot.slane %v3938_v7, 1  ;;  %v4013_v0 = vsel %vm1019_vm7, %v5834_v14, %v1094_v35  ;;  %v1214_v56 = vrot.slane %v1207_v9, 4 }
 0x188   : > { %5883 = vst [vmem:[#allocation20_spill] sm:$0xff] %v4013_v0  ;;  %v4034_v9 = vsel %vm615_vm8, %v5885_v43, %v1260_v16  ;;  %v1349_v43 = vmul.f32 %v4042_v46, %v3698_v28  ;;  %v1306_v58 = vrot.slane %v1299_v59, 1  ;;  %5894 = vst [vmem:[#allocation27_spill] sm:$0xff] %v4072_v38  ;;  %v4086_v59 = vmul.f32 %v4042_v46, %v3677_v19 }
 0x189   : > { %5886 = vst [vmem:[#allocation22_spill] sm:$0xff] %v4034_v9  ;;  %v4059_v0 = vsel %vm184_vm0, %v5844_v31, %v1214_v56  ;;  %v5895_v31 = vrot.slane %v3852_v13, 3  ;;  %v1395_v13 = vmul.f32 %v4088_v34, %v3698_v28  ;;  %v5896_v46 = vrot.slane %v3767_v52, 7 }
 0x18a   : > { %5891 = vst [vmem:[#allocation25_spill] sm:$0xff] %v4059_v0  ;;  %v1356_v0 = vrot.slane %v1349_v43, 1 }
 0x18b   : > { %788 = vrot.lane.b32.xlu1 %v782_v41, %s3324_s30  ;;  %623 = vrot.lane.b32.xlu0 %v5822_v30, %s3326_s8  ;;  %v3981_v41 = vmul.f32 %v3947_v53, %v3698_v28  ;;  %v3986_v30 = vstv %s3863_s20  ;;  %s3021_s20 = sld [smem:[#allocation3 + $0x2c]] }
 0x18c   : > { %5881 = vst [vmem:[#allocation18_spill] sm:$0xff] %v3986_v30  ;;  %v1232_v4 = vmul.f32 %v3986_v30, %v3698_v28  ;;  %v4029_v14 = vmul.f32 %v3986_v30, %v3677_v19 }
 0x18d   : > { %v5890_v30 = vrot.slane %v3981_v41, 5 }
 0x18e   : > { %v5845_v9 = vrot.slane %v4029_v14, 4 }
 0x18f   : > { %860 = vrot.lane.b32.xlu1 %v854_v61, %s3324_s30  ;;  %695 = vrot.lane.b32.xlu0 %v5833_v32, %s3326_s8  ;;  %v4025_v61 = vmul.f32 %v4008_v12, %v3698_v28  ;;  %v1239_v32 = vrot.slane %v1232_v4, 4  ;;  %v5889_v4 = vrot.slane %v3762_v50, 2 }
 0x191   : > { %v5847_v50 = vrot.slane %v4025_v61, 2 }
 0x193   : > { %910 = vrot.lane.b32.xlu1 %v5889_v4, %s3324_s30  ;;  %766 = vrot.lane.b32.xlu0 %v5890_v30, %s3326_s8  ;;  %v5892_v4 = vstv %s3730_s17  ;;  %v4068_v30 = vsel %vm184_vm0, %v5845_v9, %v1239_v32  ;;  %v4082_v9 = vmul.f32 %v4037_v40, %v3677_v19  ;;  %s3009_s17 = sld [smem:[#allocation3 + $0x8]] }
 0x194   : > { %v1419_v36 = vmul.f32 %v5892_v4, %v3677_v19  ;;  %5893 = vst [vmem:[#allocation26_spill] sm:$0xff] %v4068_v30  ;;  %v1331_v4 = vrot.slane %v1324_v27, 1  ;;  %v5851_v30 = vrot.slane %v4072_v38, 1  ;;  %v5854_v27 = vrot.slane %v4086_v59, 1 }
 0x195   : > { %v1402_v38 = vrot.slane %v1395_v13, 5  ;;  %v4130_v13 = vmul.f32 %v3732_v39, %v3677_v19 }
 0x196   : > { %v4098_v43 = vsel %vm639_vm9, %v5851_v30, %v1306_v58  ;;  %v4116_v30 = vmul.f32 %v4088_v34, %v3677_v19 }
 0x197   : > { %1050 = vrot.lane.b32.xlu1 %v5895_v31, %s3325_s4  ;;  %885 = vrot.lane.b32.xlu0 %v5847_v50, %s3324_s30  ;;  %v1423_v31 = vrot.slane %v1419_v36, 6  ;;  %v5852_v50 = vrot.slane %v4082_v9, 1  ;;  %v4112_v36 = vsel %vm639_vm9, %v5854_v27, %v1356_v0 }
 0x199   : > { %v4107_v40 = vsel %vm639_vm9, %v5852_v50, %v1331_v4  ;;  %v5853_v50 = vrot.slane %v4116_v30, 5 }
 0x19b   : > { %1100 = vrot.lane.b32.xlu1 %v1094_v35, %s3325_s4  ;;  %953 = vrot.lane.b32.xlu0 %v5896_v46, %s3325_s4  ;;  %v5897_v35 = vrot.slane %v3813_v2, 6  ;;  %v5898_v46 = vrot.slane %v3895_v44, 3  ;;  %v4135_v2 = vsel %vm615_vm8, %v5853_v50, %v1402_v38 }
 0x19d   : > { %v4121_v52 = vsel %vm780_vm4, %v5897_v35, %v1423_v31  ;;  %v5855_v35 = vrot.slane %v4130_v13, 6 }
 0x19f   : > { %1220 = vrot.lane.b32.xlu1 %v1214_v56, %s3323_s28  ;;  %1075 = vrot.lane.b32.xlu0 %v5898_v46, %s3325_s4  ;;  %v5899_v56 = vrot.slane %v3746_v45, 6  ;;  %v632_v46 = vstv %s3009_s17  ;;  %v5900_v45 = vrot.slane %v3885_v37, 5  ;;  %s3046_s17 = sld [smem:[#allocation3 + $0x1b]] }
 0x1a0   : > { %v634_v50 = vmul.f32 %v632_v46, %v3677_v19  ;;  %v635_v27 = vmul.f32 %v632_v46, %v3698_v28 }
 0x1a1   : > { %v4145_v44 = vsel %vm780_vm4, %v5899_v56, %v5855_v35 }
 0x1a2   : > { %v643_v35 = vrot.slane %v635_v27, 1  ;;  %v680_v27 = vmul.f32 %v3917_v11, %v3632_v3 }
 0x1a3   : > { %1266 = vrot.lane.b32.xlu1 %v1260_v16, %s3327_s29  ;;  %1245 = vrot.lane.b32.xlu0 %v1239_v32, %s3323_s28  ;;  %v633_v32 = vmul.f32 %v632_v46, %v3632_v3  ;;  %v5901_v16 = vrot.slane %v3669_v17, 5 }
 0x1a5   : > { %v618_v56 = vsel %vm615_vm8, %v5901_v16, %v5900_v45  ;;  %v706_v16 = vmul.f32 %v3791_v60, %v3677_v19 }
 0x1a7   : > { %1337 = vrot.lane.b32.xlu1 %v1331_v4, %s3327_s29  ;;  %1312 = vrot.lane.b32.xlu0 %v1306_v58, %s3327_s29  ;;  %v641_v4 = vrot.slane %v634_v50, 1  ;;  %v656_v58 = vmul.f32 %v3764_v51, %v3677_v19  ;;  %v681_v50 = vmul.f32 %v3917_v11, %v3677_v19 }
 0x1a9   : > { %v644_v37 = vsel %vm639_vm9, %v641_v4, %v643_v35  ;;  %v662_v46 = vrot.slane %v656_v58, 1  ;;  %v687_v45 = vrot.slane %v681_v50, 1  ;;  %v729_v58 = vstv %s3013_s26  ;;  %s3047_s26 = sld [smem:[#allocation3 + $0x22]] }
 0x1aa   : > { %v731_v11 = vmul.f32 %v729_v58, %v3677_v19  ;;  %v730_v50 = vmul.f32 %v729_v58, %v3632_v3 }
 0x1ab   : > { %1408 = vrot.lane.b32.xlu1 %v1402_v38, %s3327_s29  ;;  %1362 = vrot.lane.b32.xlu0 %v1356_v0, %s3327_s29  ;;  %v640_v38 = vrot.slane %v633_v32, 1  ;;  %v655_v0 = vmul.f32 %v3764_v51, %v3632_v3  ;;  %v5902_v32 = vrot.slane %v3785_v57, 1 }
 0x1ad   : > { %v642_v17 = vsel %vm639_vm9, %v640_v38, %v641_v4  ;;  %v665_v51 = vsel %vm639_vm9, %v662_v46, %v5902_v32  ;;  %v705_v4 = vmul.f32 %v3791_v60, %v3632_v3  ;;  %v5903_v38 = vrot.slane %v3938_v7, 1 }
 0x1ae   : > { %v752_v60 = vmul.f32 %v3947_v53, %v3677_v19  ;;  %v737_v32 = vrot.slane %v731_v11, 5 }
 0x1af   : > { %1429 = vrot.lane.b32.xlu0 %v1423_v31, %s3328_s15  ;;  %621 = vrot.lane.b32.xlu1 %v618_v56, %s3326_s8  ;;  %v661_v31 = vrot.slane %v655_v0, 1  ;;  %v686_v56 = vrot.slane %v680_v27, 1  ;;  %v690_v0 = vsel %vm639_vm9, %v687_v45, %v5903_v38 }
 0x1b1   : > { %v663_v35 = vsel %vm639_vm9, %v661_v31, %v662_v46  ;;  %v688_v57 = vsel %vm639_vm9, %v686_v56, %v687_v45  ;;  %v711_v46 = vrot.slane %v705_v4, 1  ;;  %v5904_v31 = vrot.slane %v3831_v10, 1 }
 0x1b2   : > { %v751_v45 = vmul.f32 %v3947_v53, %v3632_v3  ;;  %v758_v4 = vrot.slane %v752_v60, 5  ;;  %v800_v53 = vmul.f32 %v3671_v18, %v3698_v28  ;;  %v845_v18 = vmul.f32 %v3739_v42, %v3632_v3 }
 0x1b3   : > { %647 = vrot.lane.b32.xlu0 %v644_v37, %s3326_s8  ;;  %645 = vrot.lane.b32.xlu1 %v642_v17, %s3326_s8  ;;  %v712_v37 = vrot.slane %v706_v16, 1  ;;  %v732_v17 = vmul.f32 %v729_v58, %v3698_v28  ;;  %v822_v58 = vstv %s3017_s7  ;;  %v5906_v60 = vrot.slane %v3778_v55, 6  ;;  %s3048_s7 = sld [smem:[#allocation3 + $0x29]] }
 0x1b4   : > { %v757_v10 = vrot.slane %v751_v45, 5  ;;  %v5909_v55 = vrot.slane %v3799_v63, 2  ;;  %v5912_v63 = vrot.slane %v4025_v61, 2  ;;  %v5915_v61 = vrot.slane %v3808_v1, 2 }
 0x1b5   : > { %v715_v7 = vsel %vm639_vm9, %v712_v37, %v5904_v31  ;;  %v713_v27 = vsel %vm639_vm9, %v711_v46, %v712_v37  ;;  %v823_v37 = vmul.f32 %v822_v58, %v3632_v3  ;;  %v965_v1 = vmul.f32 %v3642_v8, %v3698_v28 }
 0x1b6   : > { %v759_v11 = vsel %vm615_vm8, %v757_v10, %v758_v4 }
 0x1b7   : > { %668 = vrot.lane.b32.xlu0 %v665_v51, %s3326_s8  ;;  %666 = vrot.lane.b32.xlu1 %v663_v35, %s3326_s8  ;;  %v739_v51 = vrot.slane %v732_v17, 5  ;;  %v736_v35 = vrot.slane %v730_v50, 5  ;;  %v807_v17 = vrot.slane %v800_v53, 6  ;;  %v825_v50 = vmul.f32 %v822_v58, %v3698_v28 }
 0x1b9   : > { %v738_v16 = vsel %vm615_vm8, %v736_v35, %v737_v32  ;;  %v740_v56 = vsel %vm615_vm8, %v737_v32, %v739_v51  ;;  %v808_v31 = vsel %vm780_vm4, %v5906_v60, %v807_v17  ;;  %v871_v32 = vmul.f32 %v4008_v12, %v3677_v19 }
 0x1bb   : > { %691 = vrot.lane.b32.xlu0 %v688_v57, %s3326_s8  ;;  %693 = vrot.lane.b32.xlu1 %v690_v0, %s3326_s8  ;;  %v5905_v57 = vrot.slane %v3981_v41, 5  ;;  %v824_v0 = vmul.f32 %v822_v58, %v3677_v19  ;;  %v830_v41 = vrot.slane %v823_v37, 2  ;;  %v877_v45 = vrot.slane %v871_v32, 2 }
 0x1bc   : > { %v919_v58 = vstv %s3021_s20  ;;  %s3049_s20 = sld [smem:[#allocation3 + $0x30]] }
 0x1bd   : > { %v761_v38 = vsel %vm615_vm8, %v758_v4, %v5905_v57  ;;  %v831_v46 = vrot.slane %v824_v0, 2  ;;  %v921_v57 = vmul.f32 %v919_v58, %v3677_v19 }
 0x1bf   : > { %718 = vrot.lane.b32.xlu0 %v715_v7, %s3326_s8  ;;  %716 = vrot.lane.b32.xlu1 %v713_v27, %s3326_s8  ;;  %v832_v7 = vsel %vm829_vm5, %v830_v41, %v831_v46  ;;  %v833_v27 = vrot.slane %v825_v50, 2 }
 0x1c1   : > { %v834_v42 = vsel %vm829_vm5, %v831_v46, %v833_v27  ;;  %v927_v46 = vrot.slane %v921_v57, 6 }
 0x1c3   : > { %741 = vrot.lane.b32.xlu0 %v738_v16, %s3326_s8  ;;  %743 = vrot.lane.b32.xlu1 %v740_v56, %s3326_s8  ;;  %v870_v16 = vmul.f32 %v4008_v12, %v3632_v3  ;;  %v895_v56 = vmul.f32 %v3752_v49, %v3632_v3 }
 0x1c5   : > { %v876_v12 = vrot.slane %v870_v16, 2  ;;  %v901_v49 = vrot.slane %v895_v56, 2 }
 0x1c7   : > { %762 = vrot.lane.b32.xlu0 %v759_v11, %s3326_s8  ;;  %764 = vrot.lane.b32.xlu1 %v761_v38, %s3326_s8  ;;  %v880_v11 = vsel %vm829_vm5, %v877_v45, %v5912_v63  ;;  %v922_v38 = vmul.f32 %v919_v58, %v3698_v28  ;;  %v878_v37 = vsel %vm829_vm5, %v876_v12, %v877_v45 }
 0x1c8   : > { %v903_v17 = vsel %vm829_vm5, %v901_v49, %v5915_v61  ;;  %v1035_v12 = vmul.f32 %v3837_v15, %v3632_v3 }
 0x1c9   : > { %v929_v50 = vrot.slane %v922_v38, 6 }
 0x1cb   : > { %786 = vrot.lane.b32.xlu0 %v3774_v54, %s3324_s30  ;;  %811 = vrot.lane.b32.xlu1 %v3823_v5, %s3324_s30  ;;  %v851_v54 = vrot.slane %v845_v18, 2  ;;  %v930_v60 = vsel %vm780_vm4, %v927_v46, %v929_v50  ;;  %v5926_v50 = vrot.slane %v3914_v48, 3 }
 0x1cd   : > { %v853_v35 = vsel %vm829_vm5, %v851_v54, %v5909_v55  ;;  %v972_v54 = vrot.slane %v965_v1, 7  ;;  %v1012_v55 = vstv %s3025_s14  ;;  %v1085_v1 = vmul.f32 %v3891_v33, %v3632_v3  ;;  %s4525_s14 = sld [smem:[#allocation3 + $0x32]] }
 0x1ce   : > { %v1014_v56 = vmul.f32 %v1012_v55, %v3677_v19 }
 0x1cf   : > { %813 = vrot.lane.b32.xlu0 %v808_v31, %s3324_s30  ;;  %835 = vrot.lane.b32.xlu1 %v832_v7, %s3324_s30 }
 0x1d0   : > { %v1021_v57 = vrot.slane %v1014_v56, 3 }
 0x1d1   : > { %v4231_v5 = vpop.permute.xlu1 %1150  ;;  %v4233_v51 = vpop.permute.xlu0 %1114 }
 0x1d2   : > { %5907 = vst [vmem:[#allocation28_spill] sm:$0xff] %v4231_v5  ;;  %5908 = vst [vmem:[#allocation29_spill] sm:$0xff] %v4233_v51 }
 0x1d3   : > { %837 = vrot.lane.b32.xlu0 %v834_v42, %s3324_s30  ;;  %856 = vrot.lane.b32.xlu1 %v853_v35, %s3324_s30  ;;  %v990_v42 = vmul.f32 %v3700_v29, %v3698_v28  ;;  %v5920_v35 = vrot.slane %v3874_v24, 7  ;;  %v1013_v29 = vmul.f32 %v1012_v55, %v3632_v3  ;;  %v5921_v24 = vrot.slane %v3878_v25, 7 }
 0x1d5   : > { %v4245_v4 = vpop.permute.xlu0 %1130  ;;  %v4247_v10 = vpop.permute.xlu1 %784  ;;  %v973_v45 = vsel %vm945_vm6, %v5920_v35, %v972_v54  ;;  %v997_v16 = vrot.slane %v990_v42, 7  ;;  %v5927_v54 = vld [vmem:[#allocation15_spill] sm:$0xff] }
 0x1d6   : > { %5910 = vst [vmem:[#allocation30_spill] sm:$0xff] %v4245_v4  ;;  %5911 = vst [vmem:[#allocation31_spill] sm:$0xff] %v4247_v10  ;;  %v5928_v42 = vrot.slane %v5927_v54, 3 }
 0x1d7   : > { %858 = vrot.lane.b32.xlu0 %v3844_v20, %s3324_s30  ;;  %883 = vrot.lane.b32.xlu1 %v880_v11, %s3324_s30  ;;  %v920_v20 = vmul.f32 %v919_v58, %v3632_v3  ;;  %v1015_v58 = vmul.f32 %v1012_v55, %v3698_v28  ;;  %v998_v11 = vsel %vm945_vm6, %v5921_v24, %v997_v16 }
 0x1d9   : > { %v4257_v53 = vpop.permute.xlu0 %1170  ;;  %v4259_v0 = vpop.permute.xlu1 %974  ;;  %v926_v31 = vrot.slane %v920_v20, 6  ;;  %v1023_v38 = vrot.slane %v1015_v58, 3  ;;  %v5931_v58 = vld [vmem:[#allocation17_spill] sm:$0xff] }
 0x1da   : > { %5913 = vst [vmem:[#allocation32_spill] sm:$0xff] %v4257_v53  ;;  %5914 = vst [vmem:[#allocation33_spill] sm:$0xff] %v4259_v0 }
 0x1db   : > { %881 = vrot.lane.b32.xlu0 %v878_v37, %s3324_s30  ;;  %906 = vrot.lane.b32.xlu1 %v903_v17, %s3324_s30  ;;  %v928_v32 = vsel %vm780_vm4, %v926_v31, %v927_v46  ;;  %v1024_v25 = vsel %vm1019_vm7, %v1021_v57, %v1023_v38  ;;  %v1041_v17 = vrot.slane %v1035_v12, 3  ;;  %v5933_v38 = vld [vmem:[#allocation20_spill] sm:$0xff] }
 0x1dc   : > { %v5934_v12 = vld [vmem:[#allocation16_spill] sm:$0xff] }
 0x1dd   : > { %v4268_v41 = vpop.permute.xlu1 %1116  ;;  %v4270_v18 = vpop.permute.xlu0 %619  ;;  %v1043_v20 = vsel %vm1019_vm7, %v1041_v17, %v5926_v50 }
 0x1de   : > { %5916 = vst [vmem:[#allocation34_spill] sm:$0xff] %v4268_v41 }
 0x1df   : > { %908 = vrot.lane.b32.xlu0 %v3861_v22, %s3324_s30  ;;  %933 = vrot.lane.b32.xlu1 %v930_v60, %s3324_s30 }
 0x1e1   : > { %v4278_v7 = vpop.permute.xlu1 %1132  ;;  %v4280_v27 = vpop.permute.xlu0 %809 }
 0x1e2   : > { %5917 = vst [vmem:[#allocation35_spill] sm:$0xff] %v4278_v7 }
 0x1e3   : > { %931 = vrot.lane.b32.xlu0 %v928_v32, %s3324_s30  ;;  %951 = vrot.lane.b32.xlu1 %v3870_v23, %s3325_s4  ;;  %v1183_v32 = vstv %s3033_s21  ;;  %s3058_s21 = sld [smem:[#allocation3 + $0x39]] }
 0x1e4   : > { %v1185_v55 = vmul.f32 %v1183_v32, %v3677_v19  ;;  %v1186_v35 = vmul.f32 %v1183_v32, %v3698_v28  ;;  %v1184_v33 = vmul.f32 %v1183_v32, %v3632_v3 }
 0x1e5   : > { %v4288_v8 = vpop.permute.xlu1 %1154  ;;  %v4290_v22 = vpop.permute.xlu0 %949 }
 0x1e6   : > { %5918 = vst [vmem:[#allocation36_spill] sm:$0xff] %v4288_v8  ;;  %5919 = vst [vmem:[#allocation37_spill] sm:$0xff] %v4290_v22 }
 0x1e7   : > { %976 = vrot.lane.b32.xlu0 %v3926_v6, %s3325_s4  ;;  %978 = vrot.lane.b32.xlu1 %v973_v45, %s3325_s4  ;;  %v1020_v6 = vrot.slane %v1013_v29, 3  ;;  %v1091_v45 = vrot.slane %v1085_v1, 3  ;;  %v5932_v29 = vrot.slane %v5931_v58, 3 }
 0x1e9   : > { %v4301_v23 = vpop.permute.xlu1 %1172  ;;  %v4303_v63 = vpop.permute.xlu0 %999  ;;  %v1022_v61 = vsel %vm1019_vm7, %v1020_v6, %v1021_v57  ;;  %v1093_v24 = vsel %vm1019_vm7, %v1091_v45, %v5932_v29  ;;  %v1193_v57 = vrot.slane %v1186_v35, 4  ;;  %v1190_v6 = vrot.slane %v1184_v33, 4  ;;  %v5938_v45 = vld [vmem:[#allocation25_spill] sm:$0xff] }
 0x1eb   : > { %1003 = vrot.lane.b32.xlu0 %v998_v11, %s3325_s4  ;;  %1001 = vrot.lane.b32.xlu1 %v3933_v62, %s3325_s4  ;;  %v1060_v62 = vmul.f32 %v3888_v26, %v3632_v3  ;;  %v1191_v11 = vrot.slane %v1185_v55, 4 }
 0x1ed   : > { %v4313_v49 = vpop.permute.xlu1 %1262  ;;  %v4315_v37 = vpop.permute.xlu0 %1134  ;;  %v1066_v60 = vrot.slane %v1060_v62, 3  ;;  %v1194_v62 = vsel %vm184_vm0, %v1191_v11, %v1193_v57  ;;  %v1192_v50 = vsel %vm184_vm0, %v1190_v6, %v1191_v11 }
 0x1ee   : > { %5922 = vst [vmem:[#allocation38_spill] sm:$0xff] %v4313_v49  ;;  %5923 = vst [vmem:[#allocation39_spill] sm:$0xff] %v4315_v37 }
 0x1ef   : > { %1027 = vrot.lane.b32.xlu0 %v1024_v25, %s3325_s4  ;;  %1025 = vrot.lane.b32.xlu1 %v1022_v61, %s3325_s4  ;;  %v1068_v48 = vsel %vm1019_vm7, %v1066_v60, %v5928_v42  ;;  %v1205_v25 = vmul.f32 %v5934_v12, %v3632_v3  ;;  %v5935_v60 = vld [vmem:[#allocation18_spill] sm:$0xff]  ;;  %v1275_v42 = vstv %s3037_s3  ;;  %s3059_s3 = sld [smem:[#allocation3 + $0x40]] }
 0x1f0   : > { %v1230_v1 = vmul.f32 %v5935_v60, %v3632_v3  ;;  %v1277_v35 = vmul.f32 %v1275_v42, %v3677_v19  ;;  %v1276_v6 = vmul.f32 %v1275_v42, %v3632_v3 }
 0x1f1   : > { %v4323_v46 = vpop.permute.xlu1 %1450  ;;  %v4325_v15 = vpop.permute.xlu0 %1152 }
 0x1f2   : > { %5924 = vst [vmem:[#allocation40_spill] sm:$0xff] %v4323_v46  ;;  %5925 = vst [vmem:[#allocation41_spill] sm:$0xff] %v4325_v15  ;;  %v1236_v33 = vrot.slane %v1230_v1, 4  ;;  %v1283_v11 = vrot.slane %v1277_v35, 1  ;;  %v5946_v1 = vld [vmem:[#allocation23_spill] sm:$0xff] }
 0x1f3   : > { %1048 = vrot.lane.b32.xlu0 %v3973_v21, %s3325_s4  ;;  %1046 = vrot.lane.b32.xlu1 %v1043_v20, %s3325_s4  ;;  %v5929_v21 = vld [vmem:[#allocation19_spill] sm:$0xff]  ;;  %v1211_v20 = vrot.slane %v1205_v25, 4 }
 0x1f5   : > { %v4335_v31 = vpop.permute.xlu1 %670  ;;  %v4337_v26 = vpop.permute.xlu0 %1174 }
 0x1f7   : > { %1071 = vrot.lane.b32.xlu0 %v1068_v48, %s3325_s4  ;;  %1073 = vrot.lane.b32.xlu1 %v5929_v21, %s3325_s4  ;;  %v5937_v48 = vrot.slane %v4021_v47, 4  ;;  %v1278_v21 = vmul.f32 %v1275_v42, %v3698_v28 }
 0x1f9   : > { %v4348_v16 = vpop.permute.xlu1 %720  ;;  %v4350_v56 = vpop.permute.xlu0 %1425  ;;  %v1213_v55 = vsel %vm184_vm0, %v1211_v20, %v5937_v48  ;;  %v1285_v57 = vrot.slane %v1278_v21, 1  ;;  %v5945_v20 = vld [vmem:[#allocation21_spill] sm:$0xff]  ;;  %v1322_v48 = vmul.f32 %v5946_v1, %v3632_v3 }
 0x1fa   : > { %5930 = vst [vmem:[#allocation15_spill] sm:$0xff] %v4350_v56  ;;  %v1297_v60 = vmul.f32 %v5945_v20, %v3632_v3  ;;  %v4536_v56 = vld [vmem:[#allocation2 + $0x10] sm:$0x3f] }
 0x1fb   : > { %1098 = vrot.lane.b32.xlu0 %v5933_v38, %s3325_s4  ;;  %1096 = vrot.lane.b32.xlu1 %v1093_v24, %s3325_s4  ;;  %v5940_v24 = vrot.slane %v4029_v14, 4  ;;  %v5941_v38 = vld [vmem:[#allocation26_spill] sm:$0xff] }
 0x1fc   : > { %v5944_v14 = vld [vmem:[#allocation22_spill] sm:$0xff]  ;;  %v1303_v21 = vrot.slane %v1297_v60, 1 }
 0x1fd   : > { %v4360_v61 = vpop.permute.xlu1 %788  ;;  %v4362_v17 = vpop.permute.xlu0 %623  ;;  %v1238_v47 = vsel %vm184_vm0, %v1236_v33, %v5940_v24 }
 0x1ff   : > { %1197 = vrot.lane.b32.xlu0 %v1194_v62, %s3323_s28  ;;  %1195 = vrot.lane.b32.xlu1 %v1192_v50, %s3323_s28  ;;  %v1286_v62 = vsel %vm639_vm9, %v1283_v11, %v1285_v57  ;;  %v1282_v50 = vrot.slane %v1276_v6, 1  ;;  %v5950_v57 = vld [vmem:[#allocation27_spill] sm:$0xff] }
 0x201   : > { %v4370_v32 = vpop.permute.xlu1 %860  ;;  %v4372_v54 = vpop.permute.xlu0 %695  ;;  %v1284_v35 = vsel %vm639_vm9, %v1282_v50, %v1283_v11 }
 0x202   : > { %5936 = vst [vmem:[#allocation19_spill] sm:$0xff] %v4370_v32 }
 0x203   : > { %1218 = vrot.lane.b32.xlu0 %v5938_v45, %s3323_s28  ;;  %1216 = vrot.lane.b32.xlu1 %v1213_v55, %s3323_s28  ;;  %v1328_v45 = vrot.slane %v1322_v48, 1 }
 0x205   : > { %v4382_v58 = vpop.permute.xlu1 %910  ;;  %v4384_v29 = vpop.permute.xlu0 %766 }
 0x206   : > { %5939 = vst [vmem:[#allocation17_spill] sm:$0xff] %v4384_v29 }
 0x207   : > { %1241 = vrot.lane.b32.xlu0 %v1238_v47, %s3323_s28  ;;  %1243 = vrot.lane.b32.xlu1 %v5941_v38, %s3323_s28  ;;  %v1371_v47 = vstv %s3041_s24  ;;  %v5951_v38 = vrot.slane %v5950_v57, 1  ;;  %s3060_s24 = sld [smem:[#allocation3 + $0x47]] }
 0x208   : > { %v1372_v20 = vmul.f32 %v1371_v47, %v3632_v3 }
 0x209   : > { %v4393_v12 = vpop.permute.xlu1 %1050  ;;  %v4395_v25 = vpop.permute.xlu0 %885  ;;  %v1305_v6 = vsel %vm639_vm9, %v1303_v21, %v5951_v38 }
 0x20a   : > { %5942 = vst [vmem:[#allocation20_spill] sm:$0xff] %v4393_v12  ;;  %5943 = vst [vmem:[#allocation16_spill] sm:$0xff] %v4395_v25  ;;  %v1378_v21 = vrot.slane %v1372_v20, 5  ;;  %v1463_v20 = vstv %s3045_s22  ;;  %s3061_s22 = sld [smem:[#allocation3 + $0x4e]] }
 0x20b   : > { %1264 = vrot.lane.b32.xlu0 %v5944_v14, %s3327_s29  ;;  %1289 = vrot.lane.b32.xlu1 %v1286_v62, %s3327_s29  ;;  %v5952_v62 = vrot.slane %v4082_v9, 1  ;;  %v1373_v14 = vmul.f32 %v1371_v47, %v3677_v19  ;;  %v1374_v9 = vmul.f32 %v1371_v47, %v3698_v28 }
 0x20d   : > { %v4405_v42 = vpop.permute.xlu1 %1100  ;;  %v4407_v55 = vpop.permute.xlu0 %953  ;;  %v1330_v11 = vsel %vm639_vm9, %v1328_v45, %v5952_v62  ;;  %v1379_v48 = vrot.slane %v1373_v14, 5  ;;  %v1393_v45 = vmul.f32 %v4088_v34, %v3632_v3 }
 0x20e   : > { %5947 = vst [vmem:[#allocation18_spill] sm:$0xff] %v4407_v55 }
 0x20f   : > { %1287 = vrot.lane.b32.xlu0 %v1284_v35, %s3327_s29  ;;  %1310 = vrot.lane.b32.xlu1 %v4098_v43, %s3327_s29  ;;  %v5953_v43 = vld [vmem:[#allocation24_spill] sm:$0xff]  ;;  %v1380_v62 = vsel %vm615_vm8, %v1378_v21, %v1379_v48  ;;  %v1465_v21 = vmul.f32 %v1463_v20, %v3677_v19 }
 0x210   : > { %v1347_v50 = vmul.f32 %v5953_v43, %v3632_v3  ;;  %v5960_v43 = vrot.slane %v4116_v30, 5  ;;  %v1466_v30 = vmul.f32 %v1463_v20, %v3698_v28  ;;  %v1785_v5 = vstv %s3061_s22  ;;  %s3070_s22 = sld [smem:[#allocation3 + $0x5d]] }
 0x211   : > { %v4413_v33 = vpop.permute.xlu1 %1220  ;;  %v4415_v24 = vpop.permute.xlu0 %1075 }
 0x212   : > { %5948 = vst [vmem:[#allocation25_spill] sm:$0xff] %v4413_v33  ;;  %5949 = vst [vmem:[#allocation26_spill] sm:$0xff] %v4415_v24  ;;  %v1353_v35 = vrot.slane %v1347_v50, 1  ;;  %v1441_v50 = vmul.f32 %v3732_v39, %v3698_v28  ;;  %v1464_v39 = vmul.f32 %v1463_v20, %v3632_v3 }
 0x213   : > { %1308 = vrot.lane.b32.xlu0 %v1305_v6, %s3327_s29  ;;  %1333 = vrot.lane.b32.xlu1 %v1330_v11, %s3327_s29  ;;  %v5957_v6 = vrot.slane %v4086_v59, 1 }
 0x215   : > { %v4429_v60 = vpop.permute.xlu1 %1266  ;;  %v4431_v1 = vpop.permute.xlu0 %1245  ;;  %v1355_v47 = vsel %vm639_vm9, %v1353_v35, %v5957_v6 }
 0x216   : > { %5954 = vst [vmem:[#allocation22_spill] sm:$0xff] %v4431_v1 }
 0x217   : > { %1335 = vrot.lane.b32.xlu0 %v4107_v40, %s3327_s29  ;;  %1360 = vrot.lane.b32.xlu1 %v4112_v36, %s3327_s29  ;;  %v1381_v40 = vrot.slane %v1374_v9, 5  ;;  %v1399_v36 = vrot.slane %v1393_v45, 5 }
 0x219   : > { %v4440_v57 = vpop.permute.xlu1 %1337  ;;  %v4442_v38 = vpop.permute.xlu0 %1312  ;;  %v1382_v14 = vsel %vm615_vm8, %v1379_v48, %v1381_v40  ;;  %v1401_v59 = vsel %vm615_vm8, %v1399_v36, %v5960_v43  ;;  %v1448_v48 = vrot.slane %v1441_v50, 6  ;;  %v5964_v40 = vrot.slane %v4130_v13, 6 }
 0x21a   : > { %5955 = vst [vmem:[#allocation21_spill] sm:$0xff] %v4440_v57  ;;  %5956 = vst [vmem:[#allocation23_spill] sm:$0xff] %v4442_v38 }
 0x21b   : > { %1358 = vrot.lane.b32.xlu0 %v1355_v47, %s3327_s29  ;;  %1383 = vrot.lane.b32.xlu1 %v1380_v62, %s3327_s29  ;;  %v1471_v47 = vrot.slane %v1465_v21, 2  ;;  %v1484_v62 = vstv %s3046_s17  ;;  %v1449_v36 = vsel %vm780_vm4, %v5964_v40, %v1448_v48  ;;  %v1509_v21 = vstv %s3047_s26  ;;  %s3062_s17 = sld [smem:[#allocation3 + $0x55]]  ;;  %s3063_s26 = sld [smem:[#allocation3 + $0x5c]] }
 0x21c   : > { %v1486_v43 = vmul.f32 %v1484_v62, %v3677_v19  ;;  %v1511_v51 = vmul.f32 %v1509_v21, %v3677_v19 }
 0x21d   : > { %v4450_v11 = vpop.permute.xlu1 %1408  ;;  %v4452_v34 = vpop.permute.xlu0 %1362 }
 0x21e   : > { %5958 = vst [vmem:[#allocation27_spill] sm:$0xff] %v4450_v11  ;;  %5959 = vst [vmem:[#allocation24_spill] sm:$0xff] %v4452_v34  ;;  %v1765_v11 = vstv %s3060_s24  ;;  %s3072_s24 = sld [smem:[#allocation3 + $0x3b]] }
 0x21f   : > { %1385 = vrot.lane.b32.xlu0 %v1382_v14, %s3327_s29  ;;  %1404 = vrot.lane.b32.xlu1 %v1401_v59, %s3327_s29  ;;  %v1473_v14 = vrot.slane %v1466_v30, 2  ;;  %v1485_v59 = vmul.f32 %v1484_v62, %v3632_v3  ;;  %v1492_v30 = vrot.slane %v1486_v43, 2  ;;  %v4495_v3 = vld [vmem:[#allocation2] sm:$0xff]  ;;  %v1517_v43 = vrot.slane %v1511_v51, 2 }
 0x221   : > { %v4462_v9 = vpop.permute.xlu0 %1429  ;;  %v4464_v35 = vpop.permute.xlu1 %621  ;;  %v1474_v48 = vsel %vm829_vm5, %v1471_v47, %v1473_v14  ;;  %v1806_v33 = vstv %s3062_s17  ;;  %s3076_s17 = sld [smem:[#allocation3 + $0x57]] }
 0x222   : > { %5961 = vst [vmem:[#allocation42_spill] sm:$0xff] %v4462_v9 }
 0x223   : > { %1406 = vrot.lane.b32.xlu0 %v4135_v2, %s3327_s29  ;;  %1427 = vrot.lane.b32.xlu1 %v4121_v52, %s3328_s15  ;;  %v1487_v2 = vmul.f32 %v1484_v62, %v3698_v28  ;;  %v1470_v52 = vrot.slane %v1464_v39, 2  ;;  %v1510_v39 = vmul.f32 %v4495_v3, %v1509_v21 }
 0x225   : > { %v4473_v45 = vpop.permute.xlu0 %647  ;;  %v4475_v6 = vpop.permute.xlu1 %645  ;;  %v1472_v13 = vsel %vm829_vm5, %v1470_v52, %v1471_v47  ;;  %v1494_v40 = vrot.slane %v1487_v2, 2  ;;  %v1512_v2 = vmul.f32 %v1509_v21, %v3698_v28  ;;  %v1516_v52 = vrot.slane %v1510_v39, 2 }
 0x226   : > { %5962 = vst [vmem:[#allocation43_spill] sm:$0xff] %v4473_v45  ;;  %5963 = vst [vmem:[#allocation44_spill] sm:$0xff] %v4475_v6 }
 0x227   : > { %1452 = vrot.lane.b32.xlu0 %v4145_v44, %s3328_s15  ;;  %1454 = vrot.lane.b32.xlu1 %v1449_v36, %s3328_s15  ;;  %v1491_v44 = vrot.slane %v1485_v59, 2  ;;  %v1495_v14 = vsel %vm829_vm5, %v1492_v30, %v1494_v40  ;;  %v1518_v41 = vsel %vm829_vm5, %v1516_v52, %v1517_v43  ;;  %v1519_v9 = vrot.slane %v1512_v2, 2  ;;  %v4522_v2 = vld [vmem:[#allocation2 + $0x8] sm:$0xff] }
 0x229   : > { %v4486_v50 = vpop.permute.xlu0 %668  ;;  %v4488_v20 = vpop.permute.xlu1 %666  ;;  %v1493_v47 = vsel %vm829_vm5, %v1491_v44, %v1492_v30 }
 0x22a   : > { %5965 = vst [vmem:[#allocation45_spill] sm:$0xff] %v4486_v50  ;;  %5966 = vst [vmem:[#allocation46_spill] sm:$0xff] %v4488_v20 }
 0x22b   : > { %1475 = vrot.lane.b32.xlu0 %v1472_v13, %s3328_s15  ;;  %1477 = vrot.lane.b32.xlu1 %v1474_v48, %s3328_s15  ;;  %v1534_v48 = vstv %s3048_s7  ;;  %s3064_s7 = sld [smem:[#allocation3 + $0x33]] }
 0x22c   : > { %v1536_v44 = vmul.f32 %v1534_v48, %v3677_v19  ;;  %v1537_v30 = vmul.f32 %v1534_v48, %v3698_v28  ;;  %v1535_v51 = vmul.f32 %v4495_v3, %v1534_v48 }
 0x22d   : > { %v4498_v62 = vpop.permute.xlu0 %691  ;;  %v4500_v36 = vpop.permute.xlu1 %693 }
 0x22e   : > { %5967 = vst [vmem:[#allocation47_spill] sm:$0xff] %v4498_v62  ;;  %5968 = vst [vmem:[#allocation48_spill] sm:$0xff] %v4500_v36  ;;  %v1542_v57 = vrot.slane %v1536_v44, 2  ;;  %v1544_v52 = vrot.slane %v1537_v30, 2  ;;  %v1541_v28 = vrot.slane %v1535_v51, 2 }
 0x22f   : > { %1496 = vrot.lane.b32.xlu0 %v1493_v47, %s3328_s15  ;;  %1498 = vrot.lane.b32.xlu1 %v1495_v14, %s3328_s15  ;;  %v1559_v47 = vstv %s3049_s20  ;;  %v1520_v14 = vsel %vm829_vm5, %v1517_v43, %v1519_v9  ;;  %s3065_s20 = sld [smem:[#allocation3 + $0x3a]] }
 0x230   : > { %v1561_v19 = vmul.f32 %v4522_v2, %v1559_v47  ;;  %v1543_v43 = vsel %vm829_vm5, %v1541_v28, %v1542_v57  ;;  %v1545_v44 = vsel %vm829_vm5, %v1542_v57, %v1544_v52  ;;  %v1562_v1 = vmul.f32 %v4536_v56, %v1559_v47 }
 0x231   : > { %v4507_v59 = vpop.permute.xlu0 %718  ;;  %v4509_v13 = vpop.permute.xlu1 %716 }
 0x232   : > { %v1567_v30 = vrot.slane %v1561_v19, 6  ;;  %v1569_v57 = vrot.slane %v1562_v1, 6  ;;  %v1711_v19 = vstv %s4525_s14  ;;  %s3066_s14 = sld [smem:[#allocation3 + $0x41]] }
 0x233   : > { %1500 = vrot.lane.b32.xlu0 %v1494_v40, %s3328_s15  ;;  %1521 = vrot.lane.b32.xlu1 %v1518_v41, %s3328_s15  ;;  %v1560_v41 = vmul.f32 %v4495_v3, %v1559_v47 }
 0x234   : > { %v1570_v15 = vsel %vm780_vm4, %v1567_v30, %v1569_v57 }
 0x235   : > { %v4517_v21 = vpop.permute.xlu0 %741  ;;  %v4519_v39 = vpop.permute.xlu1 %743 }
 0x236   : > { %5969 = vst [vmem:[#allocation49_spill] sm:$0xff] %v4517_v21  ;;  %5970 = vst [vmem:[#allocation50_spill] sm:$0xff] %v4519_v39  ;;  %v4545_v21 = vld [vmem:[#allocation2 + $0x18] sm:$0xff]  ;;  %v1725_v39 = vstv %s3058_s21  ;;  %s3067_s21 = sld [smem:[#allocation3 + $0x48]] }
 0x237   : > { %1523 = vrot.lane.b32.xlu0 %v1520_v14, %s3328_s15  ;;  %1525 = vrot.lane.b32.xlu1 %v1519_v9, %s3328_s15  ;;  %v1566_v9 = vrot.slane %v1560_v41, 6  ;;  %v1712_v41 = vmul.f32 %v1711_v19, %v4545_v21  ;;  %v1766_v8 = vmul.f32 %v1765_v11, %v4545_v21  ;;  %v1786_v45 = vmul.f32 %v1785_v5, %v4545_v21 }
 0x239   : > { %v4530_v40 = vpop.permute.xlu0 %762  ;;  %v4532_v48 = vpop.permute.xlu1 %764  ;;  %v1568_v28 = vsel %vm780_vm4, %v1566_v9, %v1567_v30  ;;  %v4569_v30 = vld [vmem:[#allocation2 + $0x28] sm:$0x3f]  ;;  %v1792_v0 = vrot.slane %v1786_v45, 4 }
 0x23a   : > { %5971 = vst [vmem:[#allocation51_spill] sm:$0xff] %v4530_v40  ;;  %5972 = vst [vmem:[#allocation52_spill] sm:$0xff] %v4532_v48  ;;  %v1788_v24 = vmul.f32 %v1785_v5, %v4569_v30 }
 0x23b   : > { %1546 = vrot.lane.b32.xlu0 %v1543_v43, %s3328_s15  ;;  %1548 = vrot.lane.b32.xlu1 %v1545_v44, %s3328_s15  ;;  %v4556_v44 = vld [vmem:[#allocation2 + $0x20] sm:$0xff] }
 0x23c   : > { %v1713_v9 = vmul.f32 %v1711_v19, %v4556_v44  ;;  %v1787_v38 = vmul.f32 %v1785_v5, %v4556_v44  ;;  %v1795_v4 = vrot.slane %v1788_v24, 4  ;;  %v1808_v5 = vmul.f32 %v1806_v33, %v4556_v44 }
 0x23d   : > { %v4541_v51 = vpop.permute.xlu0 %786  ;;  %v4543_v14 = vpop.permute.xlu1 %811 }
 0x23e   : > { %5973 = vst [vmem:[#allocation53_spill] sm:$0xff] %v4541_v51  ;;  %v1831_v51 = vstv %s3063_s26  ;;  %v1793_v37 = vrot.slane %v1787_v38, 4  ;;  %s3071_s26 = sld [smem:[#allocation3 + $0x34]] }
 0x23f   : > { %1550 = vrot.lane.b32.xlu0 %v1544_v52, %s3328_s15  ;;  %1571 = vrot.lane.b32.xlu1 %v1568_v28, %s3328_s15  ;;  %v1726_v28 = vmul.f32 %v1725_v39, %v4545_v21  ;;  %v1832_v45 = vmul.f32 %v1831_v51, %v4545_v21  ;;  %v1833_v7 = vmul.f32 %v1831_v51, %v4556_v44 }
 0x240   : > { %v1794_v24 = vsel %vm184_vm0, %v1792_v0, %v1793_v37  ;;  %v1796_v38 = vsel %vm184_vm0, %v1793_v37, %v1795_v4  ;;  %v1856_v4 = vstv %s3064_s7  ;;  %s3074_s7 = sld [smem:[#allocation3 + $0x49]] }
 0x241   : > { %v4551_v47 = vpop.permute.xlu0 %813  ;;  %v4553_v43 = vpop.permute.xlu1 %835  ;;  %v1838_v0 = vrot.slane %v1832_v45, 4  ;;  %v1839_v36 = vrot.slane %v1833_v7, 4 }
 0x242   : > { %5974 = vst [vmem:[#allocation54_spill] sm:$0xff] %v4553_v43  ;;  %v1728_v43 = vmul.f32 %v1725_v39, %v4569_v30 }
 0x243   : > { %1573 = vrot.lane.b32.xlu0 %v1570_v15, %s3328_s15  ;;  %1716 = vrot.lane.b32.xlu1 %v1712_v41, %s3326_s8  ;;  %v1727_v41 = vmul.f32 %v1725_v39, %v4556_v44 }
 0x245   : > { %v4561_v1 = vpop.permute.xlu0 %837  ;;  %v4563_v52 = vpop.permute.xlu1 %856 }
 0x246   : > { %5975 = vst [vmem:[#allocation55_spill] sm:$0xff] %v4561_v1  ;;  %5976 = vst [vmem:[#allocation56_spill] sm:$0xff] %v4563_v52  ;;  %v1745_v1 = vstv %s3059_s3  ;;  %s3069_s3 = sld [smem:[#allocation3 + $0x56]] }
 0x247   : > { %1718 = vrot.lane.b32.xlu0 %v1713_v9, %s3326_s8  ;;  %1732 = vrot.lane.b32.xlu1 %v1726_v28, %s3326_s8  ;;  %v1746_v28 = vmul.f32 %v1745_v1, %v4545_v21  ;;  %v1747_v6 = vmul.f32 %v1745_v1, %v4556_v44 }
 0x249   : > { %v4571_v57 = vpop.permute.xlu0 %858  ;;  %v4573_v15 = vpop.permute.xlu1 %883 }
 0x24a   : > { %5977 = vst [vmem:[#allocation57_spill] sm:$0xff] %v4571_v57  ;;  %5978 = vst [vmem:[#allocation58_spill] sm:$0xff] %v4573_v15  ;;  %v1807_v15 = vmul.f32 %v1806_v33, %v4545_v21 }
 0x24b   : > { %1734 = vrot.lane.b32.xlu0 %v1727_v41, %s3326_s8  ;;  %1736 = vrot.lane.b32.xlu1 %v1728_v43, %s3326_s8  ;;  %v1748_v43 = vmul.f32 %v1745_v1, %v4569_v30  ;;  %v1768_v1 = vmul.f32 %v1765_v11, %v4569_v30 }
 0x24d   : > { %v4579_v19 = vpop.permute.xlu0 %881  ;;  %v4581_v9 = vpop.permute.xlu1 %906 }
 0x24e   : > { %5979 = vst [vmem:[#allocation59_spill] sm:$0xff] %v4579_v19  ;;  %v1814_v19 = vrot.slane %v1808_v5, 4 }
 0x24f   : > { %1752 = vrot.lane.b32.xlu0 %v1746_v28, %s3326_s8  ;;  %1754 = vrot.lane.b32.xlu1 %v1747_v6, %s3326_s8  ;;  %v1767_v6 = vmul.f32 %v1765_v11, %v4556_v44  ;;  %v1813_v11 = vrot.slane %v1807_v15, 4  ;;  %v1834_v15 = vmul.f32 %v1831_v51, %v4569_v30  ;;  %v1857_v51 = vmul.f32 %v1856_v4, %v4545_v21 }
 0x251   : > { %v4587_v39 = vpop.permute.xlu0 %908  ;;  %v4589_v41 = vpop.permute.xlu1 %933 }
 0x252   : > { %5980 = vst [vmem:[#allocation60_spill] sm:$0xff] %v4589_v41 }
 0x253   : > { %1756 = vrot.lane.b32.xlu0 %v1748_v43, %s3326_s8  ;;  %1772 = vrot.lane.b32.xlu1 %v1766_v8, %s3326_s8  ;;  %v1809_v43 = vmul.f32 %v1806_v33, %v4569_v30 }
 0x255   : > { %v4599_v28 = vpop.permute.xlu0 %931  ;;  %v4601_v41 = vpop.permute.xlu1 %951  ;;  %v1816_v33 = vrot.slane %v1809_v43, 4  ;;  %v1841_v43 = vrot.slane %v1834_v15, 4 }
 0x256   : > { %5981 = vst [vmem:[#allocation61_spill] sm:$0xff] %v4599_v28  ;;  %5982 = vst [vmem:[#allocation62_spill] sm:$0xff] %v4601_v41 }
 0x257   : > { %1774 = vrot.lane.b32.xlu0 %v1767_v6, %s3326_s8  ;;  %1776 = vrot.lane.b32.xlu1 %v1768_v1, %s3326_s8  ;;  %v1842_v45 = vsel %vm184_vm0, %v1839_v36, %v1841_v43 }
 0x259   : > { %v4609_v8 = vpop.permute.xlu0 %976  ;;  %v4611_v28 = vpop.permute.xlu1 %978 }
 0x25a   : > { %5983 = vst [vmem:[#allocation63_spill] sm:$0xff] %v4609_v8  ;;  %5984 = vst [vmem:[#allocation64_spill] sm:$0xff] %v4611_v28  ;;  %v1815_v8 = vsel %vm184_vm0, %v1813_v11, %v1814_v19  ;;  %v1817_v28 = vsel %vm184_vm0, %v1814_v19, %v1816_v33  ;;  %v1858_v11 = vmul.f32 %v1856_v4, %v4556_v44  ;;  %v1877_v19 = vstv %s3065_s20  ;;  %s3080_s20 = sld [smem:[#allocation3 + $0x43]] }
 0x25b   : > { %1797 = vrot.lane.b32.xlu0 %v1794_v24, %s3326_s8  ;;  %1799 = vrot.lane.b32.xlu1 %v1796_v38, %s3326_s8  ;;  %v1840_v24 = vsel %vm184_vm0, %v1838_v0, %v1839_v36  ;;  %v1861_v38 = vrot.slane %v1857_v51, 5  ;;  %v1879_v0 = vmul.f32 %v1877_v19, %v4556_v44 }
 0x25c   : > { %v1862_v15 = vrot.slane %v1858_v11, 5 }
 0x25d   : > { %v4619_v6 = vpop.permute.xlu0 %1003  ;;  %v4621_v1 = vpop.permute.xlu1 %1001  ;;  %v1885_v12 = vrot.slane %v1879_v0, 1 }
 0x25e   : > { %v1863_v10 = vsel %vm615_vm8, %v1861_v38, %v1862_v15 }
 0x25f   : > { %1818 = vrot.lane.b32.xlu0 %v1815_v8, %s3326_s8  ;;  %1820 = vrot.lane.b32.xlu1 %v1817_v28, %s3326_s8  ;;  %v1878_v8 = vmul.f32 %v1877_v19, %v4545_v21 }
 0x261   : > { %v4628_v37 = vpop.permute.xlu0 %1027  ;;  %v4630_v5 = vpop.permute.xlu1 %1025 }
 0x262   : > { %5985 = vst [vmem:[#allocation65_spill] sm:$0xff] %v4628_v37  ;;  %5986 = vst [vmem:[#allocation66_spill] sm:$0xff] %v4630_v5  ;;  %v1884_v5 = vrot.slane %v1878_v8, 1  ;;  %v1880_v37 = vmul.f32 %v1877_v19, %v4569_v30  ;;  %v1923_v8 = vstv %s3067_s21  ;;  %s3006_s21 = sld [smem:[#allocation3 + $0x23]] }
 0x263   : > { %1822 = vrot.lane.b32.xlu0 %v1816_v33, %s3326_s8  ;;  %1843 = vrot.lane.b32.xlu1 %v1840_v24, %s3326_s8  ;;  %v1898_v33 = vstv %s3066_s14  ;;  %s4784_s14 = sld [smem:[#allocation3 + $0x35]] }
 0x264   : > { %v1899_v36 = vmul.f32 %v1898_v33, %v4545_v21  ;;  %v1900_v51 = vmul.f32 %v1898_v33, %v4556_v44  ;;  %v1886_v19 = vsel %vm639_vm9, %v1884_v5, %v1885_v12  ;;  %v1901_v0 = vmul.f32 %v1898_v33, %v4569_v30 }
 0x265   : > { %v4637_v7 = vpop.permute.xlu0 %1048  ;;  %v4639_v28 = vpop.permute.xlu1 %1046  ;;  %v1926_v33 = vmul.f32 %v1923_v8, %v4569_v30 }
 0x266   : > { %5987 = vst [vmem:[#allocation67_spill] sm:$0xff] %v4637_v7  ;;  %5988 = vst [vmem:[#allocation68_spill] sm:$0xff] %v4639_v28  ;;  %v1924_v28 = vmul.f32 %v1923_v8, %v4545_v21  ;;  %v1925_v7 = vmul.f32 %v1923_v8, %v4556_v44 }
 0x267   : > { %1845 = vrot.lane.b32.xlu0 %v1842_v45, %s3326_s8  ;;  %1847 = vrot.lane.b32.xlu1 %v1841_v43, %s3326_s8  ;;  %s3068_s8 = sld [smem:[#allocation3 + $0x4f]]  ;;  %v1887_v45 = vrot.slane %v1880_v37, 1  ;;  %v1933_v46 = vrot.slane %v1926_v33, 1 }
 0x269   : > { %v4646_v4 = vpop.permute.xlu0 %1071  ;;  %v4648_v24 = vpop.permute.xlu1 %1073  ;;  %v1888_v37 = vsel %vm639_vm9, %v1885_v12, %v1887_v45 }
 0x26a   : > { %5989 = vst [vmem:[#allocation69_spill] sm:$0xff] %v4646_v4  ;;  %5990 = vst [vmem:[#allocation70_spill] sm:$0xff] %v4648_v24  ;;  %v1905_v24 = vrot.slane %v1899_v36, 1  ;;  %v1906_v4 = vrot.slane %v1900_v51, 1  ;;  %v1908_v36 = vrot.slane %v1901_v0, 1 }
 0x26b   : > { %1864 = vrot.lane.b32.xlu0 %v1861_v38, %s3324_s30  ;;  %1866 = vrot.lane.b32.xlu1 %v1863_v10, %s3324_s30 }
 0x26c   : > { %v1907_v5 = vsel %vm639_vm9, %v1905_v24, %v1906_v4  ;;  %v1909_v25 = vsel %vm639_vm9, %v1906_v4, %v1908_v36 }
 0x26d   : > { %v4656_v43 = vpop.permute.xlu0 %1098  ;;  %v4658_v11 = vpop.permute.xlu1 %1096 }
 0x26f   : > { %1868 = vrot.lane.b32.xlu0 %v1862_v15, %s3324_s30  ;;  %1889 = vrot.lane.b32.xlu1 %v1886_v19, %s3324_s30  ;;  %v1948_v15 = vstv %s3068_s8  ;;  %s3007_s8 = sld [smem:[#allocation3 + $0x2a]] }
 0x270   : > { %v1949_v12 = vmul.f32 %v1948_v15, %v4545_v21  ;;  %v1950_v24 = vmul.f32 %v1948_v15, %v4556_v44 }
 0x271   : > { %v4664_v38 = vpop.permute.xlu0 %1197  ;;  %v4666_v10 = vpop.permute.xlu1 %1195 }
 0x272   : > { %5991 = vst [vmem:[#allocation71_spill] sm:$0xff] %v4664_v38  ;;  %5992 = vst [vmem:[#allocation72_spill] sm:$0xff] %v4666_v10  ;;  %v1930_v10 = vrot.slane %v1924_v28, 1  ;;  %v1931_v38 = vrot.slane %v1925_v7, 1  ;;  %v1973_v28 = vstv %s3069_s3  ;;  %v1955_v4 = vrot.slane %v1949_v12, 1  ;;  %s3005_s3 = sld [smem:[#allocation3 + $0x1c]] }
 0x273   : > { %1891 = vrot.lane.b32.xlu0 %v1888_v37, %s3324_s30  ;;  %1910 = vrot.lane.b32.xlu1 %v1907_v5, %s3324_s30  ;;  %v1956_v37 = vrot.slane %v1950_v24, 1  ;;  %v1951_v5 = vmul.f32 %v1948_v15, %v4569_v30  ;;  %v1974_v33 = vmul.f32 %v1973_v28, %v4545_v21  ;;  %v1976_v12 = vmul.f32 %v1973_v28, %v4569_v30 }
 0x274   : > { %v1932_v0 = vsel %vm639_vm9, %v1930_v10, %v1931_v38  ;;  %v1934_v7 = vsel %vm639_vm9, %v1931_v38, %v1933_v46  ;;  %v1975_v10 = vmul.f32 %v1973_v28, %v4556_v44  ;;  %v2040_v24 = vstv %s3072_s24  ;;  %s3073_s24 = sld [smem:[#allocation3 + $0x42]] }
 0x275   : > { %v4675_v51 = vpop.permute.xlu0 %1218  ;;  %v4677_v19 = vpop.permute.xlu1 %1216  ;;  %v1958_v38 = vrot.slane %v1951_v5, 1 }
 0x276   : > { %5993 = vst [vmem:[#allocation73_spill] sm:$0xff] %v4675_v51  ;;  %5994 = vst [vmem:[#allocation74_spill] sm:$0xff] %v4677_v19  ;;  %v1983_v51 = vrot.slane %v1976_v12, 5 }
 0x277   : > { %1912 = vrot.lane.b32.xlu0 %v1909_v25, %s3324_s30  ;;  %1914 = vrot.lane.b32.xlu1 %v1908_v36, %s3324_s30  ;;  %v1959_v19 = vsel %vm639_vm9, %v1956_v37, %v1958_v38 }
 0x279   : > { %v4684_v45 = vpop.permute.xlu0 %1241  ;;  %v4686_v8 = vpop.permute.xlu1 %1243 }
 0x27a   : > { %5995 = vst [vmem:[#allocation75_spill] sm:$0xff] %v4684_v45  ;;  %5996 = vst [vmem:[#allocation76_spill] sm:$0xff] %v4686_v8  ;;  %v1957_v8 = vsel %vm639_vm9, %v1955_v4, %v1956_v37  ;;  %v2041_v45 = vmul.f32 %v2040_v24, %v4545_v21  ;;  %v2042_v4 = vmul.f32 %v2040_v24, %v4556_v44 }
 0x27b   : > { %1935 = vrot.lane.b32.xlu0 %v1932_v0, %s3324_s30  ;;  %1937 = vrot.lane.b32.xlu1 %v1934_v7, %s3324_s30  ;;  %v1980_v7 = vrot.slane %v1974_v33, 5 }
 0x27c   : > { %v2047_v33 = vrot.slane %v2041_v45, 6  ;;  %v2048_v12 = vrot.slane %v2042_v4, 6 }
 0x27d   : > { %v4693_v25 = vpop.permute.xlu0 %1264  ;;  %v4695_v36 = vpop.permute.xlu1 %1289 }
 0x27e   : > { %5997 = vst [vmem:[#allocation77_spill] sm:$0xff] %v4695_v36  ;;  %v1981_v36 = vrot.slane %v1975_v10, 5  ;;  %v2043_v10 = vmul.f32 %v2040_v24, %v4569_v30  ;;  %v2049_v24 = vsel %vm780_vm4, %v2047_v33, %v2048_v12 }
 0x27f   : > { %1939 = vrot.lane.b32.xlu0 %v1933_v46, %s3324_s30  ;;  %1960 = vrot.lane.b32.xlu1 %v1957_v8, %s3324_s30  ;;  %v1994_v46 = vstv %s3070_s22  ;;  %s3002_s22 = sld [smem:[#allocation3 + $0x7]] }
 0x280   : > { %v1982_v5 = vsel %vm615_vm8, %v1980_v7, %v1981_v36  ;;  %v1984_v37 = vsel %vm615_vm8, %v1981_v36, %v1983_v51  ;;  %v1997_v45 = vmul.f32 %v1994_v46, %v4569_v30  ;;  %v2136_v36 = vstv %s3076_s17  ;;  %s3084_s17 = sld [smem:[#allocation3 + $0x5f]] }
 0x281   : > { %v4703_v15 = vpop.permute.xlu0 %1287  ;;  %v4705_v0 = vpop.permute.xlu1 %1310 }
 0x282   : > { %5998 = vst [vmem:[#allocation78_spill] sm:$0xff] %v4703_v15  ;;  %5999 = vst [vmem:[#allocation79_spill] sm:$0xff] %v4705_v0  ;;  %v1995_v15 = vmul.f32 %v1994_v46, %v4545_v21  ;;  %v1996_v0 = vmul.f32 %v1994_v46, %v4556_v44 }
 0x283   : > { %1962 = vrot.lane.b32.xlu0 %v1959_v19, %s3324_s30  ;;  %1964 = vrot.lane.b32.xlu1 %v1958_v38, %s3324_s30 }
 0x284   : > { %v2001_v7 = vrot.slane %v1995_v15, 5  ;;  %v2002_v51 = vrot.slane %v1996_v0, 5  ;;  %v2138_v15 = vmul.f32 %v2136_v36, %v4556_v44  ;;  %v2139_v0 = vmul.f32 %v2136_v36, %v4569_v30 }
 0x285   : > { %v4712_v8 = vpop.permute.xlu0 %1308  ;;  %v4714_v28 = vpop.permute.xlu1 %1333 }
 0x286   : > { %6000 = vst [vmem:[#allocation80_spill] sm:$0xff] %v4712_v8  ;;  %6001 = vst [vmem:[#allocation81_spill] sm:$0xff] %v4714_v28  ;;  %v2050_v28 = vrot.slane %v2043_v10, 6  ;;  %v2137_v10 = vmul.f32 %v2136_v36, %v4545_v21  ;;  %v2003_v46 = vsel %vm615_vm8, %v2001_v7, %v2002_v51  ;;  %v2146_v8 = vrot.slane %v2139_v0, 2 }
 0x287   : > { %1985 = vrot.lane.b32.xlu0 %v1982_v5, %s3324_s30  ;;  %1987 = vrot.lane.b32.xlu1 %v1984_v37, %s3324_s30  ;;  %v2019_v7 = vstv %s3071_s26  ;;  %s4804_s26 = sld [smem:[#allocation3 + $0x15]]  ;;  %v2324_v52 = vstv %s3084_s17 }
 0x288   : > { %v2051_v37 = vsel %vm780_vm4, %v2048_v12, %v2050_v28  ;;  %v2144_v12 = vrot.slane %v2138_v15, 2  ;;  %v2086_v15 = vstv %s3074_s7  ;;  %s4806_s7 = sld [smem:[#allocation3 + $0xe]]  ;;  %s4981_s17 = sld [smem:[#allocation3 + $0x4d]] }
 0x289   : > { %v4723_v19 = vpop.permute.xlu0 %1335  ;;  %v4725_v38 = vpop.permute.xlu1 %1360 }
 0x28a   : > { %6002 = vst [vmem:[#allocation82_spill] sm:$0xff] %v4723_v19  ;;  %v2004_v19 = vrot.slane %v1997_v45, 5 }
 0x28b   : > { %2052 = vrot.lane.b32.xlu0 %v2047_v33, %s3325_s4  ;;  %2054 = vrot.lane.b32.xlu1 %v2049_v24, %s3325_s4 }
 0x28c   : > { %v2005_v28 = vsel %vm615_vm8, %v2002_v51, %v2004_v19  ;;  %v2021_v51 = vmul.f32 %v2019_v7, %v4556_v44 }
 0x28d   : > { %v4731_v4 = vpop.permute.xlu0 %1358  ;;  %v4733_v5 = vpop.permute.xlu1 %1383  ;;  %v547_v48 = vstv %s4804_s26  ;;  %s4984_s26 = sld [smem:[#allocation3 + $0x54]] }
 0x28e   : > { %6003 = vst [vmem:[#allocation83_spill] sm:$0xff] %v4731_v4  ;;  %6004 = vst [vmem:[#allocation84_spill] sm:$0xff] %v4733_v5  ;;  %v2143_v5 = vrot.slane %v2137_v10, 2  ;;  %v2147_v10 = vsel %vm829_vm5, %v2144_v12, %v2146_v8 }
 0x28f   : > { %2056 = vrot.lane.b32.xlu0 %v2051_v37, %s3325_s4  ;;  %2006 = vrot.lane.b32.xlu1 %v2003_v46, %s3324_s30  ;;  %v2020_v37 = vmul.f32 %v2019_v7, %v4545_v21 }
 0x290   : > { %v2145_v46 = vsel %vm829_vm5, %v2143_v5, %v2144_v12  ;;  %v2089_v5 = vmul.f32 %v2086_v15, %v4569_v30 }
 0x291   : > { %v4742_v33 = vpop.permute.xlu0 %1385  ;;  %v4744_v24 = vpop.permute.xlu1 %1404 }
 0x292   : > { %6005 = vst [vmem:[#allocation85_spill] sm:$0xff] %v4742_v33  ;;  %6006 = vst [vmem:[#allocation86_spill] sm:$0xff] %v4744_v24  ;;  %v2025_v33 = vrot.slane %v2021_v51, 6  ;;  %v2096_v24 = vrot.slane %v2089_v5, 2 }
 0x293   : > { %2008 = vrot.lane.b32.xlu0 %v2005_v28, %s3324_s30  ;;  %2010 = vrot.lane.b32.xlu1 %v2004_v19, %s3324_s30  ;;  %v2024_v28 = vrot.slane %v2020_v37, 6  ;;  %s3075_s30 = sld [smem:[#allocation3 + $0x50]] }
 0x295   : > { %v4749_v45 = vpop.permute.xlu0 %1406  ;;  %v4751_v36 = vpop.permute.xlu1 %1427 }
 0x296   : > { %6007 = vst [vmem:[#allocation87_spill] sm:$0xff] %v4749_v45  ;;  %6008 = vst [vmem:[#allocation88_spill] sm:$0xff] %v4751_v36  ;;  %v2087_v36 = vmul.f32 %v2086_v15, %v4545_v21  ;;  %v2088_v45 = vmul.f32 %v2086_v15, %v4556_v44 }
 0x297   : > { %2148 = vrot.lane.b32.xlu0 %v2145_v46, %s3325_s4  ;;  %2150 = vrot.lane.b32.xlu1 %v2147_v10, %s3325_s4  ;;  %v2228_v46 = vstv %s3080_s20  ;;  %v2026_v10 = vsel %vm780_vm4, %v2024_v28, %v2025_v33  ;;  %s4823_s20 = sld [smem:[#allocation3]] }
 0x298   : > { %v2093_v37 = vrot.slane %v2087_v36, 2  ;;  %v2094_v51 = vrot.slane %v2088_v45, 2  ;;  %v2229_v22 = vmul.f32 %v2228_v46, %v4545_v21 }
 0x299   : > { %v4759_v0 = vpop.permute.xlu0 %1452  ;;  %v4761_v19 = vpop.permute.xlu1 %1454 }
 0x29a   : > { %6009 = vst [vmem:[#allocation89_spill] sm:$0xff] %v4759_v0  ;;  %6010 = vst [vmem:[#allocation90_spill] sm:$0xff] %v4761_v19  ;;  %v2095_v41 = vsel %vm829_vm5, %v2093_v37, %v2094_v51  ;;  %v2097_v36 = vsel %vm829_vm5, %v2094_v51, %v2096_v24  ;;  %v2235_v5 = vrot.slane %v2229_v22, 7 }
 0x29b   : > { %2152 = vrot.lane.b32.xlu0 %v2146_v8, %s3325_s4  ;;  %2027 = vrot.lane.b32.xlu1 %v2024_v28, %s3325_s4 }
 0x29d   : > { %v4768_v12 = vpop.permute.xlu0 %1475  ;;  %v4770_v7 = vpop.permute.xlu1 %1477 }
 0x29e   : > { %6011 = vst [vmem:[#allocation91_spill] sm:$0xff] %v4768_v12  ;;  %6012 = vst [vmem:[#allocation92_spill] sm:$0xff] %v4770_v7  ;;  %v2230_v12 = vmul.f32 %v2228_v46, %v4556_v44  ;;  %v2231_v7 = vmul.f32 %v2228_v46, %v4569_v30 }
 0x29f   : > { %2029 = vrot.lane.b32.xlu0 %v2026_v10, %s3325_s4  ;;  %2031 = vrot.lane.b32.xlu1 %v2025_v33, %s3325_s4  ;;  %v2111_v33 = vstv %s3075_s30  ;;  %s4844_s30 = sld [smem:[#allocation3 + $0x3c]] }
 0x2a0   : > { %v2236_v10 = vrot.slane %v2230_v12, 7  ;;  %v2112_v46 = vmul.f32 %v2111_v33, %v4545_v21  ;;  %v2113_v37 = vmul.f32 %v2111_v33, %v4556_v44  ;;  %v2114_v51 = vmul.f32 %v2111_v33, %v4569_v30 }
 0x2a1   : > { %v4775_v15 = vpop.permute.xlu0 %1496  ;;  %v4777_v8 = vpop.permute.xlu1 %1498 }
 0x2a2   : > { %6013 = vst [vmem:[#allocation93_spill] sm:$0xff] %v4775_v15  ;;  %6014 = vst [vmem:[#allocation94_spill] sm:$0xff] %v4777_v8  ;;  %v2238_v8 = vrot.slane %v2231_v7, 7  ;;  %v2237_v12 = vsel %vm945_vm6, %v2235_v5, %v2236_v10  ;;  %v2182_v15 = vstv %s4784_s14  ;;  %s4867_s14 = sld [smem:[#allocation3 + $0x31]] }
 0x2a3   : > { %2098 = vrot.lane.b32.xlu0 %v2095_v41, %s3325_s4  ;;  %2100 = vrot.lane.b32.xlu1 %v2097_v36, %s3325_s4  ;;  %v2118_v36 = vrot.slane %v2112_v46, 2  ;;  %v4816_v46 = vstv %s3007_s8  ;;  %s4895_s8 = sld [smem:[#allocation3 + $0x38]] }
 0x2a4   : > { %v2239_v7 = vsel %vm945_vm6, %v2236_v10, %v2238_v8  ;;  %v2184_v8 = vmul.f32 %v2182_v15, %v4556_v44  ;;  %v572_v10 = vstv %s3006_s21  ;;  %s4882_s21 = sld [smem:[#allocation3 + $0x51]] }
 0x2a5   : > { %v4788_v45 = vpop.permute.xlu0 %1500  ;;  %v4790_v28 = vpop.permute.xlu1 %1521 }
 0x2a6   : > { %6015 = vst [vmem:[#allocation95_spill] sm:$0xff] %v4788_v45  ;;  %6016 = vst [vmem:[#allocation96_spill] sm:$0xff] %v4790_v28  ;;  %v2119_v28 = vrot.slane %v2113_v37, 2  ;;  %v2121_v45 = vrot.slane %v2114_v51, 2  ;;  %v2188_v55 = vrot.slane %v2184_v8, 7 }
 0x2a7   : > { %2102 = vrot.lane.b32.xlu0 %v2096_v24, %s3325_s4  ;;  %2240 = vrot.lane.b32.xlu1 %v2235_v5, %s3323_s28  ;;  %v2183_v5 = vmul.f32 %v2182_v15, %v4545_v21  ;;  %v4829_v15 = vmul.f32 %v4536_v56, %v4816_v46 }
 0x2a8   : > { %v2120_v37 = vsel %vm829_vm5, %v2118_v36, %v2119_v28  ;;  %v2122_v51 = vsel %vm829_vm5, %v2119_v28, %v2121_v45  ;;  %v4834_v28 = vstv %s3002_s22  ;;  %s4979_s22 = sld [smem:[#allocation3 + $0x46]] }
 0x2a9   : > { %v4797_v41 = vpop.permute.xlu0 %1523  ;;  %v4799_v22 = vpop.permute.xlu1 %1525  ;;  %v534_v32 = vmul.f32 %v4536_v56, %v4834_v28 }
 0x2aa   : > { %6017 = vst [vmem:[#allocation97_spill] sm:$0xff] %v4797_v41  ;;  %6018 = vst [vmem:[#allocation98_spill] sm:$0xff] %v4799_v22  ;;  %v4821_v22 = vmul.f32 %v4536_v56, %v572_v10 }
 0x2ab   : > { %2242 = vrot.lane.b32.xlu0 %v2237_v12, %s3323_s28  ;;  %2244 = vrot.lane.b32.xlu1 %v2239_v7, %s3323_s28  ;;  %v555_v12 = vstv %s3005_s3  ;;  %v2065_v7 = vstv %s3073_s24  ;;  %s4907_s3 = sld [smem:[#allocation3 + $0x5e]]  ;;  %s4926_s24 = sld [smem:[#allocation3 + $0x3f]] }
 0x2ac   : > { %v4832_v36 = vmul.f32 %v4522_v2, %v555_v12  ;;  %v558_v41 = vmul.f32 %v4536_v56, %v555_v12  ;;  %v2067_v57 = vmul.f32 %v2065_v7, %v4556_v44  ;;  %v2068_v4 = vmul.f32 %v2065_v7, %v4569_v30 }
 0x2ad   : > { %v4810_v24 = vpop.permute.xlu0 %1546  ;;  %v4812_v33 = vpop.permute.xlu1 %1548 }
 0x2ae   : > { %6019 = vst [vmem:[#allocation99_spill] sm:$0xff] %v4810_v24  ;;  %6020 = vst [vmem:[#allocation100_spill] sm:$0xff] %v4812_v33  ;;  %v565_v49 = vrot.slane %v558_v41, 4  ;;  %v2326_v33 = vmul.f32 %v2324_v52, %v4556_v44  ;;  %v2073_v8 = vrot.slane %v2067_v57, 2  ;;  %v2075_v20 = vrot.slane %v2068_v4, 2 }
 0x2af   : > { %2123 = vrot.lane.b32.xlu0 %v2120_v37, %s3325_s4  ;;  %2125 = vrot.lane.b32.xlu1 %v2122_v51, %s3325_s4  ;;  %v2187_v37 = vrot.slane %v2183_v5, 7  ;;  %v2066_v51 = vmul.f32 %v2065_v7, %v4545_v21  ;;  %v563_v7 = vrot.slane %v4832_v36, 4  ;;  %v4870_v36 = vmul.f32 %v2324_v52, %v4569_v30 }
 0x2b0   : > { %v4873_v41 = vmul.f32 %v4495_v3, %v547_v48  ;;  %v6025_v57 = vrot.slane %v4821_v22, 4  ;;  %v6026_v4 = vrot.slane %v4829_v15, 4 }
 0x2b1   : > { %v4837_v24 = vpop.permute.xlu0 %1550  ;;  %v4839_v62 = vpop.permute.xlu1 %1571  ;;  %v2189_v50 = vsel %vm945_vm6, %v2187_v37, %v2188_v55  ;;  %v2072_v34 = vrot.slane %v2066_v51, 2 }
 0x2b2   : > { %6021 = vst [vmem:[#allocation101_spill] sm:$0xff] %v4837_v24  ;;  %6022 = vst [vmem:[#allocation102_spill] sm:$0xff] %v4839_v62  ;;  %v4851_v24 = vstv %s4806_s7  ;;  %v556_v62 = vmul.f32 %v4495_v3, %v555_v12  ;;  %v4876_v12 = vmul.f32 %v4536_v56, %v547_v48  ;;  %s4993_s7 = sld [smem:[#allocation3 + $0x4b]] }
 0x2b3   : > { %2127 = vrot.lane.b32.xlu0 %v2121_v45, %s3325_s4  ;;  %2190 = vrot.lane.b32.xlu1 %v2187_v37, %s3323_s28  ;;  %v542_v5 = vmul.f32 %v4536_v56, %v4851_v24  ;;  %v2325_v45 = vmul.f32 %v2324_v52, %v4545_v21  ;;  %v574_v37 = vmul.f32 %v4522_v2, %v572_v10 }
 0x2b4   : > { %v4886_v52 = vadd.f32 %v6025_v57, %v534_v32  ;;  %v4893_v56 = vmul.f32 %v4522_v2, %v547_v48  ;;  %v2332_v57 = vrot.slane %v2326_v33, 3  ;;  %v2074_v53 = vsel %vm829_vm5, %v2072_v34, %v2073_v8 }
 0x2b5   : > { %v4860_v40 = vpop.permute.xlu0 %1573  ;;  %v4862_v19 = vpop.permute.xlu1 %1716  ;;  %v4890_v51 = vadd.f32 %v6026_v4, %v542_v5  ;;  %v2331_v32 = vrot.slane %v2325_v45, 3  ;;  %v2076_v5 = vsel %vm829_vm5, %v2073_v8, %v2075_v20  ;;  %v2334_v48 = vrot.slane %v4870_v36, 3 }
 0x2b6   : > { %6023 = vst [vmem:[#allocation103_spill] sm:$0xff] %v4860_v40  ;;  %6024 = vst [vmem:[#allocation104_spill] sm:$0xff] %v4862_v19  ;;  %v525_v19 = vstv %s4823_s20  ;;  %v562_v40 = vrot.slane %v556_v62, 4  ;;  %v2203_v4 = vstv %s4844_s30  ;;  %v532_v20 = vmul.f32 %v4495_v3, %v4834_v28  ;;  %s4997_s20 = sld [smem:[#allocation3 + $0x58]]  ;;  %s5016_s30 = sld [smem:[#allocation3 + $0x5b]] }
 0x2b7   : > { %2192 = vrot.lane.b32.xlu0 %v2189_v50, %s3323_s28  ;;  %2194 = vrot.lane.b32.xlu1 %v2188_v55, %s3323_s28  ;;  %v566_v50 = vsel %vm184_vm0, %v563_v7, %v565_v49  ;;  %v573_v55 = vmul.f32 %v4495_v3, %v572_v10  ;;  %v527_v62 = vmul.f32 %v4522_v2, %v525_v19 }
 0x2b8   : > { %v526_v49 = vmul.f32 %v4495_v3, %v525_v19  ;;  %v533_v10 = vmul.f32 %v4522_v2, %v4834_v28  ;;  %v564_v34 = vsel %vm184_vm0, %v562_v40, %v563_v7  ;;  %v4920_v33 = vmul.f32 %v4522_v2, %v4816_v46 }
 0x2b9   : > { %v4899_v29 = vpop.permute.xlu0 %1718  ;;  %v4901_v0 = vpop.permute.xlu1 %1732  ;;  %v592_v19 = vmul.f32 %v4495_v3, %v4816_v46  ;;  %v4924_v8 = vadd.f32 %v566_v50, %v527_v62  ;;  %v2204_v40 = vmul.f32 %v2203_v4, %v4545_v21  ;;  %v2205_v28 = vmul.f32 %v2203_v4, %v4556_v44 }
 0x2ba   : > { %6027 = vst [vmem:[#allocation105_spill] sm:$0xff] %v4899_v29  ;;  %6028 = vst [vmem:[#allocation106_spill] sm:$0xff] %v4901_v0  ;;  %v580_v29 = vrot.slane %v574_v37, 4  ;;  %v2206_v7 = vmul.f32 %v2203_v4, %v4569_v30  ;;  %v579_v36 = vrot.slane %v573_v55, 4  ;;  %v1584_v37 = vstv %s4867_s14  ;;  %s5078_s14 = sld [smem:[#allocation3 + $0x4a]] }
 0x2bb   : > { %2077 = vrot.lane.b32.xlu0 %v2074_v53, %s3325_s4  ;;  %2079 = vrot.lane.b32.xlu1 %v2076_v5, %s3325_s4  ;;  %6029 = vst [vmem:[#allocation107_spill] sm:$0xff] %v4924_v8  ;;  %v2333_v46 = vsel %vm1019_vm7, %v2331_v32, %v2332_v57  ;;  %v2335_v50 = vsel %vm1019_vm7, %v2332_v57, %v2334_v48  ;;  %v6033_v62 = vrot.slane %v4821_v22, 4  ;;  %v2274_v55 = vstv %s4882_s21  ;;  %s5097_s21 = sld [smem:[#allocation3 + $0x3d]] }
 0x2bc   : > { %v4938_v5 = vadd.f32 %v564_v34, %v526_v49  ;;  %v581_v4 = vsel %vm184_vm0, %v579_v36, %v580_v29  ;;  %v599_v32 = vrot.slane %v4920_v33, 4  ;;  %v598_v57 = vrot.slane %v592_v19, 4 }
 0x2bd   : > { %v4928_v53 = vpop.permute.xlu0 %1734  ;;  %v4930_v45 = vpop.permute.xlu1 %1736  ;;  %v1599_v49 = vstv %s4895_s8  ;;  %v4952_v34 = vmul.f32 %v1584_v37, %v4545_v21  ;;  %v2211_v0 = vrot.slane %v2205_v28, 7  ;;  %v2161_v33 = vstv %s4907_s3  ;;  %s5110_s8 = sld [smem:[#allocation3 + $0x37]]  ;;  %s5126_s3 = sld [smem:[#allocation3 + $0x44]] }
 0x2be   : > { %6030 = vst [vmem:[#allocation108_spill] sm:$0xff] %v4928_v53  ;;  %6031 = vst [vmem:[#allocation109_spill] sm:$0xff] %v4930_v45  ;;  %v583_v53 = vsel %vm184_vm0, %v580_v29, %v6033_v62  ;;  %v540_v45 = vmul.f32 %v4495_v3, %v4851_v24  ;;  %v2210_v3 = vrot.slane %v2204_v40, 7  ;;  %v4961_v29 = vmul.f32 %v2274_v55, %v4569_v30 }
 0x2bf   : > { %6032 = vst [vmem:[#allocation110_spill] sm:$0xff] %v4938_v5  ;;  %2336 = vrot.lane.b32.xlu0 %v2333_v46, %s3323_s28  ;;  %2338 = vrot.lane.b32.xlu1 %v2335_v50, %s3323_s28  ;;  %6034 = vst [vmem:[#allocation111_spill] sm:$0xff] %v4952_v34  ;;  %v2213_v46 = vrot.slane %v2206_v7, 7  ;;  %v2275_v50 = vmul.f32 %v2274_v55, %v4545_v21  ;;  %v2276_v5 = vmul.f32 %v2274_v55, %v4556_v44 }
 0x2c0   : > { %v4965_v19 = vmul.f32 %v1584_v37, %v4556_v44  ;;  %v4968_v36 = vmul.f32 %v1599_v49, %v4545_v21  ;;  %v4973_v40 = vadd.f32 %v583_v53, %v533_v10  ;;  %v4975_v28 = vadd.f32 %v581_v4, %v532_v20 }
 0x2c1   : > { %v4954_v22 = vpop.permute.xlu0 %1752  ;;  %v4956_v62 = vpop.permute.xlu1 %1754  ;;  %v600_v7 = vsel %vm184_vm0, %v598_v57, %v599_v32  ;;  %v1602_v55 = vmul.f32 %v1599_v49, %v4569_v30  ;;  %v1618_v37 = vstv %s4926_s24  ;;  %v2212_v10 = vsel %vm945_vm6, %v2210_v3, %v2211_v0  ;;  %s5158_s24 = sld [smem:[#allocation3 + $0x53]] }
 0x2c2   : > { %6035 = vst [vmem:[#allocation112_spill] sm:$0xff] %v4954_v22  ;;  %6036 = vst [vmem:[#allocation113_spill] sm:$0xff] %v4956_v62  ;;  %v1601_v62 = vmul.f32 %v1599_v49, %v4556_v44  ;;  %v2214_v20 = vsel %vm945_vm6, %v2211_v0, %v2213_v46  ;;  %v2162_v53 = vmul.f32 %v2161_v33, %v4545_v21  ;;  %v2281_v4 = vrot.slane %v2275_v50, 3 }
 0x2c3   : > { %6037 = vst [vmem:[#allocation114_spill] sm:$0xff] %v4965_v19  ;;  %6038 = vst [vmem:[#allocation115_spill] sm:$0xff] %v4968_v36  ;;  %2340 = vrot.lane.b32.xlu0 %v2334_v48, %s3323_s28  ;;  %2215 = vrot.lane.b32.xlu1 %v2210_v3, %s3323_s28  ;;  %v2282_v57 = vrot.slane %v2276_v5, 3  ;;  %v2284_v49 = vrot.slane %v4961_v29, 3  ;;  %v2163_v8 = vmul.f32 %v2161_v33, %v4556_v44  ;;  %v6042_v0 = vrot.slane %v4829_v15, 4 }
 0x2c4   : > { %6039 = vst [vmem:[#allocation116_spill] sm:$0xff] %v4973_v40  ;;  %v1607_v40 = vrot.slane %v1601_v62, 7  ;;  %v5008_v46 = vmul.f32 %v1618_v37, %v4545_v21  ;;  %v1620_v50 = vmul.f32 %v1618_v37, %v4556_v44  ;;  %v1621_v29 = vmul.f32 %v1618_v37, %v4569_v30 }
 0x2c5   : > { %v4986_v22 = vpop.permute.xlu0 %1756  ;;  %v4988_v48 = vpop.permute.xlu1 %1772  ;;  %v602_v5 = vsel %vm184_vm0, %v599_v32, %v6042_v0  ;;  %v541_v62 = vmul.f32 %v4522_v2, %v4851_v24  ;;  %v1609_v3 = vrot.slane %v1602_v55, 7  ;;  %v2164_v32 = vmul.f32 %v2161_v33, %v4569_v30 }
 0x2c6   : > { %6040 = vst [vmem:[#allocation117_spill] sm:$0xff] %v4986_v22  ;;  %6041 = vst [vmem:[#allocation118_spill] sm:$0xff] %v4988_v48  ;;  %v5856_v48 = vrot.slane %v4965_v19, 7  ;;  %v5012_v22 = vadd.f32 %v600_v7, %v540_v45  ;;  %v2285_v45 = vsel %vm1019_vm7, %v2282_v57, %v2284_v49  ;;  %v2168_v7 = vrot.slane %v2162_v53, 6 }
 0x2c7   : > { %2217 = vrot.lane.b32.xlu0 %v2212_v10, %s3323_s28  ;;  %2219 = vrot.lane.b32.xlu1 %v2214_v20, %s3323_s28  ;;  %v2283_v20 = vsel %vm1019_vm7, %v2281_v4, %v2282_v57  ;;  %v2169_v37 = vrot.slane %v2163_v8, 6  ;;  %v5025_v0 = vadd.f32 %v602_v5, %v541_v62  ;;  %v6043_v2 = vrot.slane %v4952_v34, 7 }
 0x2c8   : > { %v6045_v55 = vrot.slane %v4968_v36, 7  ;;  %v1626_v53 = vrot.slane %v1620_v50, 7  ;;  %v1628_v4 = vrot.slane %v1621_v29, 7  ;;  %v1654_v57 = vstv %s4981_s17  ;;  %s5200_s17 = sld [smem:[#allocation3 + $0x60]] }
 0x2c9   : > { %v5018_v10 = vpop.permute.xlu0 %1774  ;;  %v5020_v15 = vpop.permute.xlu1 %1776  ;;  %v5032_v24 = vsel %vm945_vm6, %v6043_v2, %v5856_v48  ;;  %v5045_v5 = vadd.f32 %v4270_v18, %v4873_v41  ;;  %v5048_v62 = vsel %vm945_vm6, %v1607_v40, %v1609_v3  ;;  %v1637_v2 = vstv %s4979_s22  ;;  %s5190_s22 = sld [smem:[#allocation3 + $0x36]] }
 0x2ca   : > { %6044 = vst [vmem:[#allocation119_spill] sm:$0xff] %v5032_v24  ;;  %v5037_v33 = vsel %vm945_vm6, %v6045_v55, %v1607_v40  ;;  %6047 = vst [vmem:[#allocation121_spill] sm:$0xff] %v5048_v62  ;;  %v1673_v55 = vstv %s4984_s26  ;;  %v2403_v50 = vstv %s4993_s7  ;;  %v2299_v29 = vstv %s4997_s20  ;;  %s5238_s26 = sld [smem:[#allocation3 + $0x45]]  ;;  %s5253_s7 = sld [smem:[#allocation3 + $0x52]] }
 0x2cb   : > { %6046 = vst [vmem:[#allocation120_spill] sm:$0xff] %v5037_v33  ;;  %2286 = vrot.lane.b32.xlu0 %v2283_v20, %s3323_s28  ;;  %2288 = vrot.lane.b32.xlu1 %v2285_v45, %s3323_s28  ;;  %v2170_v20 = vsel %vm780_vm4, %v2168_v7, %v2169_v37  ;;  %v2171_v45 = vrot.slane %v2164_v32, 6  ;;  %v1655_v8 = vmul.f32 %v1654_v57, %v4545_v21  ;;  %v6050_v40 = vrot.slane %v5008_v46, 7  ;;  %s5383_s20 = sld [smem:[#allocation3 + $0x61]] }
 0x2cc   : > { %v1656_v18 = vmul.f32 %v1654_v57, %v4556_v44  ;;  %v5062_v41 = vmul.f32 %v1654_v57, %v4569_v30  ;;  %v5072_v32 = vsel %vm945_vm6, %v1626_v53, %v1628_v4  ;;  %v1674_v7 = vmul.f32 %v1673_v55, %v4545_v21 }
 0x2cd   : > { %v5052_v48 = vpop.permute.xlu0 %1797  ;;  %v5054_v33 = vpop.permute.xlu1 %1799  ;;  %v5069_v3 = vsel %vm945_vm6, %v6050_v40, %v1626_v53  ;;  %v5081_v57 = vmul.f32 %v1637_v2, %v4545_v21  ;;  %v2404_v40 = vmul.f32 %v2403_v50, %v4545_v21  ;;  %v2300_v53 = vmul.f32 %v2299_v29, %v4545_v21 }
 0x2ce   : > { %6048 = vst [vmem:[#allocation122_spill] sm:$0xff] %v5052_v48  ;;  %6049 = vst [vmem:[#allocation123_spill] sm:$0xff] %v5054_v33  ;;  %v5076_v33 = vmul.f32 %v1673_v55, %v4556_v44  ;;  %v630_v4 = vadd.f32 %v4362_v17, %v4876_v12  ;;  %v2172_v62 = vsel %vm780_vm4, %v2169_v37, %v2171_v45  ;;  %v1662_v24 = vrot.slane %v1656_v18, 3 }
 0x2cf   : > { %2290 = vrot.lane.b32.xlu0 %v2284_v49, %s3323_s28  ;;  %2173 = vrot.lane.b32.xlu1 %v2170_v20, %s3325_s4  ;;  %6051 = vst [vmem:[#allocation124_spill] sm:$0xff] %v5081_v57  ;;  %v1692_v49 = vstv %s5016_s30  ;;  %v2301_v36 = vmul.f32 %v2299_v29, %v4556_v44  ;;  %v5095_v19 = vmul.f32 %v2299_v29, %v4569_v30  ;;  %v1680_v17 = vrot.slane %v1674_v7, 3  ;;  %s5468_s30 = sld [smem:[#allocation3 + $0x3e]] }
 0x2d0   : > { %v1681_v12 = vrot.slane %v5076_v33, 3  ;;  %v5107_v37 = vmul.f32 %v1673_v55, %v4569_v30  ;;  %v1693_v45 = vmul.f32 %v1692_v49, %v4545_v21  ;;  %v1694_v29 = vmul.f32 %v1692_v49, %v4556_v44 }
 0x2d1   : > { %v5084_v20 = vpop.permute.xlu0 %1818  ;;  %v5086_v48 = vpop.permute.xlu1 %1820  ;;  %v2405_v7 = vmul.f32 %v2403_v50, %v4556_v44  ;;  %v2406_v33 = vmul.f32 %v2403_v50, %v4569_v30  ;;  %v727_v21 = vadd.f32 %v4348_v16, %v630_v4  ;;  %v2306_v55 = vrot.slane %v2300_v53, 3 }
 0x2d2   : > { %6052 = vst [vmem:[#allocation125_spill] sm:$0xff] %v5084_v20  ;;  %6053 = vst [vmem:[#allocation126_spill] sm:$0xff] %v5086_v48  ;;  %v5100_v20 = vmul.f32 %v1637_v2, %v4556_v44  ;;  %v1661_v48 = vrot.slane %v1655_v8, 3  ;;  %v5114_v8 = vmul.f32 %v1692_v49, %v4569_v30  ;;  %v2309_v34 = vrot.slane %v5095_v19, 3 }
 0x2d3   : > { %2175 = vrot.lane.b32.xlu0 %v2172_v62, %s3325_s4  ;;  %2410 = vrot.lane.b32.xlu1 %v2404_v40, %s3327_s29  ;;  %6054 = vst [vmem:[#allocation127_spill] sm:$0xff] %v5107_v37  ;;  %s5122_s4 = sld [smem:[#allocation3 + $0x59]]  ;;  %v2307_v40 = vrot.slane %v2301_v36, 3  ;;  %v5129_v49 = vmul.f32 %v1637_v2, %v4569_v30  ;;  %v6058_v44 = vrot.slane %v5062_v41, 3  ;;  %v629_v16 = vadd.f32 %v4464_v35, %v4893_v56 }
 0x2d4   : > { %v820_v19 = vadd.f32 %v4551_v47, %v727_v21  ;;  %v5860_v30 = vrot.slane %v5107_v37, 3  ;;  %v2253_v36 = vstv %s5078_s14  ;;  %v1699_v2 = vrot.slane %v1693_v45, 3  ;;  %v5168_v21 = vld [vmem:[#allocation2 + $0x28] sm:$0x3f]  ;;  %v6075_v37 = vld [vmem:[#allocation116_spill] sm:$0xff]  ;;  %s5539_s14 = sld [smem:[#allocation3 + $0x5a]] }
 0x2d5   : > { %v5116_v18 = vpop.permute.xlu0 %1822  ;;  %v5118_v62 = vpop.permute.xlu1 %1843  ;;  %6057 = vst [vmem:[#allocation130_spill] sm:$0xff] %v5129_v49  ;;  %v5137_v50 = vsel %vm1019_vm7, %v1662_v24, %v6058_v44  ;;  %v1700_v53 = vrot.slane %v1694_v29, 3  ;;  %v2308_v35 = vsel %vm1019_vm7, %v2306_v55, %v2307_v40  ;;  %v2310_v47 = vsel %vm1019_vm7, %v2307_v40, %v2309_v34  ;;  %v5165_v29 = vld [vmem:[#allocation2 + $0x20] sm:$0xff] }
 0x2d6   : > { %6055 = vst [vmem:[#allocation128_spill] sm:$0xff] %v5116_v18  ;;  %6056 = vst [vmem:[#allocation129_spill] sm:$0xff] %v5118_v62  ;;  %v5132_v62 = vsel %vm1019_vm7, %v1661_v48, %v1662_v24  ;;  %v5147_v48 = vsel %vm1019_vm7, %v1680_v17, %v1681_v12  ;;  %v2363_v56 = vstv %s5097_s21  ;;  %v5162_v17 = vld [vmem:[#allocation2 + $0x18] sm:$0xff]  ;;  %v2256_v55 = vmul.f32 %v5168_v21, %v2253_v36  ;;  %s6218_s21 = smov 112  }
 0x2d7   : > { %2412 = vrot.lane.b32.xlu0 %v2405_v7, %s3327_s29  ;;  %2414 = vrot.lane.b32.xlu1 %v2406_v33, %s3327_s29  ;;  %6059 = vst [vmem:[#allocation131_spill] sm:$0xff] %v5147_v48  ;;  %v726_v33 = vadd.f32 %v4507_v59, %v629_v16  ;;  %v2254_v45 = vmul.f32 %v5162_v17, %v2253_v36  ;;  %v2423_v57 = vstv %s5253_s7  ;;  %s2895_s7 = scalar_lea.sflag [#allocation5], %s3494_s19 }
 0x2d8   : > { %v2255_v59 = vmul.f32 %v5165_v29, %v2253_v36  ;;  %v725_v40 = vadd.f32 %v4509_v13, %v5045_v5  ;;  %v917_v16 = vadd.f32 %v4382_v58, %v820_v19  ;;  %v5182_v24 = vsel %vm1019_vm7, %v1699_v2, %v1700_v53 }
 0x2d9   : > { %v5150_v4 = vpop.permute.xlu0 %1845  ;;  %v5152_v7 = vpop.permute.xlu1 %1847  ;;  %v819_v44 = vadd.f32 %v4543_v14, %v726_v33  ;;  %v2364_v36 = vmul.f32 %v5162_v17, %v2363_v56  ;;  %v2444_v13 = vstv %s5122_s4  ;;  %v6063_v5 = vrot.slane %v5114_v8, 3  ;;  %s6220_s4 = sshll.u32 %s3494_s19, 3 }
 0x2da   : > { %6060 = vst [vmem:[#allocation132_spill] sm:$0xff] %v5150_v4  ;;  %6061 = vst [vmem:[#allocation133_spill] sm:$0xff] %v5152_v7  ;;  %v1010_v14 = vadd.f32 %v4619_v6, %v917_v16  ;;  %v2383_v19 = vstv %s5126_s3  ;;  %v2260_v2 = vrot.slane %v2254_v45, 3  ;;  %v2261_v33 = vrot.slane %v2255_v59, 3  ;;  %s171_s3 = scalar_lea.vmem [#allocation8], %s6220_s4 }
 0x2db   : > { %2311 = vrot.lane.b32.xlu0 %v2308_v35, %s3323_s28  ;;  %2313 = vrot.lane.b32.xlu1 %v2310_v47, %s3323_s28  ;;  %v2494_v35 = vstv %s5110_s8  ;;  %v5179_v47 = vsel %vm1019_vm7, %v1681_v12, %v5860_v30  ;;  %v916_v58 = vadd.f32 %v4587_v39, %v819_v44  ;;  %v5197_v12 = vsel %vm1019_vm7, %v1700_v53, %v6063_v5  ;;  %s3105_s8 = sshll.u32 %s3366_s13, 7  ;;  %s3329_s13 = smov [#allocation8]  }
 0x2dc   : > { %6062 = vst [vmem:[#allocation134_spill] sm:$0xff] %v5179_v47  ;;  %v2495_v30 = vmul.f32 %v5162_v17, %v2494_v35  ;;  %v5206_v39 = vmul.f32 %v5165_v29, %v2494_v35  ;;  %v818_v6 = vadd.f32 %v4280_v27, %v725_v40  ;;  %v2263_v44 = vrot.slane %v2256_v55, 3  ;;  %v6076_v47 = vld [vmem:[#allocation45_spill] sm:$0xff] }
 0x2dd   : > { %v5184_v7 = vpop.permute.xlu0 %1864  ;;  %v5186_v4 = vpop.permute.xlu1 %1866  ;;  %v1009_v53 = vadd.f32 %v4621_v1, %v916_v58  ;;  %v2445_v16 = vmul.f32 %v5162_v17, %v2444_v13  ;;  %v2365_v59 = vmul.f32 %v5165_v29, %v2363_v56  ;;  %v2366_v35 = vmul.f32 %v5168_v21, %v2363_v56 }
 0x2de   : > { %v2446_v5 = vmul.f32 %v5165_v29, %v2444_v13  ;;  %v915_v27 = vadd.f32 %v4581_v9, %v818_v6  ;;  %v1107_v1 = vadd.f32 %v4405_v42, %v1010_v14  ;;  %v2586_v40 = vstv %s5158_s24  ;;  %s2909_s24 = sshll.u32 %s171_s3, 4  ;;  %s5753_s24 = int_to_ptr.vmem [resolvable:$true] %s2909_s24 }
 0x2df   : > { %2315 = vrot.lane.b32.xlu0 %v2309_v34, %s3323_s28  ;;  %2370 = vrot.lane.b32.xlu1 %v2364_v36, %s3327_s29  ;;  %v5213_v34 = vadd.f32 %v4335_v31, %v4886_v52  ;;  %v1106_v55 = vadd.f32 %v4656_v43, %v1009_v53  ;;  %v2499_v31 = vrot.slane %v2495_v30, 5  ;;  %v2500_v52 = vrot.slane %v5206_v39, 5 }
 0x2e0   : > { %v2384_v58 = vmul.f32 %v5162_v17, %v2383_v19  ;;  %v5231_v56 = vmul.f32 %v5168_v21, %v2444_v13  ;;  %v2262_v9 = vsel %vm1019_vm7, %v2260_v2, %v2261_v33  ;;  %v2264_v42 = vsel %vm1019_vm7, %v2261_v33, %v2263_v44 }
 0x2e1   : > { %v5215_v36 = vpop.permute.xlu0 %1868  ;;  %v5217_v45 = vpop.permute.xlu1 %1889  ;;  %v5236_v43 = vmul.f32 %v5165_v29, %v2383_v19  ;;  %v2451_v14 = vrot.slane %v2445_v16, 4  ;;  %v2452_v39 = vrot.slane %v2446_v5, 4  ;;  %v2349_v53 = vstv %s5190_s22 }
 0x2e2   : > { %6064 = vst [vmem:[#allocation135_spill] sm:$0xff] %v5217_v45  ;;  %v5247_v13 = vmul.f32 %v5165_v29, %v2586_v40  ;;  %v1181_v2 = vadd.f32 %v4337_v26, %v1107_v1  ;;  %v1008_v33 = vadd.f32 %v4303_v63, %v915_v27  ;;  %v1180_v44 = vadd.f32 %v4301_v23, %v1106_v55  ;;  %v6072_v45 = vld [vmem:[#allocation46_spill] sm:$0xff] }
 0x2e3   : > { %2372 = vrot.lane.b32.xlu0 %v2365_v59, %s3327_s29  ;;  %2374 = vrot.lane.b32.xlu1 %v2366_v35, %s3327_s29  ;;  %v2587_v59 = vmul.f32 %v5162_v17, %v2586_v40  ;;  %v2469_v16 = vstv %s5200_s17  ;;  %v702_v35 = vadd.f32 %v4372_v54, %v4890_v51  ;;  %v2501_v5 = vsel %vm615_vm8, %v2499_v31, %v2500_v52 }
 0x2e4   : > { %v5861_v26 = vrot.slane %v5231_v56, 4  ;;  %v1105_v63 = vadd.f32 %v4658_v11, %v1008_v33  ;;  %v1272_v23 = vadd.f32 %v4693_v25, %v1180_v44  ;;  %v5265_v27 = vmul.f32 %v5162_v17, %v2349_v53 }
 0x2e5   : > { %v5240_v6 = vpop.permute.xlu0 %1891  ;;  %v5242_v30 = vpop.permute.xlu1 %1910  ;;  %v5268_v1 = vmul.f32 %v5168_v21, %v2586_v40  ;;  %v2593_v55 = vrot.slane %v2587_v59, 1  ;;  %v2471_v11 = vmul.f32 %v5165_v29, %v2469_v16  ;;  %v5280_v33 = vsel %vm184_vm0, %v2451_v14, %v2452_v39  ;;  %v6067_v14 = vld [vmem:[#allocation32_spill] sm:$0xff] }
 0x2e6   : > { %6065 = vst [vmem:[#allocation136_spill] sm:$0xff] %v5240_v6  ;;  %v2386_v6 = vmul.f32 %v5168_v21, %v2383_v19  ;;  %v2470_v19 = vmul.f32 %v5162_v17, %v2469_v16  ;;  %v1368_v25 = vadd.f32 %v4725_v38, %v1272_v23  ;;  %v5283_v40 = vmul.f32 %v5165_v29, %v2349_v53 }
 0x2e7   : > { %2265 = vrot.lane.b32.xlu0 %v2262_v9, %s3323_s28  ;;  %2267 = vrot.lane.b32.xlu1 %v2264_v42, %s3323_s28  ;;  %v2594_v9 = vrot.slane %v5247_v13, 1  ;;  %v1273_v42 = vadd.f32 %v4429_v60, %v1181_v2  ;;  %v795_v44 = vadd.f32 %v4360_v61, %v702_v35  ;;  %v2455_v38 = vsel %vm184_vm0, %v2452_v39, %v5861_v26  ;;  %s5295_s28 = sld [smem:[#allocation3 + $0x4c]]  ;;  %v6068_v13 = vld [vmem:[#allocation89_spill] sm:$0xff] }
 0x2e8   : > { %v5293_v60 = vmul.f32 %v5168_v21, %v2469_v16  ;;  %v1179_v53 = vadd.f32 %v6067_v14, %v1105_v63  ;;  %v1460_v61 = vadd.f32 %v6068_v13, %v1368_v25  ;;  %v2536_v35 = vstv %s5238_s26  ;;  %v6073_v14 = vld [vmem:[#allocation24_spill] sm:$0xff]  ;;  %s5751_s26 = scalar_lea.hbm %s5797_s2, %s3105_s8 }
 0x2e9   : > { %v5270_v54 = vpop.permute.xlu0 %1912  ;;  %v5272_v51 = vpop.permute.xlu1 %1914  ;;  %v5308_v39 = vsel %vm639_vm9, %v2593_v55, %v2594_v9  ;;  %v2476_v16 = vrot.slane %v2470_v19, 4  ;;  %v2477_v26 = vrot.slane %v2471_v11, 4  ;;  %v675_v63 = vadd.f32 %v6072_v45, %v4975_v28  ;;  %v6074_v13 = vld [vmem:[#allocation100_spill] sm:$0xff]  ;;  %v6078_v45 = vld [vmem:[#allocation38_spill] sm:$0xff] }
 0x2ea   : > { %6066 = vst [vmem:[#allocation137_spill] sm:$0xff] %v5272_v51  ;;  %v1369_v25 = vadd.f32 %v6073_v14, %v1273_v42  ;;  %v1556_v2 = vadd.f32 %v6074_v13, %v1460_v61  ;;  %v2537_v19 = vmul.f32 %v5162_v17, %v2536_v35  ;;  %v2538_v11 = vmul.f32 %v5165_v29, %v2536_v35  ;;  %v6079_v14 = vld [vmem:[#allocation90_spill] sm:$0xff]  ;;  %v6094_v51 = vld [vmem:[#allocation16_spill] sm:$0xff] }
 0x2eb   : > { %2502 = vrot.lane.b32.xlu0 %v2499_v31, %s3328_s15  ;;  %2504 = vrot.lane.b32.xlu1 %v2501_v5, %s3328_s15  ;;  %v6069_v31 = vld [vmem:[#allocation17_spill] sm:$0xff]  ;;  %v1271_v42 = vadd.f32 %v6078_v45, %v1179_v53  ;;  %v5326_v13 = vmul.f32 %v5168_v21, %v2536_v35  ;;  %v5340_v53 = vsel %vm184_vm0, %v2476_v16, %v2477_v26 }
 0x2ec   : > { %v773_v5 = vadd.f32 %v6069_v31, %v5213_v34  ;;  %v676_v34 = vadd.f32 %v6076_v47, %v6075_v37  ;;  %v6077_v31 = vld [vmem:[#allocation51_spill] sm:$0xff]  ;;  %v1461_v61 = vadd.f32 %v6079_v14, %v1369_v25  ;;  %v6084_v25 = vld [vmem:[#allocation56_spill] sm:$0xff]  ;;  %v6086_v14 = vld [vmem:[#allocation101_spill] sm:$0xff]  ;;  %v5356_v16 = vmul.f32 %v5162_v17, %v2423_v57 }
 0x2ed   : > { %v5303_v23 = vpop.permute.xlu0 %1935  ;;  %v5305_v59 = vpop.permute.xlu1 %1937  ;;  %v771_v28 = vadd.f32 %v6077_v31, %v675_v63  ;;  %v6080_v37 = vld [vmem:[#allocation19_spill] sm:$0xff] }
 0x2ee   : > { %6070 = vst [vmem:[#allocation32_spill] sm:$0xff] %v5303_v23  ;;  %6071 = vst [vmem:[#allocation89_spill] sm:$0xff] %v5305_v59  ;;  %v867_v47 = vadd.f32 %v6080_v37, %v773_v5  ;;  %v6083_v23 = vrot.slane %v5268_v1, 1  ;;  %v6085_v31 = vld [vmem:[#allocation83_spill] sm:$0xff]  ;;  %v1634_v5 = vadd.f32 %v5069_v3, %v1556_v2  ;;  %v6087_v37 = vld [vmem:[#allocation57_spill] sm:$0xff]  ;;  %v2544_v3 = vrot.slane %v2538_v11, 1 }
 0x2ef   : > { %2506 = vrot.lane.b32.xlu0 %v2500_v52, %s3328_s15  ;;  %2390 = vrot.lane.b32.xlu1 %v2384_v58, %s3327_s29  ;;  %v6081_v52 = vld [vmem:[#allocation52_spill] sm:$0xff]  ;;  %v865_v35 = vadd.f32 %v6084_v25, %v771_v28  ;;  %v1367_v45 = vadd.f32 %v6085_v31, %v1271_v42  ;;  %v2561_v28 = vstv %s5295_s28  ;;  %v2543_v42 = vrot.slane %v2537_v19, 1  ;;  %v6091_v31 = vld [vmem:[#allocation62_spill] sm:$0xff]  ;;  %s3238_s28 = scalar_lea.vmem %s5753_s24, 128 }
 0x2f0   : > { %v772_v58 = vadd.f32 %v6081_v52, %v676_v34  ;;  %v5337_v63 = vsel %vm639_vm9, %v2594_v9, %v6083_v23  ;;  %v1557_v34 = vadd.f32 %v6086_v14, %v1461_v61  ;;  %v6088_v9 = vrot.slane %v5293_v60, 4  ;;  %v6093_v11 = vld [vmem:[#allocation40_spill] sm:$0xff]  ;;  %p3239_p8 = scmp.ne.s32.totalorder %s5753_s24, %s3238_s28 }
 0x2f1   : > { %v5330_v59 = vpop.permute.xlu0 %1939  ;;  %v5332_v55 = vpop.permute.xlu1 %1960  ;;  %v5361_v61 = vmul.f32 %v5165_v29, %v2423_v57  ;;  %v1459_v48 = vadd.f32 %v6093_v11, %v1367_v45  ;;  %v1708_v49 = vadd.f32 %v5197_v12, %v1634_v5  ;;  %v6098_v45 = vld [vmem:[#allocation20_spill] sm:$0xff]  ;;  %v6099_v5 = vld [vmem:[#allocation31_spill] sm:$0xff] }
 0x2f2   : > { %6082 = vst [vmem:[#allocation17_spill] sm:$0xff] %v5330_v59  ;;  %v866_v52 = vadd.f32 %v6087_v37, %v772_v58  ;;  %v5353_v23 = vsel %vm184_vm0, %v2477_v26, %v6088_v9  ;;  %v6089_v58 = vld [vmem:[#allocation18_spill] sm:$0xff]  ;;  %v5368_v9 = vmul.f32 %v5168_v21, %v2423_v57  ;;  %v6092_v59 = vld [vmem:[#allocation37_spill] sm:$0xff]  ;;  %v1635_v2 = vadd.f32 %v5072_v32, %v1557_v34  ;;  %p3240_p11 = pnand %p3239_p8, %p6221_p9 }
 0x2f3   : > { %2392 = vrot.lane.b32.xlu0 %v5236_v43, %s3327_s29  ;;  %2394 = vrot.lane.b32.xlu1 %v2386_v6, %s3327_s29  ;;  %v960_v43 = vadd.f32 %v6089_v58, %v867_v47  ;;  %v6090_v6 = vld [vmem:[#allocation47_spill] sm:$0xff]  ;;  %v958_v19 = vadd.f32 %v6092_v59, %v865_v35  ;;  %v892_v47 = vadd.f32 %v6094_v51, %v795_v44  ;;  %v6096_v59 = vld [vmem:[#allocation68_spill] sm:$0xff] }
 0x2f4   : > { %v700_v25 = vadd.f32 %v6090_v6, %v5012_v22  ;;  %v959_v14 = vadd.f32 %v6091_v31, %v866_v52  ;;  %v6095_v58 = vld [vmem:[#allocation67_spill] sm:$0xff]  ;;  %v2430_v22 = vrot.slane %v5356_v16, 4  ;;  %v5381_v57 = vmul.f32 %v5162_v17, %v2561_v28  ;;  %v6102_v31 = vld [vmem:[#allocation48_spill] sm:$0xff]  ;;  %p3241_p5 = pneg %p3240_p11 }
 0x2f5   : > { %v1963_v26 = vpop.permute.xlu0 %1962  ;;  %v1965_v37 = vpop.permute.xlu1 %1964  ;;  %v1055_v32 = vadd.f32 %v6096_v59, %v958_v19  ;;  %v6097_v35 = vld [vmem:[#allocation99_spill] sm:$0xff]  ;;  %v1782_v51 = vadd.f32 %v5018_v10, %v1708_v49  ;;  %v5389_v44 = vsel %vm639_vm9, %v2543_v42, %v2544_v3  ;;  %v6100_v16 = vrot.slane %v5326_v13, 1 }
 0x2f6   : > { %v1056_v18 = vadd.f32 %v6095_v58, %v959_v14  ;;  %v1555_v12 = vadd.f32 %v6097_v35, %v1459_v48  ;;  %v2431_v48 = vrot.slane %v5361_v61, 4  ;;  %v6101_v10 = vrot.slane %v5114_v8, 3  ;;  %v6103_v19 = vld [vmem:[#allocation59_spill] sm:$0xff] }
 0x2f7   : > { %2456 = vrot.lane.b32.xlu0 %v5280_v33, %s3327_s29  ;;  %2458 = vrot.lane.b32.xlu1 %v2455_v38, %s3327_s29  ;;  %v1057_v33 = vadd.f32 %v6098_v45, %v960_v43  ;;  %v793_v38 = vadd.f32 %v6099_v5, %v700_v25  ;;  %v5400_v6 = vsel %vm639_vm9, %v2544_v3, %v6100_v16  ;;  %v2433_v43 = vrot.slane %v5368_v9, 4  ;;  %v6104_v58 = vld [vmem:[#allocation35_spill] sm:$0xff]  ;;  %v6109_v45 = vld [vmem:[#allocation53_spill] sm:$0xff] }
 0x2f8   : > { %v1709_v49 = vadd.f32 %v6101_v10, %v1635_v2  ;;  %v1874_v42 = vadd.f32 %v5186_v4, %v1782_v51  ;;  %v5408_v25 = vmul.f32 %v5165_v29, %v2561_v28  ;;  %v701_v14 = vadd.f32 %v6102_v31, %v5025_v0  ;;  %v6106_v4 = vld [vmem:[#allocation30_spill] sm:$0xff]  ;;  %v6108_v51 = vld [vmem:[#allocation39_spill] sm:$0xff]  ;;  %v6111_v31 = vld [vmem:[#allocation73_spill] sm:$0xff] }
 0x2f9   : > { %v5393_v34 = vpop.permute.xlu0 %1985  ;;  %v5395_v52 = vpop.permute.xlu1 %1987  ;;  %v890_v11 = vadd.f32 %v6103_v19, %v793_v38  ;;  %v1140_v3 = vadd.f32 %v6104_v58, %v1056_v18  ;;  %v6105_v61 = vrot.slane %v5231_v56, 4  ;;  %v2568_v8 = vrot.slane %v5381_v57, 1  ;;  %v6110_v56 = vld [vmem:[#allocation64_spill] sm:$0xff]  ;;  %v6112_v19 = vld [vmem:[#allocation74_spill] sm:$0xff] }
 0x2fa   : > { %v1139_v2 = vadd.f32 %v6106_v4, %v1055_v32  ;;  %v6107_v9 = vrot.slane %v5008_v46, 7  ;;  %v1783_v0 = vadd.f32 %v5020_v15, %v1709_v49  ;;  %v1970_v35 = vadd.f32 %v1963_v26, %v1874_v42  ;;  %v6113_v26 = vld [vmem:[#allocation58_spill] sm:$0xff]  ;;  %v6114_v42 = vld [vmem:[#allocation33_spill] sm:$0xff] }
 0x2fb   : > { %2460 = vrot.lane.b32.xlu0 %v6105_v61, %s3327_s29  ;;  %2354 = vrot.lane.b32.xlu1 %v5265_v27, %s3327_s29  ;;  %v1141_v18 = vadd.f32 %v6108_v51, %v1057_v33  ;;  %v794_v5 = vadd.f32 %v6109_v45, %v701_v14  ;;  %v985_v38 = vadd.f32 %v6110_v56, %v892_v47  ;;  %v2632_v47 = vstv %s5383_s20  ;;  %v6115_v14 = vld [vmem:[#allocation79_spill] sm:$0xff]  ;;  %v6120_v51 = vld [vmem:[#allocation69_spill] sm:$0xff] }
 0x2fc   : > { %v1633_v59 = vadd.f32 %v6107_v9, %v1555_v12  ;;  %v5428_v27 = vmul.f32 %v5168_v21, %v2561_v28  ;;  %v1226_v32 = vadd.f32 %v6111_v31, %v1140_v3  ;;  %v1225_v46 = vadd.f32 %v6112_v19, %v1139_v2  ;;  %v6116_v3 = vld [vmem:[#allocation80_spill] sm:$0xff]  ;;  %v6117_v2 = vld [vmem:[#allocation25_spill] sm:$0xff] }
 0x2fd   : > { %v2053_v16 = vpop.permute.xlu0 %2052  ;;  %v2055_v10 = vpop.permute.xlu1 %2054  ;;  %v1875_v12 = vadd.f32 %v5215_v36, %v1783_v0  ;;  %v891_v49 = vadd.f32 %v6113_v26, %v794_v5  ;;  %v983_v33 = vadd.f32 %v6114_v42, %v890_v11  ;;  %v5440_v28 = vsel %vm184_vm0, %v2430_v22, %v2431_v48  ;;  %v6118_v11 = vld [vmem:[#allocation63_spill] sm:$0xff]  ;;  %v6121_v22 = vld [vmem:[#allocation86_spill] sm:$0xff]  ;;  %v6127_v42 = vld [vmem:[#allocation93_spill] sm:$0xff] }
 0x2fe   : > { %v2062_v15 = vadd.f32 %v2055_v10, %v1970_v35  ;;  %v1318_v58 = vadd.f32 %v6115_v14, %v1226_v32  ;;  %v1317_v61 = vadd.f32 %v6116_v3, %v1225_v46  ;;  %v1707_v36 = vadd.f32 %v5182_v24, %v1633_v59  ;;  %v6119_v35 = vld [vmem:[#allocation26_spill] sm:$0xff]  ;;  %v6122_v10 = vld [vmem:[#allocation87_spill] sm:$0xff] }
 0x2ff   : > { %2356 = vrot.lane.b32.xlu0 %v5283_v40, %s3327_s29  ;;  %2598 = vrot.lane.b32.xlu1 %v5308_v39, %s3328_s15  ;;  %v1971_v4 = vadd.f32 %v1965_v37, %v1875_v12  ;;  %v1227_v9 = vadd.f32 %v6117_v2, %v1141_v18  ;;  %v984_v0 = vadd.f32 %v6118_v11, %v891_v49  ;;  %v6123_v32 = vld [vmem:[#allocation118_spill] sm:$0xff]  ;;  %v6125_v59 = vrot.slane %v5268_v1, 1  ;;  %v6126_v26 = vld [vmem:[#allocation23_spill] sm:$0xff]  ;;  %v6132_v2 = vld [vmem:[#allocation28_spill] sm:$0xff] }
 0x300   : > { %v1082_v40 = vadd.f32 %v6119_v35, %v985_v38  ;;  %v1080_v45 = vadd.f32 %v6120_v51, %v983_v33  ;;  %v1413_v56 = vadd.f32 %v6121_v22, %v1317_v61  ;;  %v1414_v31 = vadd.f32 %v6122_v10, %v1318_v58  ;;  %v6124_v24 = vld [vmem:[#allocation70_spill] sm:$0xff]  ;;  %v6129_v1 = vld [vmem:[#allocation107_spill] sm:$0xff] }
 0x301   : > { %v2057_v39 = vpop.permute.xlu0 %2056  ;;  %v5450_v5 = vpop.permute.xlu1 %2006  ;;  %v1781_v19 = vadd.f32 %v6123_v32, %v1707_v36  ;;  %v1081_v37 = vadd.f32 %v6124_v24, %v984_v0  ;;  %v2569_v18 = vrot.slane %v5408_v25, 1  ;;  %v5463_v38 = vmul.f32 %v5162_v17, %v2632_v47  ;;  %v6128_v14 = vld [vmem:[#allocation94_spill] sm:$0xff]  ;;  %v6130_v3 = vld [vmem:[#allocation43_spill] sm:$0xff]  ;;  %v6131_v36 = vld [vmem:[#allocation36_spill] sm:$0xff] }
 0x302   : > { %v2063_v46 = vadd.f32 %v2057_v39, %v1971_v4  ;;  %v5466_v12 = vmul.f32 %v5165_v29, %v2632_v47  ;;  %v1319_v49 = vadd.f32 %v6126_v26, %v1227_v9  ;;  %v1505_v33 = vadd.f32 %v6127_v42, %v1413_v56  ;;  %v6133_v9 = vld [vmem:[#allocation27_spill] sm:$0xff]  ;;  %v6134_v22 = vld [vmem:[#allocation110_spill] sm:$0xff]  ;;  %v6135_v56 = vld [vmem:[#allocation44_spill] sm:$0xff] }
 0x303   : > { %2600 = vrot.lane.b32.xlu0 %v5337_v63, %s3328_s15  ;;  %2602 = vrot.lane.b32.xlu1 %v6125_v59, %s3328_s15  ;;  %v1506_v63 = vadd.f32 %v6128_v14, %v1414_v31  ;;  %v1873_v58 = vadd.f32 %v5184_v7, %v1781_v19  ;;  %v652_v61 = vadd.f32 %v6130_v3, %v6129_v1  ;;  %v6138_v24 = vld [vmem:[#allocation41_spill] sm:$0xff]  ;;  %v6142_v42 = vld [vmem:[#allocation95_spill] sm:$0xff] }
 0x304   : > { %v1161_v4 = vadd.f32 %v6131_v36, %v1082_v40  ;;  %v1159_v11 = vadd.f32 %v6132_v2, %v1080_v45  ;;  %v5483_v51 = vsel %vm184_vm0, %v2431_v48, %v2433_v43  ;;  %v1415_v39 = vadd.f32 %v6133_v9, %v1319_v49  ;;  %v6136_v40 = vld [vmem:[#allocation50_spill] sm:$0xff]  ;;  %v6137_v45 = vld [vmem:[#allocation75_spill] sm:$0xff]  ;;  %v6143_v1 = vld [vmem:[#allocation49_spill] sm:$0xff] }
 0x305   : > { %v5478_v0 = vpop.permute.xlu0 %2008  ;;  %v5480_v35 = vpop.permute.xlu1 %2010  ;;  %v651_v10 = vadd.f32 %v6135_v56, %v6134_v22  ;;  %v1969_v7 = vadd.f32 %v5332_v55, %v1873_v58  ;;  %v5490_v31 = vmul.f32 %v5168_v21, %v2632_v47  ;;  %v748_v32 = vadd.f32 %v6136_v40, %v652_v61  ;;  %v6139_v43 = vld [vmem:[#allocation111_spill] sm:$0xff]  ;;  %v6145_v36 = vld [vmem:[#allocation81_spill] sm:$0xff]  ;;  %v6146_v2 = vld [vmem:[#allocation22_spill] sm:$0xff] }
 0x306   : > { %v1250_v19 = vadd.f32 %v6137_v45, %v1159_v11  ;;  %v1160_v59 = vadd.f32 %v6138_v24, %v1081_v37  ;;  %v2571_v48 = vrot.slane %v5428_v27, 1  ;;  %v6140_v26 = vrot.slane %v6139_v43, 7  ;;  %v6141_v49 = vld [vmem:[#allocation119_spill] sm:$0xff]  ;;  %v6147_v22 = vld [vmem:[#allocation76_spill] sm:$0xff] }
 0x307   : > { %2481 = vrot.lane.b32.xlu0 %v5340_v53, %s3327_s29  ;;  %2483 = vrot.lane.b32.xlu1 %v5353_v23, %s3327_s29  ;;  %v1596_v47 = vadd.f32 %v6141_v49, %v1506_v63  ;;  %v1507_v14 = vadd.f32 %v6142_v42, %v1415_v39  ;;  %v2061_v58 = vadd.f32 %v2053_v16, %v1969_v7  ;;  %v6144_v37 = vld [vmem:[#allocation55_spill] sm:$0xff]  ;;  %v2639_v63 = vrot.slane %v5463_v38, 5  ;;  %v6148_v16 = vld [vmem:[#allocation54_spill] sm:$0xff]  ;;  %v6149_v7 = vld [vmem:[#allocation60_spill] sm:$0xff] }
 0x308   : > { %v1595_v55 = vadd.f32 %v6140_v26, %v1505_v33  ;;  %v747_v3 = vadd.f32 %v6143_v1, %v651_v10  ;;  %v842_v61 = vadd.f32 %v6144_v37, %v748_v32  ;;  %v1342_v53 = vadd.f32 %v6145_v36, %v1250_v19  ;;  %v6151_v19 = vld [vmem:[#allocation82_spill] sm:$0xff]  ;;  %v6154_v49 = vld [vmem:[#allocation61_spill] sm:$0xff]  ;;  %v6156_v1 = vld [vmem:[#allocation15_spill] sm:$0xff] }
 0x309   : > { %v1252_v11 = vadd.f32 %v6146_v2, %v1161_v4  ;;  %v2149_v23 = vpop.permute.xlu0 %2148  ;;  %v2151_v9 = vpop.permute.xlu1 %2150  ;;  %v1251_v56 = vadd.f32 %v6147_v22, %v1160_v59  ;;  %v6150_v32 = vrot.slane %v5293_v60, 4  ;;  %v2640_v4 = vrot.slane %v5466_v12, 5  ;;  %v6157_v37 = vld [vmem:[#allocation21_spill] sm:$0xff]  ;;  %v6158_v2 = vld [vmem:[#allocation88_spill] sm:$0xff]  ;;  %v6172_v25 = vld [vmem:[#allocation115_spill] sm:$0xff] }
 0x30a   : > { %v5509_v40 = vadd.f32 %v2149_v23, %v2061_v58  ;;  %v5511_v33 = vadd.f32 %v2151_v9, %v2062_v15  ;;  %v841_v39 = vadd.f32 %v6148_v16, %v747_v3  ;;  %v938_v10 = vadd.f32 %v6149_v7, %v842_v61  ;;  %v6152_v15 = vld [vmem:[#allocation114_spill] sm:$0xff]  ;;  %v6155_v58 = vld [vmem:[#allocation65_spill] sm:$0xff]  ;;  %v6190_v12 = vld [vmem:[#allocation91_spill] sm:$0xff] }
 0x30b   : > { %2485 = vrot.lane.b32.xlu0 %v6150_v32, %s3327_s29  ;;  %2548 = vrot.lane.b32.xlu1 %v5389_v44, %s3328_s15  ;;  %v2515_v45 = vstv %s5468_s30  ;;  %v1343_v24 = vadd.f32 %v6151_v19, %v1251_v56  ;;  %v6153_v59 = vrot.slane %v6152_v15, 7  ;;  %v1669_v38 = vadd.f32 %v5132_v62, %v1595_v55  ;;  %v6159_v9 = vld [vmem:[#allocation106_spill] sm:$0xff]  ;;  %v6166_v19 = vld [vmem:[#allocation125_spill] sm:$0xff] }
 0x30c   : > { %v1670_v26 = vadd.f32 %v5137_v50, %v1596_v47  ;;  %v937_v42 = vadd.f32 %v6154_v49, %v841_v39  ;;  %v1032_v60 = vadd.f32 %v6155_v58, %v938_v10  ;;  %v1434_v3 = vadd.f32 %v6156_v1, %v1342_v53  ;;  %v6161_v50 = vld [vmem:[#allocation66_spill] sm:$0xff]  ;;  %v6162_v47 = vld [vmem:[#allocation96_spill] sm:$0xff]  ;;  %v6164_v39 = vld [vmem:[#allocation97_spill] sm:$0xff] }
 0x30d   : > { %v1597_v43 = vadd.f32 %v6153_v59, %v1507_v14  ;;  %v1344_v44 = vadd.f32 %v6157_v37, %v1252_v11  ;;  %v2153_v61 = vpop.permute.xlu0 %2152  ;;  %v5532_v36 = vpop.permute.xlu1 %2027  ;;  %v1435_v23 = vadd.f32 %v6158_v2, %v1343_v24  ;;  %v1741_v22 = vadd.f32 %v6159_v9, %v1669_v38  ;;  %v6160_v14 = vld [vmem:[#allocation108_spill] sm:$0xff]  ;;  %v6167_v15 = vld [vmem:[#allocation126_spill] sm:$0xff]  ;;  %v6171_v37 = vld [vmem:[#allocation29_spill] sm:$0xff] }
 0x30e   : > { %v1742_v56 = vadd.f32 %v6160_v14, %v1670_v26  ;;  %v5537_v62 = vadd.f32 %v2153_v61, %v2063_v46  ;;  %v1031_v55 = vadd.f32 %v6161_v50, %v937_v42  ;;  %v1530_v16 = vadd.f32 %v6162_v47, %v1434_v3  ;;  %v6170_v42 = vld [vmem:[#allocation109_spill] sm:$0xff]  ;;  %v6174_v2 = vld [vmem:[#allocation98_spill] sm:$0xff]  ;;  %v6176_v9 = vld [vmem:[#allocation128_spill] sm:$0xff] }
 0x30f   : > { %v1645_v53 = vrot.slane %v5100_v20, 3  ;;  %2550 = vrot.lane.b32.xlu0 %v5400_v6, %s3328_s15  ;;  %v6163_v11 = vrot.slane %v5326_v13, 1  ;;  %v2570_v46 = vsel %vm639_vm9, %v2568_v8, %v2569_v18  ;;  %v1531_v7 = vadd.f32 %v6164_v39, %v1435_v23  ;;  %v6168_v6 = vld [vmem:[#allocation42_spill] sm:$0xff]  ;;  %v6179_v39 = vld [vmem:[#allocation137_spill] sm:$0xff] }
 0x310   : > { %v6165_v10 = vrot.slane %v5062_v41, 3  ;;  %v1827_v24 = vadd.f32 %v6166_v19, %v1741_v22  ;;  %v1828_v59 = vadd.f32 %v6167_v15, %v1742_v56  ;;  %v1436_v38 = vadd.f32 %v6168_v6, %v1344_v44  ;;  %v6177_v56 = vld [vmem:[#allocation71_spill] sm:$0xff]  ;;  %v6182_v15 = vld [vmem:[#allocation121_spill] sm:$0xff]  ;;  %v6183_v6 = vld [vmem:[#allocation130_spill] sm:$0xff] }
 0x311   : > { %2552 = vrot.lane.b32.xlu1 %v6163_v11, %s3328_s15  ;;  %v5560_v26 = vpop.permute.xlu0 %2029  ;;  %v5562_v13 = vpop.permute.xlu1 %2031  ;;  %v2572_v57 = vsel %vm639_vm9, %v2569_v18, %v2571_v48  ;;  %v2641_v41 = vsel %vm615_vm8, %v2639_v63, %v2640_v4  ;;  %v5573_v8 = vmul.f32 %v5162_v17, %v2515_v45  ;;  %v1120_v44 = vadd.f32 %v6171_v37, %v1031_v55  ;;  %v6178_v55 = vld [vmem:[#allocation72_spill] sm:$0xff] }
 0x312   : > { %v1671_v32 = vadd.f32 %v6165_v10, %v1597_v43  ;;  %v6169_v43 = vld [vmem:[#allocation34_spill] sm:$0xff]  ;;  %v1919_v1 = vadd.f32 %v5242_v30, %v1827_v24  ;;  %v1920_v3 = vadd.f32 %v5270_v54, %v1828_v59  ;;  %v6173_v61 = vrot.slane %v6172_v25, 7 }
 0x313   : > { %v1121_v49 = vadd.f32 %v6169_v43, %v1032_v60  ;;  %v1532_v23 = vadd.f32 %v6174_v2, %v1436_v38  ;;  %2435 = vrot.lane.b32.xlu0 %v5440_v28, %s3327_s29  ;;  %v2642_v63 = vrot.slane %v5490_v31, 5  ;;  %v6175_v60 = vld [vmem:[#allocation120_spill] sm:$0xff]  ;;  %v1201_v47 = vadd.f32 %v6178_v55, %v1120_v44  ;;  %v6187_v44 = vld [vmem:[#allocation85_spill] sm:$0xff] }
 0x314   : > { %v1743_v58 = vadd.f32 %v6170_v42, %v1671_v32  ;;  %v1614_v18 = vadd.f32 %v6173_v61, %v1530_v16  ;;  %v1615_v30 = vadd.f32 %v6175_v60, %v1531_v7  ;;  %v2015_v22 = vadd.f32 %v5450_v5, %v1919_v1  ;;  %v6180_v5 = vld [vmem:[#allocation77_spill] sm:$0xff] }
 0x315   : > { %2437 = vrot.lane.b32.xlu1 %v5483_v51, %s3327_s29  ;;  %v2016_v14 = vadd.f32 %v5478_v0, %v1920_v3  ;;  %v1202_v50 = vadd.f32 %v6177_v56, %v1121_v49  ;;  %v2099_v16 = vpop.permute.xlu0 %2098  ;;  %v2101_v28 = vpop.permute.xlu1 %2100  ;;  %v2517_v11 = vmul.f32 %v5165_v29, %v2515_v45  ;;  %v2518_v51 = vmul.f32 %v5168_v21, %v2515_v45  ;;  %v6181_v0 = vld [vmem:[#allocation78_spill] sm:$0xff]  ;;  %v6184_v45 = vld [vmem:[#allocation131_spill] sm:$0xff]  ;;  %v6186_v3 = vld [vmem:[#allocation84_spill] sm:$0xff]  ;;  %s6217_s29 = smov 96  }
 0x316   : > { %v1829_v54 = vadd.f32 %v6176_v9, %v1743_v58  ;;  %v5597_v10 = vadd.f32 %v2099_v16, %v2015_v22  ;;  %v2611_v32 = vstv %s5539_s14  ;;  %v1293_v24 = vadd.f32 %v6181_v0, %v1201_v47  ;;  %v6185_v49 = vld [vmem:[#allocation134_spill] sm:$0xff]  ;;  %v6189_v60 = vld [vmem:[#allocation113_spill] sm:$0xff]  ;;  %v6195_v47 = vld [vmem:[#allocation132_spill] sm:$0xff] }
 0x317   : > { %v5599_v7 = vadd.f32 %v2101_v28, %v2016_v14  ;;  %v1294_v19 = vadd.f32 %v6180_v5, %v1202_v50  ;;  %v1616_v59 = vadd.f32 %v6182_v15, %v1532_v23  ;;  %v1647_v38 = vrot.slane %v6183_v6, 3  ;;  %2573 = vrot.lane.b32.xlu0 %v2570_v46, %s3328_s15  ;;  %v6188_v23 = vld [vmem:[#allocation112_spill] sm:$0xff]  ;;  %v6192_v14 = vld [vmem:[#allocation127_spill] sm:$0xff]  ;;  %v6198_v0 = vld [vmem:[#allocation117_spill] sm:$0xff] }
 0x318   : > { %v1921_v31 = vadd.f32 %v6179_v39, %v1829_v54  ;;  %v1688_v43 = vadd.f32 %v6184_v45, %v1614_v18  ;;  %v1689_v42 = vadd.f32 %v6185_v49, %v1615_v30  ;;  %v2643_v1 = vsel %vm615_vm8, %v2640_v4, %v2642_v63  ;;  %v6191_v54 = vld [vmem:[#allocation92_spill] sm:$0xff]  ;;  %v6196_v39 = vld [vmem:[#allocation102_spill] sm:$0xff]  ;;  %v6197_v5 = vld [vmem:[#allocation103_spill] sm:$0xff] }
 0x319   : > { %2575 = vrot.lane.b32.xlu1 %v2572_v57, %s3328_s15  ;;  %v1389_v37 = vadd.f32 %v6186_v3, %v1293_v24  ;;  %v1390_v25 = vadd.f32 %v6187_v44, %v1294_v19  ;;  %v2103_v61 = vpop.permute.xlu0 %2102  ;;  %v2241_v2 = vpop.permute.xlu1 %2240  ;;  %v2522_v46 = vrot.slane %v5573_v8, 1  ;;  %v2612_v57 = vmul.f32 %v5162_v17, %v2611_v32  ;;  %v6194_v8 = vld [vmem:[#allocation129_spill] sm:$0xff] }
 0x31a   : > { %v2017_v58 = vadd.f32 %v5480_v35, %v1921_v31  ;;  %v1761_v18 = vadd.f32 %v6188_v23, %v1688_v43  ;;  %v1762_v30 = vadd.f32 %v6189_v60, %v1689_v42  ;;  %v5621_v35 = vadd.f32 %v2241_v2, %v5509_v40  ;;  %v6205_v60 = vld [vmem:[#allocation104_spill] sm:$0xff] }
 0x31b   : > { %v1481_v4 = vadd.f32 %v6190_v12, %v1389_v37  ;;  %v1482_v22 = vadd.f32 %v6191_v54, %v1390_v25  ;;  %v6193_v56 = vrot.slane %v6192_v14, 3  ;;  %2577 = vrot.lane.b32.xlu0 %v2571_v48, %s3328_s15  ;;  %v2523_v17 = vrot.slane %v2517_v11, 1  ;;  %v6199_v48 = vld [vmem:[#allocation32_spill] sm:$0xff]  ;;  %v6200_v11 = vld [vmem:[#allocation89_spill] sm:$0xff]  ;;  %v6207_v14 = vld [vmem:[#allocation122_spill] sm:$0xff] }
 0x31c   : > { %v2109_v9 = vadd.f32 %v2103_v61, %v2017_v58  ;;  %v1852_v55 = vadd.f32 %v6194_v8, %v1761_v18  ;;  %v1853_v16 = vadd.f32 %v6195_v47, %v1762_v30  ;;  %v2525_v40 = vrot.slane %v2518_v51, 1  ;;  %v6206_v12 = vld [vmem:[#allocation105_spill] sm:$0xff] }
 0x31d   : > { %v1690_v50 = vadd.f32 %v6193_v56, %v1616_v59  ;;  %2644 = vrot.lane.b32.xlu1 %v2641_v41, %s3328_s15  ;;  %v2613_v28 = vmul.f32 %v5165_v29, %v2611_v32  ;;  %v1577_v31 = vadd.f32 %v6196_v39, %v1481_v4  ;;  %v1578_v19 = vadd.f32 %v6197_v5, %v1482_v22  ;;  %v2243_v15 = vpop.permute.xlu0 %2242  ;;  %v2245_v59 = vpop.permute.xlu1 %2244  ;;  %v6201_v29 = vld [vmem:[#allocation124_spill] sm:$0xff] }
 0x31e   : > { %v2614_v27 = vmul.f32 %v5168_v21, %v2611_v32  ;;  %v1944_v41 = vadd.f32 %v6199_v48, %v1852_v55  ;;  %v1945_v6 = vadd.f32 %v6200_v11, %v1853_v16  ;;  %v2250_v45 = vadd.f32 %v2243_v15, %v5511_v33  ;;  %v6203_v32 = vld [vmem:[#allocation133_spill] sm:$0xff]  ;;  %v6209_v55 = vld [vmem:[#allocation135_spill] sm:$0xff]  ;;  %v6210_v16 = vld [vmem:[#allocation136_spill] sm:$0xff] }
 0x31f   : > { %v1763_v24 = vadd.f32 %v6198_v0, %v1690_v50  ;;  %v2251_v51 = vadd.f32 %v2245_v59, %v5537_v62  ;;  %v6202_v43 = vrot.slane %v6201_v29, 3  ;;  %v1648_v42 = vsel %vm1019_vm7, %v1645_v53, %v1647_v38  ;;  %2646 = vrot.lane.b32.xlu0 %v2643_v1, %s3328_s15  ;;  %v6204_v1 = vld [vmem:[#allocation17_spill] sm:$0xff] }
 0x320   : > { %v2618_v21 = vrot.slane %v2612_v57, 5  ;;  %v2036_v33 = vadd.f32 %v5532_v36, %v1944_v41  ;;  %v2037_v62 = vadd.f32 %v5560_v26, %v1945_v6  ;;  %v2524_v3 = vsel %vm639_vm9, %v2522_v46, %v2523_v17 }
 0x321   : > { %v1646_v49 = vsel %vm1019_vm7, %v6202_v43, %v1645_v53  ;;  %2648 = vrot.lane.b32.xlu1 %v2642_v63, %s3328_s15  ;;  %v1854_v58 = vadd.f32 %v6203_v32, %v1763_v24  ;;  %v2124_v44 = vpop.permute.xlu0 %2123  ;;  %v2126_v25 = vpop.permute.xlu1 %2125  ;;  %v2526_v20 = vsel %vm639_vm9, %v2523_v17, %v2525_v40  ;;  %v2619_v61 = vrot.slane %v2613_v28, 5 }
 0x322   : > { %v1651_v37 = vadd.f32 %v1646_v49, %v1577_v31  ;;  %v2621_v53 = vrot.slane %v2614_v27, 5  ;;  %v1652_v38 = vadd.f32 %v1648_v42, %v1578_v19  ;;  %v2132_v63 = vadd.f32 %v2124_v44, %v2036_v33 }
 0x323   : > { %v1946_v2 = vadd.f32 %v6204_v1, %v1854_v58  ;;  %v2133_v57 = vadd.f32 %v2126_v25, %v2037_v62  ;;  %2527 = vrot.lane.b32.xlu0 %v2524_v3, %s3328_s15  ;;  %v2620_v23 = vsel %vm615_vm8, %v2618_v21, %v2619_v61  ;;  %vm2870_vm0 = vcmask 916480  }
 0x324   : > { %v2622_v18 = vsel %vm615_vm8, %v2619_v61, %v2621_v53  ;;  %v1722_v30 = vadd.f32 %v6205_v60, %v1651_v37  ;;  %v1723_v4 = vadd.f32 %v6206_v12, %v1652_v38 }
 0x325   : > { %2529 = vrot.lane.b32.xlu1 %v2526_v20, %s3328_s15  ;;  %v2038_v36 = vadd.f32 %v5562_v13, %v1946_v2  ;;  %v2128_v26 = vpop.permute.xlu0 %2127  ;;  %v2191_v46 = vpop.permute.xlu1 %2190  ;;  %v6208_v13 = vld [vmem:[#allocation123_spill] sm:$0xff] }
 0x326   : > { %v2199_v22 = vadd.f32 %v2191_v46, %v5597_v10  ;;  %v1803_v56 = vadd.f32 %v6207_v14, %v1722_v30  ;;  %v1804_v50 = vadd.f32 %v6208_v13, %v1723_v4 }
 0x327   : > { %v2134_v54 = vadd.f32 %v2128_v26, %v2038_v36  ;;  %2623 = vrot.lane.b32.xlu0 %v2620_v23, %s3328_s15 }
 0x328   : > { %v1895_v47 = vadd.f32 %v6209_v55, %v1803_v56  ;;  %v1896_v40 = vadd.f32 %v6210_v16, %v1804_v50 }
 0x329   : > { %2625 = vrot.lane.b32.xlu1 %v2622_v18, %s3328_s15  ;;  %v2193_v17 = vpop.permute.xlu0 %2192  ;;  %v2195_v8 = vpop.permute.xlu1 %2194  ;;  %s6214_s15 = smov 48  }
 0x32a   : > { %v2200_v28 = vadd.f32 %v2193_v17, %v5599_v7  ;;  %v2201_v39 = vadd.f32 %v2195_v8, %v2109_v9  ;;  %v1991_v31 = vadd.f32 %v5393_v34, %v1895_v47  ;;  %v1992_v10 = vadd.f32 %v5395_v52, %v1896_v40 }
 0x32d   : > { %v2078_v5 = vpop.permute.xlu0 %2077  ;;  %v2080_v19 = vpop.permute.xlu1 %2079 }
 0x32e   : > { %v2083_v0 = vadd.f32 %v2078_v5, %v1991_v31  ;;  %v2084_v24 = vadd.f32 %v2080_v19, %v1992_v10 }
 0x331   : > { %v2337_v15 = vpop.permute.xlu0 %2336  ;;  %v2339_v59 = vpop.permute.xlu1 %2338 }
 0x332   : > { %v2345_v27 = vadd.f32 %v2337_v15, %v5621_v35  ;;  %v2346_v48 = vadd.f32 %v2339_v59, %v2250_v45 }
 0x335   : > { %v2341_v41 = vpop.permute.xlu0 %2340  ;;  %v2216_v11 = vpop.permute.xlu1 %2215 }
 0x336   : > { %v2347_v6 = vadd.f32 %v2341_v41, %v2251_v51  ;;  %v2224_v29 = vadd.f32 %v2216_v11, %v2132_v63 }
 0x339   : > { %v2218_v43 = vpop.permute.xlu0 %2217  ;;  %v2220_v7 = vpop.permute.xlu1 %2219 }
 0x33a   : > { %v2225_v9 = vadd.f32 %v2218_v43, %v2133_v57  ;;  %v2226_v49 = vadd.f32 %v2220_v7, %v2134_v54 }
 0x33d   : > { %v2287_v34 = vpop.permute.xlu0 %2286  ;;  %v2289_v42 = vpop.permute.xlu1 %2288 }
 0x33e   : > { %v5676_v52 = vadd.f32 %v2287_v34, %v2199_v22  ;;  %v5678_v21 = vadd.f32 %v2289_v42, %v2200_v28 }
 0x341   : > { %v2291_v32 = vpop.permute.xlu0 %2290  ;;  %v2174_v58 = vpop.permute.xlu1 %2173 }
 0x342   : > { %v5680_v33 = vadd.f32 %v2291_v32, %v2201_v39  ;;  %v5682_v35 = vadd.f32 %v2174_v58, %v2083_v0 }
 0x345   : > { %v2176_v45 = vpop.permute.xlu0 %2175  ;;  %v2411_v62 = vpop.permute.xlu1 %2410 }
 0x346   : > { %v5684_v51 = vadd.f32 %v2176_v45, %v2084_v24  ;;  %v2419_v3 = vadd.f32 %v2411_v62, %v2345_v27 }
 0x349   : > { %v2413_v37 = vpop.permute.xlu0 %2412  ;;  %v2415_v44 = vpop.permute.xlu1 %2414 }
 0x34a   : > { %v2420_v25 = vadd.f32 %v2413_v37, %v2346_v48  ;;  %v2421_v20 = vadd.f32 %v2415_v44, %v2347_v6 }
 0x34d   : > { %v2312_v61 = vpop.permute.xlu0 %2311  ;;  %v2314_v53 = vpop.permute.xlu1 %2313 }
 0x34e   : > { %v2320_v38 = vadd.f32 %v2312_v61, %v2224_v29  ;;  %v2321_v1 = vadd.f32 %v2314_v53, %v2225_v9 }
 0x351   : > { %v2316_v2 = vpop.permute.xlu0 %2315  ;;  %v2371_v63 = vpop.permute.xlu1 %2370 }
 0x352   : > { %v2322_v57 = vadd.f32 %v2316_v2, %v2226_v49  ;;  %v2379_v32 = vadd.f32 %v2371_v63, %v5676_v52 }
 0x355   : > { %v2373_v36 = vpop.permute.xlu0 %2372  ;;  %v2375_v26 = vpop.permute.xlu1 %2374 }
 0x356   : > { %v2381_v37 = vadd.f32 %v2375_v26, %v5680_v33 }
 0x359   : > { %v5686_v46 = vpop.permute.xlu0 %2265  ;;  %v5688_v23 = vpop.permute.xlu1 %2267 }
 0x35a   : > { %v2271_v33 = vadd.f32 %v5686_v46, %v5682_v35 }
 0x35d   : > { %v2503_v18 = vpop.permute.xlu0 %2502  ;;  %v2505_v60 = vpop.permute.xlu1 %2504 }
 0x35e   : > { %v2511_v8 = vadd.f32 %v2503_v18, %v2419_v3  ;;  %v2512_v55 = vadd.f32 %v2505_v60, %v2420_v25  ;;  %v2380_v3 = vadd.f32 %v2373_v36, %v5678_v21  ;;  %v2272_v36 = vadd.f32 %v5688_v23, %v5684_v51 }
 0x361   : > { %v2507_v30 = vpop.permute.xlu0 %2506  ;;  %v2391_v12 = vpop.permute.xlu1 %2390 }
 0x362   : > { %v2513_v47 = vadd.f32 %v2507_v30, %v2421_v20  ;;  %v2399_v43 = vadd.f32 %v2391_v12, %v2320_v38 }
 0x365   : > { %v2393_v4 = vpop.permute.xlu0 %2392  ;;  %v2395_v54 = vpop.permute.xlu1 %2394 }
 0x366   : > { %v2400_v7 = vadd.f32 %v2393_v4, %v2321_v1  ;;  %v2401_v58 = vadd.f32 %v2395_v54, %v2322_v57 }
 0x369   : > { %v2457_v22 = vpop.permute.xlu0 %2456  ;;  %v2459_v14 = vpop.permute.xlu1 %2458 }
 0x36a   : > { %v2465_v44 = vadd.f32 %v2457_v22, %v2379_v32  ;;  %v2466_v53 = vadd.f32 %v2459_v14, %v2380_v3  ;;  %v6213_v3 = vmov 0.0  }
 0x36d   : > { %v2461_v56 = vpop.permute.xlu0 %2460  ;;  %v2355_v13 = vpop.permute.xlu1 %2354 }
 0x36e   : > { %v2467_v38 = vadd.f32 %v2461_v56, %v2381_v37 }
 0x371   : > { %v2357_v50 = vpop.permute.xlu0 %2356  ;;  %v2599_v17 = vpop.permute.xlu1 %2598 }
 0x372   : > { %v2607_v16 = vadd.f32 %v2599_v17, %v2511_v8  ;;  %v2360_v17 = vadd.f32 %v2355_v13, %v2271_v33  ;;  %v2361_v8 = vadd.f32 %v2357_v50, %v2272_v36 }
 0x374   : > { %v2671_v10 = vrot.slane %v2607_v16, 1 }
 0x375   : > { %v2601_v40 = vpop.permute.xlu0 %2600  ;;  %v2603_v28 = vpop.permute.xlu1 %2602 }
 0x376   : > { %v2608_v39 = vadd.f32 %v2601_v40, %v2512_v55  ;;  %v2609_v31 = vadd.f32 %v2603_v28, %v2513_v47 }
 0x378   : > { %v2672_v5 = vrot.slane %v2608_v39, 1  ;;  %v2674_v19 = vrot.slane %v2609_v31, 1 }
 0x379   : > { %v2482_v0 = vpop.permute.xlu0 %2481  ;;  %v2484_v24 = vpop.permute.xlu1 %2483 }
 0x37a   : > { %v2673_v15 = vsel %vm639_vm9, %v2671_v10, %v2672_v5  ;;  %v2675_v59 = vsel %vm639_vm9, %v2672_v5, %v2674_v19  ;;  %v2490_v9 = vadd.f32 %v2482_v0, %v2399_v43  ;;  %v2491_v49 = vadd.f32 %v2484_v24, %v2400_v7 }
 0x37d   : > { %v2486_v27 = vpop.permute.xlu0 %2485  ;;  %v2549_v48 = vpop.permute.xlu1 %2548 }
 0x37e   : > { %v2492_v25 = vadd.f32 %v2486_v27, %v2401_v58  ;;  %v2557_v18 = vadd.f32 %v2549_v48, %v2465_v44  ;;  %v6212_v58 = vld [vmem:[#allocation14_spill] sm:$0xff] }
 0x381   : > { %v2551_v41 = vpop.permute.xlu0 %2550 }
 0x382   : > { %v2558_v52 = vadd.f32 %v2551_v41, %v2466_v53 }
 0x383   : > { %v2553_v11 = vpop.permute.xlu1 %2552 }
 0x384   : > { %v2559_v63 = vadd.f32 %v2553_v11, %v2467_v38 }
 0x385   : > { %v2436_v6 = vpop.permute.xlu0 %2435 }
 0x386   : > { %v2441_v31 = vadd.f32 %v2436_v6, %v2360_v17 }
 0x387   : > { %v2438_v29 = vpop.permute.xlu1 %2437 }
 0x388   : > { %v2442_v10 = vadd.f32 %v2438_v29, %v2361_v8 }
 0x389   : > { %v2574_v34 = vpop.permute.xlu0 %2573 }
 0x38a   : > { %v2582_v45 = vadd.f32 %v2574_v34, %v2490_v9  ;;  %v6211_v34 = vld [vmem:[#allocation13_spill] sm:$0xff] }
 0x38b   : > { %v2576_v42 = vpop.permute.xlu1 %2575 }
 0x38c   : > { %v2583_v62 = vadd.f32 %v2576_v42, %v2491_v49  ;;  %v2679_v20 = vadd.f32 %v2673_v15, %v2582_v45 }
 0x38d   : > { %v2578_v1 = vpop.permute.xlu0 %2577 }
 0x38e   : > { %v2680_v61 = vadd.f32 %v2675_v59, %v2583_v62  ;;  %v2685_v60 = vrot.slane %v2679_v20, 2  ;;  %v2584_v12 = vadd.f32 %v2578_v1, %v2492_v25 }
 0x38f   : > { %v2645_v2 = vpop.permute.xlu1 %2644 }
 0x390   : > { %v2686_v30 = vrot.slane %v2680_v61, 2  ;;  %v2681_v57 = vadd.f32 %v2674_v19, %v2584_v12  ;;  %v2653_v4 = vadd.f32 %v2645_v2, %v2557_v18 }
 0x391   : > { %v2647_v26 = vpop.permute.xlu0 %2646 }
 0x392   : > { %v2687_v21 = vsel %vm829_vm5, %v2685_v60, %v2686_v30  ;;  %v2688_v22 = vrot.slane %v2681_v57, 2  ;;  %v2654_v14 = vadd.f32 %v2647_v26, %v2558_v52  ;;  %v2659_v55 = vrot.slane %v2653_v4, 1 }
 0x393   : > { %v2649_v54 = vpop.permute.xlu1 %2648 }
 0x394   : > { %v2655_v56 = vadd.f32 %v2649_v54, %v2559_v63  ;;  %v2660_v47 = vrot.slane %v2654_v14, 1  ;;  %v2689_v40 = vsel %vm829_vm5, %v2686_v30, %v2688_v22 }
 0x395   : > { %v2528_v28 = vpop.permute.xlu0 %2527 }
 0x396   : > { %v2662_v16 = vrot.slane %v2655_v56, 1  ;;  %v2661_v35 = vsel %vm639_vm9, %v2659_v55, %v2660_v47  ;;  %v2533_v46 = vadd.f32 %v2528_v28, %v2441_v31 }
 0x397   : > { %v2530_v39 = vpop.permute.xlu1 %2529 }
 0x398   : > { %v2663_v51 = vsel %vm639_vm9, %v2660_v47, %v2662_v16  ;;  %v2534_v23 = vadd.f32 %v2530_v39, %v2442_v10 }
 0x399   : > { %v2624_v5 = vpop.permute.xlu0 %2623 }
 0x39a   : > { %v2629_v0 = vadd.f32 %v2624_v5, %v2533_v46 }
 0x39b   : > { %v2626_v19 = vpop.permute.xlu1 %2625 }
 0x39c   : > { %v2630_v13 = vadd.f32 %v2626_v19, %v2534_v23  ;;  %v2666_v50 = vadd.f32 %v2661_v35, %v2629_v0  ;;  %v6219_v0 = vld [vmem:[#allocation12_spill] sm:$0xff] }
 0x39e   : > { %v2667_v24 = vadd.f32 %v2663_v51, %v2630_v13  ;;  %v2692_v15 = vadd.f32 %v2687_v21, %v2666_v50  ;;  %v2882_v13 = vsub.s32 0, %v6219_v0 }
 0x3a0   : > { %v2693_v59 = vadd.f32 %v2689_v40, %v2667_v24  ;;  %v2694_v27 = vsub.f32 0.0, %v2692_v15 }
 0x3a2   : > { %v2695_v48 = vsub.f32 0.0, %v2693_v59  ;;  %v2696_v41 = vmul.f32 1.442695, %v2694_v27 }
 0x3a4   : > { %v2698_v11 = vmul.f32 1.442695, %v2695_v48  ;;  %3181 = vpow2.f32 %v2696_v41 }
 0x3a6   : > { %3183 = vpow2.f32 %v2698_v11 }
 0x3ae   : > { %v3182_v6 = vpop.eup %3181 }
 0x3af   : > { %v2700_v43 = vadd.f32 1.0, %v3182_v6 }
 0x3b0   : > { %v3184_v29 = vpop.eup %3183 }
 0x3b1   : > { %v2701_v7 = vadd.f32 1.0, %v3184_v29  ;;  %3185 = vrcp.f32 %v2700_v43 }
 0x3b3   : > { %3187 = vrcp.f32 %v2701_v7  ;;  %v2879_v7 = vld [vmem:[%s3500_s23] sm:$0xff]  ;;  %s3242_s23 = sshll.u32 %s3329_s13, 4  ;;  %s3243_s23 = int_to_ptr.vmem [resolvable:$false] %s3242_s23 }
 0x3b4   : > { %s3244_s20 = scalar_lea.vmem %s3243_s23, 256  ;;  %p3245_p1 = scmp.lt.s32.totalorder %s5753_s24, %s3243_s23 }
 0x3b5   : > { %p3246_p2 = scmp.lt.s32.totalorder %s3244_s20, %s3238_s28 }
 0x3b7   : > { %p3247_p12 = por %p3246_p2, %p3245_p1 }
 0x3b9   : > { %p3248_p0 = pnand %p3247_p12, %p3241_p5 }
 0x3bb   : > { %v3186_v9 = vpop.eup %3185 }
 0x3bc   : > { %v2711_v42 = vrot.slane %v3186_v9, %v6211_v34  ;;  %v2704_v53 = vcombine.high %v3186_v9, %v6213_v3 }
 0x3bd   : > { %v3188_v49 = vpop.eup %3187 }
 0x3be   : > { %v2760_v32 = vrot.slane %v3188_v49, %v6211_v34  ;;  %v2726_v45 = vrot.slane %v2711_v42, %v6212_v58  ;;  %v2719_v44 = vcombine.high %v2711_v42, %v6213_v3  ;;  %v2753_v1 = vcombine.high %v3188_v49, %v6213_v3 }
 0x3bf   : > { %v2718_v18 = vrot.slane %v2704_v53, %v6211_v34 }
 0x3c0   : > { %v2775_v62 = vrot.slane %v2760_v32, %v6212_v58  ;;  %v2749_v37 = vcombine.high %v2726_v45, %v6213_v3  ;;  %v2768_v20 = vcombine.high %v2760_v32, %v6213_v3  ;;  %v2733_v61 = vrot.slane %v2719_v44, %v6212_v58 }
 0x3c1   : > { %v2767_v30 = vrot.slane %v2753_v1, %v6211_v34  ;;  %v2741_v12 = vrot.slane %v2718_v18, %v6212_v58  ;;  %v2734_v57 = vcombine.high %v2718_v18, %v6213_v3 }
 0x3c2   : > { %v2798_v25 = vcombine.high %v2775_v62, %v6213_v3  ;;  %2803 = vrot.lane.b32.xlu0 %v2749_v37, %s3318_s27  ;;  %v2782_v38 = vrot.slane %v2768_v20, %v6212_v58  ;;  %v2750_v2 = vcombine.high %v2733_v61, %v6213_v3 }
 0x3c3   : > { %v2790_v52 = vrot.slane %v2767_v30, %v6212_v58  ;;  %v2751_v63 = vcombine.high %v2741_v12, %v6213_v3  ;;  %v2783_v21 = vcombine.high %v2767_v30, %v6213_v3  ;;  %v2748_v33 = vrot.slane %v2734_v57, %v6212_v58 }
 0x3c4   : > { %2831 = vrot.lane.b32.xlu1 %v2798_v25, %s3318_s27  ;;  %v2799_v60 = vcombine.high %v2782_v38, %v6213_v3  ;;  %s6215_s27 = smov 64  }
 0x3c5   : > { %v2800_v4 = vcombine.high %v2790_v52, %v6213_v3  ;;  %v2797_v36 = vrot.slane %v2783_v21, %v6212_v58  ;;  %v2752_v26 = vcombine.high %v2748_v33, %v6213_v3 }
 0x3c6   : > { %2807 = vrot.lane.b32.xlu0 %v2733_v61, %s3316_s25 }
 0x3c7   : > { %v2801_v54 = vcombine.high %v2797_v36, %v6213_v3 }
 0x3c8   : > { %2835 = vrot.lane.b32.xlu1 %v2782_v38, %s3316_s25  ;;  %s6216_s25 = smov 80  }
 0x3ca   : > { %2811 = vrot.lane.b32.xlu0 %v2750_v2, %s6214_s15 }
 0x3cc   : > { %2839 = vrot.lane.b32.xlu1 %v2799_v60, %s6214_s15 }
 0x3ce   : > { %2815 = vrot.lane.b32.xlu0 %v2741_v12, %s6215_s27 }
 0x3d0   : > { %2843 = vrot.lane.b32.xlu1 %v2790_v52, %s6215_s27 }
 0x3d2   : > { %2819 = vrot.lane.b32.xlu0 %v2751_v63, %s6216_s25 }
 0x3d4   : > { %2847 = vrot.lane.b32.xlu1 %v2800_v4, %s6216_s25 }
 0x3d6   : > { %2823 = vrot.lane.b32.xlu0 %v2748_v33, %s6217_s29 }
 0x3d8   : > { %2851 = vrot.lane.b32.xlu1 %v2797_v36, %s6217_s29 }
 0x3da   : > { %2827 = vrot.lane.b32.xlu0 %v2752_v26, %s6218_s21 }
 0x3dc   : > { %2855 = vrot.lane.b32.xlu1 %v2801_v54, %s6218_s21 }
 0x434   : > { %v2804_v22 = vpop.permute.xlu0 %2803 }
 0x435   : > { %v2859_v39 = vsel %vm2858_vm10, %v2726_v45, %v2804_v22 }
 0x436   : > { %v2832_v14 = vpop.permute.xlu1 %2831 }
 0x437   : > { %v2872_v31 = vsel %vm2858_vm10, %v2775_v62, %v2832_v14 }
 0x438   : > { %v2808_v56 = vpop.permute.xlu0 %2807 }
 0x439   : > { %v2861_v10 = vsel %vm2860_vm11, %v2859_v39, %v2808_v56 }
 0x43a   : > { %v2836_v17 = vpop.permute.xlu1 %2835 }
 0x43b   : > { %v2873_v51 = vsel %vm2860_vm11, %v2872_v31, %v2836_v17 }
 0x43c   : > { %v2812_v8 = vpop.permute.xlu0 %2811 }
 0x43d   : > { %v2863_v46 = vsel %vm2862_vm12, %v2861_v10, %v2812_v8 }
 0x43e   : > { %v2840_v55 = vpop.permute.xlu1 %2839 }
 0x43f   : > { %v2874_v5 = vsel %vm2862_vm12, %v2873_v51, %v2840_v55 }
 0x440   : > { %v2816_v47 = vpop.permute.xlu0 %2815 }
 0x441   : > { %v2865_v19 = vsel %vm2864_vm13, %v2863_v46, %v2816_v47 }
 0x442   : > { %v2844_v16 = vpop.permute.xlu1 %2843 }
 0x443   : > { %v2875_v50 = vsel %vm2864_vm13, %v2874_v5, %v2844_v16 }
 0x444   : > { %v2820_v40 = vpop.permute.xlu0 %2819 }
 0x445   : > { %v2867_v24 = vsel %vm2866_vm14, %v2865_v19, %v2820_v40 }
 0x446   : > { %v2848_v28 = vpop.permute.xlu1 %2847 }
 0x447   : > { %v2876_v15 = vsel %vm2866_vm14, %v2875_v50, %v2848_v28 }
 0x448   : > { %v2824_v35 = vpop.permute.xlu0 %2823 }
 0x449   : > { %v2869_v59 = vsel %vm2868_vm15, %v2867_v24, %v2824_v35 }
 0x44a   : > { %v2852_v23 = vpop.permute.xlu1 %2851 }
 0x44b   : > { %v2877_v48 = vsel %vm2868_vm15, %v2876_v15, %v2852_v23 }
 0x44c   : > { %v2828_v27 = vpop.permute.xlu0 %2827 }
 0x44d   : > { %v2871_v11 = vsel %vm2870_vm0, %v2869_v59, %v2828_v27 }
 0x44e   : > { %v2856_v41 = vpop.permute.xlu1 %2855  ;;  %v2883_v29 = vrot.slane %v2871_v11, %v2882_v13 }
 0x44f   : > { %v2878_v6 = vsel %vm2870_vm0, %v2877_v48, %v2856_v41 }
 0x450   : > { %v2887_v43 = vrot.slane %v2878_v6, %v2882_v13 }
 0x452   : > { %v2890_v9 = vcombine.low %v2883_v29, %v2887_v43 }
 0x454   : > { %v2892_v49 = vmul.f32 %v2890_v9, %v2879_v7 }
 0x456   : > { %2893 = vst [vmem:[%s171_s3] sm:$0xff] %v2892_v49 }
 0x457   : > { %3251 = shalt.err (!%p3248_p0)
}
 0x458   : > { %s3252_s19 = scalar_lea.hbm %s5751_s26, 128  ;;  %s3256_s15 = scalar_lea.hbm %s5797_s2, 256 }
 0x459   : > { %p3253_p3 = scmp.ne.s32.totalorder %s5751_s26, %s3252_s19  ;;  %p3257_p6 = scmp.lt.u32.totalorder %s5751_s26, %s5797_s2 }
 0x45a   : > { %p3258_p13 = scmp.lt.u32.totalorder %s3256_s15, %s3252_s19  ;;  %p3260_p8 = scmp.lt.u32.totalorder %s3252_s19, %s5751_s26 }
 0x45b   : > { %p3254_p7 = pnand %p3253_p3, %p6221_p9 }
 0x45c   : > { %p3259_p4 = por %p3258_p13, %p3257_p6 }
 0x45d   : > { %p3255_p10 = pneg %p3254_p7 }
 0x45e   : > { %p3261_p11 = por %p3260_p8, %p3259_p4 }
 0x460   : > { %p3262_p5 = pnand %p3261_p11, %p3255_p10 }
 0x462   : > { %3265 = shalt.err (!%p3262_p5)
}
 0x463   : > { %3112 = dma.vmem_to_hbm [thread:$0]  (%p6221_p9), %s5753_s24, 128, %s5751_s26, %s2895_s7  }
 0x464 PF: > { %s2921_s29 = sand.u32 1, %s3296_s9   ;;  %p6222_p1 = scmp.ne.s32.totalorder %s5865_s16, 0 }
 0x465   : > { %p6223_p2 = scmp.ge.s32.totalorder %s3308_s12, 2  ;;  %s2922_s21 = scalar_lea.sflag [#allocation5], %s2921_s29 }
 0x467   : > { %p3123_p12 = pnand %p6223_p2, %p6222_p1 }
 0x469   : > { %3291 = dma.done.wait (!%p3123_p12), %s2922_s21, 128  }
 0x46a   : > { %3293 = vsyncadd (!%p3123_p12), %s2922_s21, 4294967168  ;;  %p16_p0 = scmp.ge.s32.totalorder %s3391_s18, 4   ;;  %s6224_s9 = smov %s3300_s10 }
 0x46b   : > { %s6225_s10 = smov %s3304_s11  ;;  %s6226_s11 = smov %s3431_s5 }
 0x46c   : > { %s6227_s12 = smov %s3391_s18  ;;  %18 = sbr.rel (!%p16_p0) target bundleno = 6 (0x6), region = 79 }
 0x473   :  { %2927 = vsyncpa [#allocation4], 1 }
 0x474   :  { %2929 = vsyncpa [#allocation4 + $0x1], 1 }
 0x475   :  { %2930 = vsyncpa [#allocation5], 1 }
 0x476   :  { %2932 = vsyncpa [#allocation5 + $0x1], 1 }
 0x477   :  { %2933 = vsyncpa [#allocation6], 1 }
 0x478   :  { %2935 = vsyncpa [#allocation6 + $0x1], 1 }

</bundles_post_ra>
